<compile_context>
chip_gen: v7x
topology: tpu7x:2x2x1
jax: 0.10.0
libtpu: 0.0.40
codegen_flags: <defaults>
</compile_context>

<pallas_src>
import functools

import jax
import jax.numpy as jnp
from jax.experimental import pallas as pl
from jax.experimental.pallas import tpu as pltpu


COMPUTE_DTYPE = jnp.bfloat16          # MXU operand dtype; accumulation is f32
VMEM_LIMIT_BYTES = 32 * 1024 * 1024   # safe on v5e / v6e / v7x
LN_EPS = 1e-5                         # torch.nn.LayerNorm default


def _pick_tile(size, candidates):
    """Largest candidate evenly dividing `size`; else the full size
    (a full-extent block is always (8,128)-legal)."""
    for c in candidates:
        if size % c == 0:
            return c
    return size


def _layernorm_f32(x, gamma, beta, eps):
    mean = jnp.mean(x, axis=-1, keepdims=True)
    var = jnp.mean(jnp.square(x - mean), axis=-1, keepdims=True)
    return (x - mean) * jax.lax.rsqrt(var + eps) * gamma + beta


def _gelu_exact(y):
    # matches torch.nn.GELU(approximate='none')
    return 0.5 * y * (1.0 + jax.lax.erf(y * 0.7071067811865476))


# ---------------------------------------------------------------------------
# Fused attention residual block:  x + OutProj(MHSA(LayerNorm(x)))
# ---------------------------------------------------------------------------

def _attn_block_kernel(*refs, heads, dh, scale, eps, project_out,
                       compute_dtype):
    it = iter(refs)
    x_ref = next(it)                                  # (1, N, dim)
    g_ref = next(it)                                  # (1, dim)
    be_ref = next(it)                                 # (1, dim)
    qkvw_ref = next(it)                               # (dim, 3*inner)
    ow_ref = next(it) if project_out else None        # (inner, dim)
    ob_ref = next(it) if project_out else None        # (1, dim)
    o_ref = next(it)                                  # (1, N, dim)

    inner = heads * dh
    x = x_ref[0].astype(jnp.float32)                  # (N, dim) residual input
    xn = _layernorm_f32(x, g_ref[...], be_ref[...], eps)

    qkv = jnp.dot(xn.astype(compute_dtype),
                  qkvw_ref[...].astype(compute_dtype),
                  preferred_element_type=jnp.float32)  # (N, 3*inner), f32

    head_outs = []
    for h in range(heads):
        # fold softmax scale into q (N*dh multiplies instead of N*N)
        q = (qkv[:, h * dh:(h + 1) * dh] * scale).astype(compute_dtype)
        k = qkv[:, inner + h * dh: inner + (h + 1) * dh].astype(compute_dtype)
        v = qkv[:, 2 * inner + h * dh: 2 * inner + (h + 1) * dh
                ].astype(compute_dtype)

        s = jax.lax.dot_general(q, k, (((1,), (1,)), ((), ())),
                                preferred_element_type=jnp.float32)  # (N, N)
        m = jnp.max(s, axis=-1, keepdims=True)
        p = jnp.exp(s - m)
        l = jnp.sum(p, axis=-1, keepdims=True)
        o_h = jnp.dot(p.astype(compute_dtype), v,
                      preferred_element_type=jnp.float32)            # (N, dh)
        head_outs.append(o_h * pl.reciprocal(l, approx=True))

    attn = jnp.concatenate(head_outs, axis=-1)        # (N, inner), lane-dense

    if project_out:
        y = jnp.dot(attn.astype(compute_dtype),
                    ow_ref[...].astype(compute_dtype),
                    preferred_element_type=jnp.float32) + ob_ref[...]
    else:
        y = attn                                      # to_out == Identity

    o_ref[0] = (x + y).astype(o_ref.dtype)            # single lane-dense store


def attention_block(x, ln_g, ln_b, qkv_w, out_w, out_b, *, heads, dim_head,
                    eps=LN_EPS):
    """x: (b, n, dim) f32  ->  (b, n, dim) f32  (PreNorm+Attention+residual)."""
    b, n, dim = x.shape
    inner = heads * dim_head
    project_out = out_w is not None
    scale = dim_head ** -0.5

    args = [x,
            ln_g.reshape(1, dim).astype(jnp.float32),
            ln_b.reshape(1, dim).astype(jnp.float32),
            qkv_w]
    in_specs = [
        pl.BlockSpec((1, n, dim), lambda i: (i, 0, 0)),
        pl.BlockSpec((1, dim), lambda i: (0, 0)),
        pl.BlockSpec((1, dim), lambda i: (0, 0)),
        pl.BlockSpec((dim, 3 * inner), lambda i: (0, 0)),   # VMEM-resident
    ]
    if project_out:
        args += [out_w, out_b.reshape(1, dim).astype(jnp.float32)]
        in_specs += [pl.BlockSpec((inner, dim), lambda i: (0, 0)),
                     pl.BlockSpec((1, dim), lambda i: (0, 0))]

    kernel = functools.partial(
        _attn_block_kernel, heads=heads, dh=dim_head, scale=scale, eps=eps,
        project_out=project_out, compute_dtype=COMPUTE_DTYPE)

    return pl.pallas_call(
        kernel,
        out_shape=jax.ShapeDtypeStruct((b, n, dim), jnp.float32),
        grid=(b,),
        in_specs=in_specs,
        out_specs=pl.BlockSpec((1, n, dim), lambda i: (i, 0, 0)),
        compiler_params=pltpu.CompilerParams(
            dimension_semantics=("parallel",),
            vmem_limit_bytes=VMEM_LIMIT_BYTES),
    )(*args)


# ---------------------------------------------------------------------------
# Fused MLP residual block:  x + FF2(GELU(FF1(LayerNorm(x))))
# ---------------------------------------------------------------------------

def _mlp_block_kernel(x_ref, g_ref, be_ref, w1_ref, b1_ref, w2_ref, b2_ref,
                      o_ref, *, eps, compute_dtype):
    x = x_ref[...].astype(jnp.float32)                # (tm, dim)
    xn = _layernorm_f32(x, g_ref[...], be_ref[...], eps)
    h = jnp.dot(xn.astype(compute_dtype), w1_ref[...].astype(compute_dtype),
                preferred_element_type=jnp.float32) + b1_ref[...]
    h = _gelu_exact(h)                                # (tm, hidden), f32
    y = jnp.dot(h.astype(compute_dtype), w2_ref[...].astype(compute_dtype),
                preferred_element_type=jnp.float32) + b2_ref[...]
    o_ref[...] = (x + y).astype(o_ref.dtype)


def mlp_block(x2d, ln_g, ln_b, w1, b1, w2, b2, *, eps=LN_EPS):
    """x2d: (M, dim) f32  ->  (M, dim) f32  (PreNorm+FeedForward+residual)."""
    M, dim = x2d.shape
    hidden = w1.shape[1]
    tm = _pick_tile(M, (512, 256, 128, 64, 32, 16, 8))
    grid = (M // tm,)

    args = [x2d,
            ln_g.reshape(1, dim).astype(jnp.float32),
            ln_b.reshape(1, dim).astype(jnp.float32),
            w1, b1.reshape(1, hidden).astype(jnp.float32),
            w2, b2.reshape(1, dim).astype(jnp.float32)]
    in_specs = [
        pl.BlockSpec((tm, dim), lambda i: (i, 0)),
        pl.BlockSpec((1, dim), lambda i: (0, 0)),
        pl.BlockSpec((1, dim), lambda i: (0, 0)),
        pl.BlockSpec((dim, hidden), lambda i: (0, 0)),   # VMEM-resident
        pl.BlockSpec((1, hidden), lambda i: (0, 0)),
        pl.BlockSpec((hidden, dim), lambda i: (0, 0)),   # VMEM-resident
        pl.BlockSpec((1, dim), lambda i: (0, 0)),
    ]

    kernel = functools.partial(_mlp_block_kernel, eps=eps,
                               compute_dtype=COMPUTE_DTYPE)

    return pl.pallas_call(
        kernel,
        out_shape=jax.ShapeDtypeStruct((M, dim), jnp.float32),
        grid=grid,
        in_specs=in_specs,
        out_specs=pl.BlockSpec((tm, dim), lambda i: (i, 0)),
        compiler_params=pltpu.CompilerParams(
            dimension_semantics=("parallel",),
            vmem_limit_bytes=VMEM_LIMIT_BYTES),
    )(*args)


# ---------------------------------------------------------------------------
# Transformer forward (matches the PyTorch `Transformer` module, dropout=0)
# ---------------------------------------------------------------------------

def transformer_forward(x, params, *, heads, dim_head):
    b, n, dim = x.shape
    project_out = not (heads == 1 and dim_head == dim)

    xf = x.astype(jnp.float32)                        # f32 residual stream
    for layer in params["layers"]:
        xf = attention_block(
            xf, layer["ln1_g"], layer["ln1_b"], layer["qkv_w"],
            layer["out_w"] if project_out else None,
            layer["out_b"] if project_out else None,
            heads=heads, dim_head=dim_head)
        xf = mlp_block(
            xf.reshape(b * n, dim),
            layer["ln2_g"], layer["ln2_b"],
            layer["ff1_w"], layer["ff1_b"],
            layer["ff2_w"], layer["ff2_b"]).reshape(b, n, dim)
    return xf


# ---------------------------------------------------------------------------
# Deterministic synthetic parameters
# ---------------------------------------------------------------------------

def init_params(key, cfg):
    dim = cfg["dim"]
    heads, dh = cfg["heads"], cfg["dim_head"]
    inner = heads * dh
    mlp = cfg["hidden_dim"]

    keys = iter(jax.random.split(key, cfg["depth"] * 8))

    def w(shape, scale=0.05):
        return (scale * jax.random.normal(next(keys), shape,
                                          dtype=jnp.float32)
                ).astype(COMPUTE_DTYPE)

    def bvec(shape, scale=0.05):
        return scale * jax.random.normal(next(keys), shape, dtype=jnp.float32)

    layers = []
    for _ in range(cfg["depth"]):
        layers.append({
            "ln1_g": jnp.ones((dim,), jnp.float32),
            "ln1_b": jnp.zeros((dim,), jnp.float32),
            "qkv_w": w((dim, 3 * inner)),            # to_qkv has no bias
            "out_w": w((inner, dim)),
            "out_b": bvec((dim,)),
            "ln2_g": jnp.ones((dim,), jnp.float32),
            "ln2_b": jnp.zeros((dim,), jnp.float32),
            "ff1_w": w((dim, mlp)),
            "ff1_b": bvec((mlp,)),
            "ff2_w": w((mlp, dim)),
            "ff2_b": bvec((dim,)),
        })
    return {"layers": layers}


if __name__ == "__main__":
    # Small, lane-friendly demo shapes (tokens multiple of 8, dims of 8/64).
    cfg = dict(depth=2, dim=64, heads=4, dim_head=16, hidden_dim=128, dropout=0)
    b, n = 2, 64

    key = jax.random.PRNGKey(0)
    kx, kp = jax.random.split(key)
    x = jax.random.normal(kx, (b, n, cfg["dim"]), dtype=jnp.float32)
    params = init_params(kp, cfg)

    fwd = jax.jit(functools.partial(transformer_forward,
                                    heads=cfg["heads"],
                                    dim_head=cfg["dim_head"]))
    out = jax.block_until_ready(fwd(x, params))

    assert out.shape == (b, n, cfg["dim"])
    assert bool(jnp.all(jnp.isfinite(out)))
    print("KERNEL_OK")
</pallas_src>

<mosaic_0001>
module attributes {stable_mosaic.version = 11 : i64} {
  func.func @_attn_block_kernel(%arg0: i32, %arg1: memref<1x64x64xf32, #tpu.memory_space<vmem>>, %arg2: memref<1x64xf32, #tpu.memory_space<vmem>>, %arg3: memref<1x64xf32, #tpu.memory_space<vmem>>, %arg4: memref<64x192xbf16, #tpu.memory_space<vmem>>, %arg5: memref<64x64xbf16, #tpu.memory_space<vmem>>, %arg6: memref<1x64xf32, #tpu.memory_space<vmem>>, %arg7: memref<1x64x64xf32, #tpu.memory_space<vmem>>) attributes {dimension_semantics = [#tpu.dimension_semantics<parallel>], iteration_bounds = array<i64: 2>, scalar_prefetch = 0 : i64, scratch_operands = 0 : i64, tpu.core_type = #tpu.core_type<tc>, window_params = [{transform_indices = @transform_0, window_bounds = array<i64: 1, 64, 64>}, {pipeline_mode = #tpu.pipeline_mode<synchronous>, transform_indices = @transform_1, window_bounds = array<i64: 1, 64>}, {pipeline_mode = #tpu.pipeline_mode<synchronous>, transform_indices = @transform_2, window_bounds = array<i64: 1, 64>}, {pipeline_mode = #tpu.pipeline_mode<synchronous>, transform_indices = @transform_3, window_bounds = array<i64: 64, 192>}, {pipeline_mode = #tpu.pipeline_mode<synchronous>, transform_indices = @transform_4, window_bounds = array<i64: 64, 64>}, {pipeline_mode = #tpu.pipeline_mode<synchronous>, transform_indices = @transform_5, window_bounds = array<i64: 1, 64>}, {transform_indices = @transform_6, window_bounds = array<i64: 1, 64, 64>}]} {
    %c0 = arith.constant 0 : index
    %c0_0 = arith.constant 0 : index
    %c0_1 = arith.constant 0 : index
    %0 = vector.load %arg1[%c0, %c0_0, %c0_1] : memref<1x64x64xf32, #tpu.memory_space<vmem>>, vector<1x64x64xf32>
    %1 = vector.shape_cast %0 : vector<1x64x64xf32> to vector<64x64xf32>
    %c0_2 = arith.constant 0 : index
    %c0_3 = arith.constant 0 : index
    %2 = vector.load %arg2[%c0_2, %c0_3] : memref<1x64xf32, #tpu.memory_space<vmem>>, vector<1x64xf32>
    %c0_4 = arith.constant 0 : index
    %c0_5 = arith.constant 0 : index
    %3 = vector.load %arg3[%c0_4, %c0_5] : memref<1x64xf32, #tpu.memory_space<vmem>>, vector<1x64xf32>
    %cst = arith.constant dense<0.000000e+00> : vector<64xf32>
    %4 = vector.multi_reduction <add>, %1, %cst [1] : vector<64x64xf32> to vector<64xf32>
    %5 = vector.shape_cast %4 : vector<64xf32> to vector<64x1xf32>
    %cst_6 = arith.constant 6.400000e+01 : f32
    %6 = vector.broadcast %cst_6 : f32 to vector<64x1xf32>
    %7 = arith.divf %5, %6 : vector<64x1xf32>
    %8 = vector.broadcast %7 : vector<64x1xf32> to vector<64x64xf32>
    %9 = arith.subf %1, %8 : vector<64x64xf32>
    %10 = arith.mulf %9, %9 : vector<64x64xf32>
    %cst_7 = arith.constant dense<0.000000e+00> : vector<64xf32>
    %11 = vector.multi_reduction <add>, %10, %cst_7 [1] : vector<64x64xf32> to vector<64xf32>
    %12 = vector.shape_cast %11 : vector<64xf32> to vector<64x1xf32>
    %cst_8 = arith.constant 6.400000e+01 : f32
    %13 = vector.broadcast %cst_8 : f32 to vector<64x1xf32>
    %14 = arith.divf %12, %13 : vector<64x1xf32>
    %15 = vector.broadcast %7 : vector<64x1xf32> to vector<64x64xf32>
    %16 = arith.subf %1, %15 : vector<64x64xf32>
    %cst_9 = arith.constant 9.99999974E-6 : f32
    %17 = vector.broadcast %cst_9 : f32 to vector<64x1xf32>
    %18 = arith.addf %14, %17 : vector<64x1xf32>
    %19 = math.rsqrt %18 : vector<64x1xf32>
    %20 = vector.broadcast %19 : vector<64x1xf32> to vector<64x64xf32>
    %21 = arith.mulf %16, %20 : vector<64x64xf32>
    %22 = vector.broadcast %2 : vector<1x64xf32> to vector<64x64xf32>
    %23 = arith.mulf %21, %22 : vector<64x64xf32>
    %24 = vector.broadcast %3 : vector<1x64xf32> to vector<64x64xf32>
    %25 = arith.addf %23, %24 : vector<64x64xf32>
    %26 = arith.truncf %25 : vector<64x64xf32> to vector<64x64xbf16>
    %c0_10 = arith.constant 0 : index
    %c0_11 = arith.constant 0 : index
    %27 = vector.load %arg4[%c0_10, %c0_11] : memref<64x192xbf16, #tpu.memory_space<vmem>>, vector<64x192xbf16>
    %cst_12 = arith.constant dense<0.000000e+00> : vector<64x192xf32>
    %28 = tpu.matmul %26, %27, %cst_12 {dimension_numbers = #tpu.dot_dimension_numbers<[1], [0], [0], [1], [0, 0, 1, 1], [], []>} : vector<64x64xbf16>, vector<64x192xbf16>, vector<64x192xf32> -> vector<64x192xf32>
    %29 = vector.extract_strided_slice %28 {offsets = [0, 0], sizes = [64, 16], strides = [1, 1]} : vector<64x192xf32> to vector<64x16xf32>
    %cst_13 = arith.constant 2.500000e-01 : f32
    %30 = vector.broadcast %cst_13 : f32 to vector<64x16xf32>
    %31 = arith.mulf %29, %30 : vector<64x16xf32>
    %32 = arith.truncf %31 : vector<64x16xf32> to vector<64x16xbf16>
    %33 = vector.extract_strided_slice %28 {offsets = [0, 64], sizes = [64, 16], strides = [1, 1]} : vector<64x192xf32> to vector<64x16xf32>
    %34 = arith.truncf %33 : vector<64x16xf32> to vector<64x16xbf16>
    %35 = vector.extract_strided_slice %28 {offsets = [0, 128], sizes = [64, 16], strides = [1, 1]} : vector<64x192xf32> to vector<64x16xf32>
    %36 = arith.truncf %35 : vector<64x16xf32> to vector<64x16xbf16>
    %cst_14 = arith.constant dense<0.000000e+00> : vector<64x64xf32>
    %37 = tpu.matmul %32, %34, %cst_14 {dimension_numbers = #tpu.dot_dimension_numbers<[1], [1], [0], [0], [0, 0, 1, 0], [], []>} : vector<64x16xbf16>, vector<64x16xbf16>, vector<64x64xf32> -> vector<64x64xf32>
    %cst_15 = arith.constant dense<0xFF800000> : vector<64xf32>
    %38 = vector.multi_reduction <maximumf>, %37, %cst_15 [1] : vector<64x64xf32> to vector<64xf32>
    %39 = vector.shape_cast %38 : vector<64xf32> to vector<64x1xf32>
    %40 = vector.broadcast %39 : vector<64x1xf32> to vector<64x64xf32>
    %41 = arith.subf %37, %40 : vector<64x64xf32>
    %42 = math.exp %41 : vector<64x64xf32>
    %cst_16 = arith.constant dense<0.000000e+00> : vector<64xf32>
    %43 = vector.multi_reduction <add>, %42, %cst_16 [1] : vector<64x64xf32> to vector<64xf32>
    %44 = vector.shape_cast %43 : vector<64xf32> to vector<64x1xf32>
    %45 = arith.truncf %42 : vector<64x64xf32> to vector<64x64xbf16>
    %cst_17 = arith.constant dense<0.000000e+00> : vector<64x16xf32>
    %46 = tpu.matmul %45, %36, %cst_17 {dimension_numbers = #tpu.dot_dimension_numbers<[1], [0], [0], [1], [0, 0, 1, 1], [], []>} : vector<64x64xbf16>, vector<64x16xbf16>, vector<64x16xf32> -> vector<64x16xf32>
    %47 = tpu.reciprocal %44 {approx = true} : vector<64x1xf32> -> vector<64x1xf32>
    %48 = vector.broadcast %47 : vector<64x1xf32> to vector<64x16xf32>
    %49 = arith.mulf %46, %48 : vector<64x16xf32>
    %50 = vector.extract_strided_slice %28 {offsets = [0, 16], sizes = [64, 16], strides = [1, 1]} : vector<64x192xf32> to vector<64x16xf32>
    %cst_18 = arith.constant 2.500000e-01 : f32
    %51 = vector.broadcast %cst_18 : f32 to vector<64x16xf32>
    %52 = arith.mulf %50, %51 : vector<64x16xf32>
    %53 = arith.truncf %52 : vector<64x16xf32> to vector<64x16xbf16>
    %54 = vector.extract_strided_slice %28 {offsets = [0, 80], sizes = [64, 16], strides = [1, 1]} : vector<64x192xf32> to vector<64x16xf32>
    %55 = arith.truncf %54 : vector<64x16xf32> to vector<64x16xbf16>
    %56 = vector.extract_strided_slice %28 {offsets = [0, 144], sizes = [64, 16], strides = [1, 1]} : vector<64x192xf32> to vector<64x16xf32>
    %57 = arith.truncf %56 : vector<64x16xf32> to vector<64x16xbf16>
    %cst_19 = arith.constant dense<0.000000e+00> : vector<64x64xf32>
    %58 = tpu.matmul %53, %55, %cst_19 {dimension_numbers = #tpu.dot_dimension_numbers<[1], [1], [0], [0], [0, 0, 1, 0], [], []>} : vector<64x16xbf16>, vector<64x16xbf16>, vector<64x64xf32> -> vector<64x64xf32>
    %cst_20 = arith.constant dense<0xFF800000> : vector<64xf32>
    %59 = vector.multi_reduction <maximumf>, %58, %cst_20 [1] : vector<64x64xf32> to vector<64xf32>
    %60 = vector.shape_cast %59 : vector<64xf32> to vector<64x1xf32>
    %61 = vector.broadcast %60 : vector<64x1xf32> to vector<64x64xf32>
    %62 = arith.subf %58, %61 : vector<64x64xf32>
    %63 = math.exp %62 : vector<64x64xf32>
    %cst_21 = arith.constant dense<0.000000e+00> : vector<64xf32>
    %64 = vector.multi_reduction <add>, %63, %cst_21 [1] : vector<64x64xf32> to vector<64xf32>
    %65 = vector.shape_cast %64 : vector<64xf32> to vector<64x1xf32>
    %66 = arith.truncf %63 : vector<64x64xf32> to vector<64x64xbf16>
    %cst_22 = arith.constant dense<0.000000e+00> : vector<64x16xf32>
    %67 = tpu.matmul %66, %57, %cst_22 {dimension_numbers = #tpu.dot_dimension_numbers<[1], [0], [0], [1], [0, 0, 1, 1], [], []>} : vector<64x64xbf16>, vector<64x16xbf16>, vector<64x16xf32> -> vector<64x16xf32>
    %68 = tpu.reciprocal %65 {approx = true} : vector<64x1xf32> -> vector<64x1xf32>
    %69 = vector.broadcast %68 : vector<64x1xf32> to vector<64x16xf32>
    %70 = arith.mulf %67, %69 : vector<64x16xf32>
    %71 = vector.extract_strided_slice %28 {offsets = [0, 32], sizes = [64, 16], strides = [1, 1]} : vector<64x192xf32> to vector<64x16xf32>
    %cst_23 = arith.constant 2.500000e-01 : f32
    %72 = vector.broadcast %cst_23 : f32 to vector<64x16xf32>
    %73 = arith.mulf %71, %72 : vector<64x16xf32>
    %74 = arith.truncf %73 : vector<64x16xf32> to vector<64x16xbf16>
    %75 = vector.extract_strided_slice %28 {offsets = [0, 96], sizes = [64, 16], strides = [1, 1]} : vector<64x192xf32> to vector<64x16xf32>
    %76 = arith.truncf %75 : vector<64x16xf32> to vector<64x16xbf16>
    %77 = vector.extract_strided_slice %28 {offsets = [0, 160], sizes = [64, 16], strides = [1, 1]} : vector<64x192xf32> to vector<64x16xf32>
    %78 = arith.truncf %77 : vector<64x16xf32> to vector<64x16xbf16>
    %cst_24 = arith.constant dense<0.000000e+00> : vector<64x64xf32>
    %79 = tpu.matmul %74, %76, %cst_24 {dimension_numbers = #tpu.dot_dimension_numbers<[1], [1], [0], [0], [0, 0, 1, 0], [], []>} : vector<64x16xbf16>, vector<64x16xbf16>, vector<64x64xf32> -> vector<64x64xf32>
    %cst_25 = arith.constant dense<0xFF800000> : vector<64xf32>
    %80 = vector.multi_reduction <maximumf>, %79, %cst_25 [1] : vector<64x64xf32> to vector<64xf32>
    %81 = vector.shape_cast %80 : vector<64xf32> to vector<64x1xf32>
    %82 = vector.broadcast %81 : vector<64x1xf32> to vector<64x64xf32>
    %83 = arith.subf %79, %82 : vector<64x64xf32>
    %84 = math.exp %83 : vector<64x64xf32>
    %cst_26 = arith.constant dense<0.000000e+00> : vector<64xf32>
    %85 = vector.multi_reduction <add>, %84, %cst_26 [1] : vector<64x64xf32> to vector<64xf32>
    %86 = vector.shape_cast %85 : vector<64xf32> to vector<64x1xf32>
    %87 = arith.truncf %84 : vector<64x64xf32> to vector<64x64xbf16>
    %cst_27 = arith.constant dense<0.000000e+00> : vector<64x16xf32>
    %88 = tpu.matmul %87, %78, %cst_27 {dimension_numbers = #tpu.dot_dimension_numbers<[1], [0], [0], [1], [0, 0, 1, 1], [], []>} : vector<64x64xbf16>, vector<64x16xbf16>, vector<64x16xf32> -> vector<64x16xf32>
    %89 = tpu.reciprocal %86 {approx = true} : vector<64x1xf32> -> vector<64x1xf32>
    %90 = vector.broadcast %89 : vector<64x1xf32> to vector<64x16xf32>
    %91 = arith.mulf %88, %90 : vector<64x16xf32>
    %92 = vector.extract_strided_slice %28 {offsets = [0, 48], sizes = [64, 16], strides = [1, 1]} : vector<64x192xf32> to vector<64x16xf32>
    %cst_28 = arith.constant 2.500000e-01 : f32
    %93 = vector.broadcast %cst_28 : f32 to vector<64x16xf32>
    %94 = arith.mulf %92, %93 : vector<64x16xf32>
    %95 = arith.truncf %94 : vector<64x16xf32> to vector<64x16xbf16>
    %96 = vector.extract_strided_slice %28 {offsets = [0, 112], sizes = [64, 16], strides = [1, 1]} : vector<64x192xf32> to vector<64x16xf32>
    %97 = arith.truncf %96 : vector<64x16xf32> to vector<64x16xbf16>
    %98 = vector.extract_strided_slice %28 {offsets = [0, 176], sizes = [64, 16], strides = [1, 1]} : vector<64x192xf32> to vector<64x16xf32>
    %99 = arith.truncf %98 : vector<64x16xf32> to vector<64x16xbf16>
    %cst_29 = arith.constant dense<0.000000e+00> : vector<64x64xf32>
    %100 = tpu.matmul %95, %97, %cst_29 {dimension_numbers = #tpu.dot_dimension_numbers<[1], [1], [0], [0], [0, 0, 1, 0], [], []>} : vector<64x16xbf16>, vector<64x16xbf16>, vector<64x64xf32> -> vector<64x64xf32>
    %cst_30 = arith.constant dense<0xFF800000> : vector<64xf32>
    %101 = vector.multi_reduction <maximumf>, %100, %cst_30 [1] : vector<64x64xf32> to vector<64xf32>
    %102 = vector.shape_cast %101 : vector<64xf32> to vector<64x1xf32>
    %103 = vector.broadcast %102 : vector<64x1xf32> to vector<64x64xf32>
    %104 = arith.subf %100, %103 : vector<64x64xf32>
    %105 = math.exp %104 : vector<64x64xf32>
    %cst_31 = arith.constant dense<0.000000e+00> : vector<64xf32>
    %106 = vector.multi_reduction <add>, %105, %cst_31 [1] : vector<64x64xf32> to vector<64xf32>
    %107 = vector.shape_cast %106 : vector<64xf32> to vector<64x1xf32>
    %108 = arith.truncf %105 : vector<64x64xf32> to vector<64x64xbf16>
    %cst_32 = arith.constant dense<0.000000e+00> : vector<64x16xf32>
    %109 = tpu.matmul %108, %99, %cst_32 {dimension_numbers = #tpu.dot_dimension_numbers<[1], [0], [0], [1], [0, 0, 1, 1], [], []>} : vector<64x64xbf16>, vector<64x16xbf16>, vector<64x16xf32> -> vector<64x16xf32>
    %110 = tpu.reciprocal %107 {approx = true} : vector<64x1xf32> -> vector<64x1xf32>
    %111 = vector.broadcast %110 : vector<64x1xf32> to vector<64x16xf32>
    %112 = arith.mulf %109, %111 : vector<64x16xf32>
    %113 = tpu.concatenate %49, %70, %91, %112 in 1 : vector<64x16xf32>, vector<64x16xf32>, vector<64x16xf32>, vector<64x16xf32> -> vector<64x64xf32>
    %114 = arith.truncf %113 : vector<64x64xf32> to vector<64x64xbf16>
    %c0_33 = arith.constant 0 : index
    %c0_34 = arith.constant 0 : index
    %115 = vector.load %arg5[%c0_33, %c0_34] : memref<64x64xbf16, #tpu.memory_space<vmem>>, vector<64x64xbf16>
    %cst_35 = arith.constant dense<0.000000e+00> : vector<64x64xf32>
    %116 = tpu.matmul %114, %115, %cst_35 {dimension_numbers = #tpu.dot_dimension_numbers<[1], [0], [0], [1], [0, 0, 1, 1], [], []>} : vector<64x64xbf16>, vector<64x64xbf16>, vector<64x64xf32> -> vector<64x64xf32>
    %c0_36 = arith.constant 0 : index
    %c0_37 = arith.constant 0 : index
    %117 = vector.load %arg6[%c0_36, %c0_37] : memref<1x64xf32, #tpu.memory_space<vmem>>, vector<1x64xf32>
    %118 = vector.broadcast %117 : vector<1x64xf32> to vector<64x64xf32>
    %119 = arith.addf %116, %118 : vector<64x64xf32>
    %120 = arith.addf %1, %119 : vector<64x64xf32>
    %c0_38 = arith.constant 0 : index
    %c0_39 = arith.constant 0 : index
    %c0_40 = arith.constant 0 : index
    %121 = vector.load %arg7[%c0_38, %c0_39, %c0_40] : memref<1x64x64xf32, #tpu.memory_space<vmem>>, vector<1x64x64xf32>
    %122 = vector.shape_cast %121 : vector<1x64x64xf32> to vector<64x64xf32>
    %123 = vector.shape_cast %120 : vector<64x64xf32> to vector<1x64x64xf32>
    tpu.vector_store %arg7[%c0_38, %c0_39, %c0_40], %123 {strides = array<i32>} : memref<1x64x64xf32, #tpu.memory_space<vmem>>, vector<1x64x64xf32>,
    return
  }
  func.func @transform_0(%arg0: i32) -> (i32, i32, i32) {
    %c0_i32 = arith.constant 0 : i32
    %c0_i32_0 = arith.constant 0 : i32
    %c0_i32_1 = arith.constant 0 : i32
    return %arg0, %c0_i32, %c0_i32_0 : i32, i32, i32
  }
  func.func @transform_1(%arg0: i32) -> (i32, i32) {
    %c0_i32 = arith.constant 0 : i32
    %c0_i32_0 = arith.constant 0 : i32
    %c0_i32_1 = arith.constant 0 : i32
    return %c0_i32, %c0_i32_0 : i32, i32
  }
  func.func @transform_2(%arg0: i32) -> (i32, i32) {
    %c0_i32 = arith.constant 0 : i32
    %c0_i32_0 = arith.constant 0 : i32
    %c0_i32_1 = arith.constant 0 : i32
    return %c0_i32, %c0_i32_0 : i32, i32
  }
  func.func @transform_3(%arg0: i32) -> (i32, i32) {
    %c0_i32 = arith.constant 0 : i32
    %c0_i32_0 = arith.constant 0 : i32
    %c0_i32_1 = arith.constant 0 : i32
    return %c0_i32, %c0_i32_0 : i32, i32
  }
  func.func @transform_4(%arg0: i32) -> (i32, i32) {
    %c0_i32 = arith.constant 0 : i32
    %c0_i32_0 = arith.constant 0 : i32
    %c0_i32_1 = arith.constant 0 : i32
    return %c0_i32, %c0_i32_0 : i32, i32
  }
  func.func @transform_5(%arg0: i32) -> (i32, i32) {
    %c0_i32 = arith.constant 0 : i32
    %c0_i32_0 = arith.constant 0 : i32
    %c0_i32_1 = arith.constant 0 : i32
    return %c0_i32, %c0_i32_0 : i32, i32
  }
  func.func @transform_6(%arg0: i32) -> (i32, i32, i32) {
    %c0_i32 = arith.constant 0 : i32
    %c0_i32_0 = arith.constant 0 : i32
    %c0_i32_1 = arith.constant 0 : i32
    return %arg0, %c0_i32, %c0_i32_0 : i32, i32, i32
  }
}

module attributes {stable_mosaic.version = 11 : i64} {
  func.func @_mlp_block_kernel(%arg0: i32, %arg1: memref<128x64xf32, #tpu.memory_space<vmem>>, %arg2: memref<1x64xf32, #tpu.memory_space<vmem>>, %arg3: memref<1x64xf32, #tpu.memory_space<vmem>>, %arg4: memref<64x128xbf16, #tpu.memory_space<vmem>>, %arg5: memref<1x128xf32, #tpu.memory_space<vmem>>, %arg6: memref<128x64xbf16, #tpu.memory_space<vmem>>, %arg7: memref<1x64xf32, #tpu.memory_space<vmem>>, %arg8: memref<128x64xf32, #tpu.memory_space<vmem>>) attributes {dimension_semantics = [#tpu.dimension_semantics<parallel>], iteration_bounds = array<i64: 1>, scalar_prefetch = 0 : i64, scratch_operands = 0 : i64, tpu.core_type = #tpu.core_type<tc>, window_params = [{transform_indices = @transform_0, window_bounds = array<i64: 128, 64>}, {pipeline_mode = #tpu.pipeline_mode<synchronous>, transform_indices = @transform_1, window_bounds = array<i64: 1, 64>}, {pipeline_mode = #tpu.pipeline_mode<synchronous>, transform_indices = @transform_2, window_bounds = array<i64: 1, 64>}, {pipeline_mode = #tpu.pipeline_mode<synchronous>, transform_indices = @transform_3, window_bounds = array<i64: 64, 128>}, {pipeline_mode = #tpu.pipeline_mode<synchronous>, transform_indices = @transform_4, window_bounds = array<i64: 1, 128>}, {pipeline_mode = #tpu.pipeline_mode<synchronous>, transform_indices = @transform_5, window_bounds = array<i64: 128, 64>}, {pipeline_mode = #tpu.pipeline_mode<synchronous>, transform_indices = @transform_6, window_bounds = array<i64: 1, 64>}, {transform_indices = @transform_7, window_bounds = array<i64: 128, 64>}]} {
    %c0 = arith.constant 0 : index
    %c0_0 = arith.constant 0 : index
    %0 = vector.load %arg1[%c0, %c0_0] : memref<128x64xf32, #tpu.memory_space<vmem>>, vector<128x64xf32>
    %c0_1 = arith.constant 0 : index
    %c0_2 = arith.constant 0 : index
    %1 = vector.load %arg2[%c0_1, %c0_2] : memref<1x64xf32, #tpu.memory_space<vmem>>, vector<1x64xf32>
    %c0_3 = arith.constant 0 : index
    %c0_4 = arith.constant 0 : index
    %2 = vector.load %arg3[%c0_3, %c0_4] : memref<1x64xf32, #tpu.memory_space<vmem>>, vector<1x64xf32>
    %cst = arith.constant dense<0.000000e+00> : vector<128xf32>
    %3 = vector.multi_reduction <add>, %0, %cst [1] : vector<128x64xf32> to vector<128xf32>
    %4 = vector.shape_cast %3 : vector<128xf32> to vector<128x1xf32>
    %cst_5 = arith.constant 6.400000e+01 : f32
    %5 = vector.broadcast %cst_5 : f32 to vector<128x1xf32>
    %6 = arith.divf %4, %5 : vector<128x1xf32>
    %7 = vector.broadcast %6 : vector<128x1xf32> to vector<128x64xf32>
    %8 = arith.subf %0, %7 : vector<128x64xf32>
    %9 = arith.mulf %8, %8 : vector<128x64xf32>
    %cst_6 = arith.constant dense<0.000000e+00> : vector<128xf32>
    %10 = vector.multi_reduction <add>, %9, %cst_6 [1] : vector<128x64xf32> to vector<128xf32>
    %11 = vector.shape_cast %10 : vector<128xf32> to vector<128x1xf32>
    %cst_7 = arith.constant 6.400000e+01 : f32
    %12 = vector.broadcast %cst_7 : f32 to vector<128x1xf32>
    %13 = arith.divf %11, %12 : vector<128x1xf32>
    %14 = vector.broadcast %6 : vector<128x1xf32> to vector<128x64xf32>
    %15 = arith.subf %0, %14 : vector<128x64xf32>
    %cst_8 = arith.constant 9.99999974E-6 : f32
    %16 = vector.broadcast %cst_8 : f32 to vector<128x1xf32>
    %17 = arith.addf %13, %16 : vector<128x1xf32>
    %18 = math.rsqrt %17 : vector<128x1xf32>
    %19 = vector.broadcast %18 : vector<128x1xf32> to vector<128x64xf32>
    %20 = arith.mulf %15, %19 : vector<128x64xf32>
    %21 = vector.broadcast %1 : vector<1x64xf32> to vector<128x64xf32>
    %22 = arith.mulf %20, %21 : vector<128x64xf32>
    %23 = vector.broadcast %2 : vector<1x64xf32> to vector<128x64xf32>
    %24 = arith.addf %22, %23 : vector<128x64xf32>
    %25 = arith.truncf %24 : vector<128x64xf32> to vector<128x64xbf16>
    %c0_9 = arith.constant 0 : index
    %c0_10 = arith.constant 0 : index
    %26 = vector.load %arg4[%c0_9, %c0_10] : memref<64x128xbf16, #tpu.memory_space<vmem>>, vector<64x128xbf16>
    %cst_11 = arith.constant dense<0.000000e+00> : vector<128x128xf32>
    %27 = tpu.matmul %25, %26, %cst_11 {dimension_numbers = #tpu.dot_dimension_numbers<[1], [0], [0], [1], [0, 0, 1, 1], [], []>} : vector<128x64xbf16>, vector<64x128xbf16>, vector<128x128xf32> -> vector<128x128xf32>
    %c0_12 = arith.constant 0 : index
    %c0_13 = arith.constant 0 : index
    %28 = vector.load %arg5[%c0_12, %c0_13] : memref<1x128xf32, #tpu.memory_space<vmem>>, vector<1x128xf32>
    %29 = vector.broadcast %28 : vector<1x128xf32> to vector<128x128xf32>
    %30 = arith.addf %27, %29 : vector<128x128xf32>
    %cst_14 = arith.constant 5.000000e-01 : f32
    %31 = vector.broadcast %cst_14 : f32 to vector<128x128xf32>
    %32 = arith.mulf %31, %30 : vector<128x128xf32>
    %cst_15 = arith.constant 0.707106769 : f32
    %33 = vector.broadcast %cst_15 : f32 to vector<128x128xf32>
    %34 = arith.mulf %30, %33 : vector<128x128xf32>
    %35 = math.erf %34 : vector<128x128xf32>
    %cst_16 = arith.constant 1.000000e+00 : f32
    %36 = vector.broadcast %cst_16 : f32 to vector<128x128xf32>
    %37 = arith.addf %36, %35 : vector<128x128xf32>
    %38 = arith.mulf %32, %37 : vector<128x128xf32>
    %39 = arith.truncf %38 : vector<128x128xf32> to vector<128x128xbf16>
    %c0_17 = arith.constant 0 : index
    %c0_18 = arith.constant 0 : index
    %40 = vector.load %arg6[%c0_17, %c0_18] : memref<128x64xbf16, #tpu.memory_space<vmem>>, vector<128x64xbf16>
    %cst_19 = arith.constant dense<0.000000e+00> : vector<128x64xf32>
    %41 = tpu.matmul %39, %40, %cst_19 {dimension_numbers = #tpu.dot_dimension_numbers<[1], [0], [0], [1], [0, 0, 1, 1], [], []>} : vector<128x128xbf16>, vector<128x64xbf16>, vector<128x64xf32> -> vector<128x64xf32>
    %c0_20 = arith.constant 0 : index
    %c0_21 = arith.constant 0 : index
    %42 = vector.load %arg7[%c0_20, %c0_21] : memref<1x64xf32, #tpu.memory_space<vmem>>, vector<1x64xf32>
    %43 = vector.broadcast %42 : vector<1x64xf32> to vector<128x64xf32>
    %44 = arith.addf %41, %43 : vector<128x64xf32>
    %45 = arith.addf %0, %44 : vector<128x64xf32>
    %c0_22 = arith.constant 0 : index
    %c0_23 = arith.constant 0 : index
    %46 = vector.load %arg8[%c0_22, %c0_23] : memref<128x64xf32, #tpu.memory_space<vmem>>, vector<128x64xf32>
    tpu.vector_store %arg8[%c0_22, %c0_23], %45 {strides = array<i32>} : memref<128x64xf32, #tpu.memory_space<vmem>>, vector<128x64xf32>,
    return
  }
  func.func @transform_0(%arg0: i32) -> (i32, i32) {
    %c0_i32 = arith.constant 0 : i32
    %c0_i32_0 = arith.constant 0 : i32
    return %arg0, %c0_i32 : i32, i32
  }
  func.func @transform_1(%arg0: i32) -> (i32, i32) {
    %c0_i32 = arith.constant 0 : i32
    %c0_i32_0 = arith.constant 0 : i32
    %c0_i32_1 = arith.constant 0 : i32
    return %c0_i32, %c0_i32_0 : i32, i32
  }
  func.func @transform_2(%arg0: i32) -> (i32, i32) {
    %c0_i32 = arith.constant 0 : i32
    %c0_i32_0 = arith.constant 0 : i32
    %c0_i32_1 = arith.constant 0 : i32
    return %c0_i32, %c0_i32_0 : i32, i32
  }
  func.func @transform_3(%arg0: i32) -> (i32, i32) {
    %c0_i32 = arith.constant 0 : i32
    %c0_i32_0 = arith.constant 0 : i32
    %c0_i32_1 = arith.constant 0 : i32
    return %c0_i32, %c0_i32_0 : i32, i32
  }
  func.func @transform_4(%arg0: i32) -> (i32, i32) {
    %c0_i32 = arith.constant 0 : i32
    %c0_i32_0 = arith.constant 0 : i32
    %c0_i32_1 = arith.constant 0 : i32
    return %c0_i32, %c0_i32_0 : i32, i32
  }
  func.func @transform_5(%arg0: i32) -> (i32, i32) {
    %c0_i32 = arith.constant 0 : i32
    %c0_i32_0 = arith.constant 0 : i32
    %c0_i32_1 = arith.constant 0 : i32
    return %c0_i32, %c0_i32_0 : i32, i32
  }
  func.func @transform_6(%arg0: i32) -> (i32, i32) {
    %c0_i32 = arith.constant 0 : i32
    %c0_i32_0 = arith.constant 0 : i32
    %c0_i32_1 = arith.constant 0 : i32
    return %c0_i32, %c0_i32_0 : i32, i32
  }
  func.func @transform_7(%arg0: i32) -> (i32, i32) {
    %c0_i32 = arith.constant 0 : i32
    %c0_i32_0 = arith.constant 0 : i32
    return %arg0, %c0_i32 : i32, i32
  }
}

module attributes {stable_mosaic.version = 11 : i64} {
  func.func @_attn_block_kernel(%arg0: i32, %arg1: memref<1x64x64xf32, #tpu.memory_space<vmem>>, %arg2: memref<1x64xf32, #tpu.memory_space<vmem>>, %arg3: memref<1x64xf32, #tpu.memory_space<vmem>>, %arg4: memref<64x192xbf16, #tpu.memory_space<vmem>>, %arg5: memref<64x64xbf16, #tpu.memory_space<vmem>>, %arg6: memref<1x64xf32, #tpu.memory_space<vmem>>, %arg7: memref<1x64x64xf32, #tpu.memory_space<vmem>>) attributes {dimension_semantics = [#tpu.dimension_semantics<parallel>], iteration_bounds = array<i64: 2>, scalar_prefetch = 0 : i64, scratch_operands = 0 : i64, tpu.core_type = #tpu.core_type<tc>, window_params = [{transform_indices = @transform_0, window_bounds = array<i64: 1, 64, 64>}, {pipeline_mode = #tpu.pipeline_mode<synchronous>, transform_indices = @transform_1, window_bounds = array<i64: 1, 64>}, {pipeline_mode = #tpu.pipeline_mode<synchronous>, transform_indices = @transform_2, window_bounds = array<i64: 1, 64>}, {pipeline_mode = #tpu.pipeline_mode<synchronous>, transform_indices = @transform_3, window_bounds = array<i64: 64, 192>}, {pipeline_mode = #tpu.pipeline_mode<synchronous>, transform_indices = @transform_4, window_bounds = array<i64: 64, 64>}, {pipeline_mode = #tpu.pipeline_mode<synchronous>, transform_indices = @transform_5, window_bounds = array<i64: 1, 64>}, {transform_indices = @transform_6, window_bounds = array<i64: 1, 64, 64>}]} {
    %c0 = arith.constant 0 : index
    %c0_0 = arith.constant 0 : index
    %c0_1 = arith.constant 0 : index
    %0 = vector.load %arg1[%c0, %c0_0, %c0_1] : memref<1x64x64xf32, #tpu.memory_space<vmem>>, vector<1x64x64xf32>
    %1 = vector.shape_cast %0 : vector<1x64x64xf32> to vector<64x64xf32>
    %c0_2 = arith.constant 0 : index
    %c0_3 = arith.constant 0 : index
    %2 = vector.load %arg2[%c0_2, %c0_3] : memref<1x64xf32, #tpu.memory_space<vmem>>, vector<1x64xf32>
    %c0_4 = arith.constant 0 : index
    %c0_5 = arith.constant 0 : index
    %3 = vector.load %arg3[%c0_4, %c0_5] : memref<1x64xf32, #tpu.memory_space<vmem>>, vector<1x64xf32>
    %cst = arith.constant dense<0.000000e+00> : vector<64xf32>
    %4 = vector.multi_reduction <add>, %1, %cst [1] : vector<64x64xf32> to vector<64xf32>
    %5 = vector.shape_cast %4 : vector<64xf32> to vector<64x1xf32>
    %cst_6 = arith.constant 6.400000e+01 : f32
    %6 = vector.broadcast %cst_6 : f32 to vector<64x1xf32>
    %7 = arith.divf %5, %6 : vector<64x1xf32>
    %8 = vector.broadcast %7 : vector<64x1xf32> to vector<64x64xf32>
    %9 = arith.subf %1, %8 : vector<64x64xf32>
    %10 = arith.mulf %9, %9 : vector<64x64xf32>
    %cst_7 = arith.constant dense<0.000000e+00> : vector<64xf32>
    %11 = vector.multi_reduction <add>, %10, %cst_7 [1] : vector<64x64xf32> to vector<64xf32>
    %12 = vector.shape_cast %11 : vector<64xf32> to vector<64x1xf32>
    %cst_8 = arith.constant 6.400000e+01 : f32
    %13 = vector.broadcast %cst_8 : f32 to vector<64x1xf32>
    %14 = arith.divf %12, %13 : vector<64x1xf32>
    %15 = vector.broadcast %7 : vector<64x1xf32> to vector<64x64xf32>
    %16 = arith.subf %1, %15 : vector<64x64xf32>
    %cst_9 = arith.constant 9.99999974E-6 : f32
    %17 = vector.broadcast %cst_9 : f32 to vector<64x1xf32>
    %18 = arith.addf %14, %17 : vector<64x1xf32>
    %19 = math.rsqrt %18 : vector<64x1xf32>
    %20 = vector.broadcast %19 : vector<64x1xf32> to vector<64x64xf32>
    %21 = arith.mulf %16, %20 : vector<64x64xf32>
    %22 = vector.broadcast %2 : vector<1x64xf32> to vector<64x64xf32>
    %23 = arith.mulf %21, %22 : vector<64x64xf32>
    %24 = vector.broadcast %3 : vector<1x64xf32> to vector<64x64xf32>
    %25 = arith.addf %23, %24 : vector<64x64xf32>
    %26 = arith.truncf %25 : vector<64x64xf32> to vector<64x64xbf16>
    %c0_10 = arith.constant 0 : index
    %c0_11 = arith.constant 0 : index
    %27 = vector.load %arg4[%c0_10, %c0_11] : memref<64x192xbf16, #tpu.memory_space<vmem>>, vector<64x192xbf16>
    %cst_12 = arith.constant dense<0.000000e+00> : vector<64x192xf32>
    %28 = tpu.matmul %26, %27, %cst_12 {dimension_numbers = #tpu.dot_dimension_numbers<[1], [0], [0], [1], [0, 0, 1, 1], [], []>} : vector<64x64xbf16>, vector<64x192xbf16>, vector<64x192xf32> -> vector<64x192xf32>
    %29 = vector.extract_strided_slice %28 {offsets = [0, 0], sizes = [64, 16], strides = [1, 1]} : vector<64x192xf32> to vector<64x16xf32>
    %cst_13 = arith.constant 2.500000e-01 : f32
    %30 = vector.broadcast %cst_13 : f32 to vector<64x16xf32>
    %31 = arith.mulf %29, %30 : vector<64x16xf32>
    %32 = arith.truncf %31 : vector<64x16xf32> to vector<64x16xbf16>
    %33 = vector.extract_strided_slice %28 {offsets = [0, 64], sizes = [64, 16], strides = [1, 1]} : vector<64x192xf32> to vector<64x16xf32>
    %34 = arith.truncf %33 : vector<64x16xf32> to vector<64x16xbf16>
    %35 = vector.extract_strided_slice %28 {offsets = [0, 128], sizes = [64, 16], strides = [1, 1]} : vector<64x192xf32> to vector<64x16xf32>
    %36 = arith.truncf %35 : vector<64x16xf32> to vector<64x16xbf16>
    %cst_14 = arith.constant dense<0.000000e+00> : vector<64x64xf32>
    %37 = tpu.matmul %32, %34, %cst_14 {dimension_numbers = #tpu.dot_dimension_numbers<[1], [1], [0], [0], [0, 0, 1, 0], [], []>} : vector<64x16xbf16>, vector<64x16xbf16>, vector<64x64xf32> -> vector<64x64xf32>
    %cst_15 = arith.constant dense<0xFF800000> : vector<64xf32>
    %38 = vector.multi_reduction <maximumf>, %37, %cst_15 [1] : vector<64x64xf32> to vector<64xf32>
    %39 = vector.shape_cast %38 : vector<64xf32> to vector<64x1xf32>
    %40 = vector.broadcast %39 : vector<64x1xf32> to vector<64x64xf32>
    %41 = arith.subf %37, %40 : vector<64x64xf32>
    %42 = math.exp %41 : vector<64x64xf32>
    %cst_16 = arith.constant dense<0.000000e+00> : vector<64xf32>
    %43 = vector.multi_reduction <add>, %42, %cst_16 [1] : vector<64x64xf32> to vector<64xf32>
    %44 = vector.shape_cast %43 : vector<64xf32> to vector<64x1xf32>
    %45 = arith.truncf %42 : vector<64x64xf32> to vector<64x64xbf16>
    %cst_17 = arith.constant dense<0.000000e+00> : vector<64x16xf32>
    %46 = tpu.matmul %45, %36, %cst_17 {dimension_numbers = #tpu.dot_dimension_numbers<[1], [0], [0], [1], [0, 0, 1, 1], [], []>} : vector<64x64xbf16>, vector<64x16xbf16>, vector<64x16xf32> -> vector<64x16xf32>
    %47 = tpu.reciprocal %44 {approx = true} : vector<64x1xf32> -> vector<64x1xf32>
    %48 = vector.broadcast %47 : vector<64x1xf32> to vector<64x16xf32>
    %49 = arith.mulf %46, %48 : vector<64x16xf32>
    %50 = vector.extract_strided_slice %28 {offsets = [0, 16], sizes = [64, 16], strides = [1, 1]} : vector<64x192xf32> to vector<64x16xf32>
    %cst_18 = arith.constant 2.500000e-01 : f32
    %51 = vector.broadcast %cst_18 : f32 to vector<64x16xf32>
    %52 = arith.mulf %50, %51 : vector<64x16xf32>
    %53 = arith.truncf %52 : vector<64x16xf32> to vector<64x16xbf16>
    %54 = vector.extract_strided_slice %28 {offsets = [0, 80], sizes = [64, 16], strides = [1, 1]} : vector<64x192xf32> to vector<64x16xf32>
    %55 = arith.truncf %54 : vector<64x16xf32> to vector<64x16xbf16>
    %56 = vector.extract_strided_slice %28 {offsets = [0, 144], sizes = [64, 16], strides = [1, 1]} : vector<64x192xf32> to vector<64x16xf32>
    %57 = arith.truncf %56 : vector<64x16xf32> to vector<64x16xbf16>
    %cst_19 = arith.constant dense<0.000000e+00> : vector<64x64xf32>
    %58 = tpu.matmul %53, %55, %cst_19 {dimension_numbers = #tpu.dot_dimension_numbers<[1], [1], [0], [0], [0, 0, 1, 0], [], []>} : vector<64x16xbf16>, vector<64x16xbf16>, vector<64x64xf32> -> vector<64x64xf32>
    %cst_20 = arith.constant dense<0xFF800000> : vector<64xf32>
    %59 = vector.multi_reduction <maximumf>, %58, %cst_20 [1] : vector<64x64xf32> to vector<64xf32>
    %60 = vector.shape_cast %59 : vector<64xf32> to vector<64x1xf32>
    %61 = vector.broadcast %60 : vector<64x1xf32> to vector<64x64xf32>
    %62 = arith.subf %58, %61 : vector<64x64xf32>
    %63 = math.exp %62 : vector<64x64xf32>
    %cst_21 = arith.constant dense<0.000000e+00> : vector<64xf32>
    %64 = vector.multi_reduction <add>, %63, %cst_21 [1] : vector<64x64xf32> to vector<64xf32>
    %65 = vector.shape_cast %64 : vector<64xf32> to vector<64x1xf32>
    %66 = arith.truncf %63 : vector<64x64xf32> to vector<64x64xbf16>
    %cst_22 = arith.constant dense<0.000000e+00> : vector<64x16xf32>
    %67 = tpu.matmul %66, %57, %cst_22 {dimension_numbers = #tpu.dot_dimension_numbers<[1], [0], [0], [1], [0, 0, 1, 1], [], []>} : vector<64x64xbf16>, vector<64x16xbf16>, vector<64x16xf32> -> vector<64x16xf32>
    %68 = tpu.reciprocal %65 {approx = true} : vector<64x1xf32> -> vector<64x1xf32>
    %69 = vector.broadcast %68 : vector<64x1xf32> to vector<64x16xf32>
    %70 = arith.mulf %67, %69 : vector<64x16xf32>
    %71 = vector.extract_strided_slice %28 {offsets = [0, 32], sizes = [64, 16], strides = [1, 1]} : vector<64x192xf32> to vector<64x16xf32>
    %cst_23 = arith.constant 2.500000e-01 : f32
    %72 = vector.broadcast %cst_23 : f32 to vector<64x16xf32>
    %73 = arith.mulf %71, %72 : vector<64x16xf32>
    %74 = arith.truncf %73 : vector<64x16xf32> to vector<64x16xbf16>
    %75 = vector.extract_strided_slice %28 {offsets = [0, 96], sizes = [64, 16], strides = [1, 1]} : vector<64x192xf32> to vector<64x16xf32>
    %76 = arith.truncf %75 : vector<64x16xf32> to vector<64x16xbf16>
    %77 = vector.extract_strided_slice %28 {offsets = [0, 160], sizes = [64, 16], strides = [1, 1]} : vector<64x192xf32> to vector<64x16xf32>
    %78 = arith.truncf %77 : vector<64x16xf32> to vector<64x16xbf16>
    %cst_24 = arith.constant dense<0.000000e+00> : vector<64x64xf32>
    %79 = tpu.matmul %74, %76, %cst_24 {dimension_numbers = #tpu.dot_dimension_numbers<[1], [1], [0], [0], [0, 0, 1, 0], [], []>} : vector<64x16xbf16>, vector<64x16xbf16>, vector<64x64xf32> -> vector<64x64xf32>
    %cst_25 = arith.constant dense<0xFF800000> : vector<64xf32>
    %80 = vector.multi_reduction <maximumf>, %79, %cst_25 [1] : vector<64x64xf32> to vector<64xf32>
    %81 = vector.shape_cast %80 : vector<64xf32> to vector<64x1xf32>
    %82 = vector.broadcast %81 : vector<64x1xf32> to vector<64x64xf32>
    %83 = arith.subf %79, %82 : vector<64x64xf32>
    %84 = math.exp %83 : vector<64x64xf32>
    %cst_26 = arith.constant dense<0.000000e+00> : vector<64xf32>
    %85 = vector.multi_reduction <add>, %84, %cst_26 [1] : vector<64x64xf32> to vector<64xf32>
    %86 = vector.shape_cast %85 : vector<64xf32> to vector<64x1xf32>
    %87 = arith.truncf %84 : vector<64x64xf32> to vector<64x64xbf16>
    %cst_27 = arith.constant dense<0.000000e+00> : vector<64x16xf32>
    %88 = tpu.matmul %87, %78, %cst_27 {dimension_numbers = #tpu.dot_dimension_numbers<[1], [0], [0], [1], [0, 0, 1, 1], [], []>} : vector<64x64xbf16>, vector<64x16xbf16>, vector<64x16xf32> -> vector<64x16xf32>
    %89 = tpu.reciprocal %86 {approx = true} : vector<64x1xf32> -> vector<64x1xf32>
    %90 = vector.broadcast %89 : vector<64x1xf32> to vector<64x16xf32>
    %91 = arith.mulf %88, %90 : vector<64x16xf32>
    %92 = vector.extract_strided_slice %28 {offsets = [0, 48], sizes = [64, 16], strides = [1, 1]} : vector<64x192xf32> to vector<64x16xf32>
    %cst_28 = arith.constant 2.500000e-01 : f32
    %93 = vector.broadcast %cst_28 : f32 to vector<64x16xf32>
    %94 = arith.mulf %92, %93 : vector<64x16xf32>
    %95 = arith.truncf %94 : vector<64x16xf32> to vector<64x16xbf16>
    %96 = vector.extract_strided_slice %28 {offsets = [0, 112], sizes = [64, 16], strides = [1, 1]} : vector<64x192xf32> to vector<64x16xf32>
    %97 = arith.truncf %96 : vector<64x16xf32> to vector<64x16xbf16>
    %98 = vector.extract_strided_slice %28 {offsets = [0, 176], sizes = [64, 16], strides = [1, 1]} : vector<64x192xf32> to vector<64x16xf32>
    %99 = arith.truncf %98 : vector<64x16xf32> to vector<64x16xbf16>
    %cst_29 = arith.constant dense<0.000000e+00> : vector<64x64xf32>
    %100 = tpu.matmul %95, %97, %cst_29 {dimension_numbers = #tpu.dot_dimension_numbers<[1], [1], [0], [0], [0, 0, 1, 0], [], []>} : vector<64x16xbf16>, vector<64x16xbf16>, vector<64x64xf32> -> vector<64x64xf32>
    %cst_30 = arith.constant dense<0xFF800000> : vector<64xf32>
    %101 = vector.multi_reduction <maximumf>, %100, %cst_30 [1] : vector<64x64xf32> to vector<64xf32>
    %102 = vector.shape_cast %101 : vector<64xf32> to vector<64x1xf32>
    %103 = vector.broadcast %102 : vector<64x1xf32> to vector<64x64xf32>
    %104 = arith.subf %100, %103 : vector<64x64xf32>
    %105 = math.exp %104 : vector<64x64xf32>
    %cst_31 = arith.constant dense<0.000000e+00> : vector<64xf32>
    %106 = vector.multi_reduction <add>, %105, %cst_31 [1] : vector<64x64xf32> to vector<64xf32>
    %107 = vector.shape_cast %106 : vector<64xf32> to vector<64x1xf32>
    %108 = arith.truncf %105 : vector<64x64xf32> to vector<64x64xbf16>
    %cst_32 = arith.constant dense<0.000000e+00> : vector<64x16xf32>
    %109 = tpu.matmul %108, %99, %cst_32 {dimension_numbers = #tpu.dot_dimension_numbers<[1], [0], [0], [1], [0, 0, 1, 1], [], []>} : vector<64x64xbf16>, vector<64x16xbf16>, vector<64x16xf32> -> vector<64x16xf32>
    %110 = tpu.reciprocal %107 {approx = true} : vector<64x1xf32> -> vector<64x1xf32>
    %111 = vector.broadcast %110 : vector<64x1xf32> to vector<64x16xf32>
    %112 = arith.mulf %109, %111 : vector<64x16xf32>
    %113 = tpu.concatenate %49, %70, %91, %112 in 1 : vector<64x16xf32>, vector<64x16xf32>, vector<64x16xf32>, vector<64x16xf32> -> vector<64x64xf32>
    %114 = arith.truncf %113 : vector<64x64xf32> to vector<64x64xbf16>
    %c0_33 = arith.constant 0 : index
    %c0_34 = arith.constant 0 : index
    %115 = vector.load %arg5[%c0_33, %c0_34] : memref<64x64xbf16, #tpu.memory_space<vmem>>, vector<64x64xbf16>
    %cst_35 = arith.constant dense<0.000000e+00> : vector<64x64xf32>
    %116 = tpu.matmul %114, %115, %cst_35 {dimension_numbers = #tpu.dot_dimension_numbers<[1], [0], [0], [1], [0, 0, 1, 1], [], []>} : vector<64x64xbf16>, vector<64x64xbf16>, vector<64x64xf32> -> vector<64x64xf32>
    %c0_36 = arith.constant 0 : index
    %c0_37 = arith.constant 0 : index
    %117 = vector.load %arg6[%c0_36, %c0_37] : memref<1x64xf32, #tpu.memory_space<vmem>>, vector<1x64xf32>
    %118 = vector.broadcast %117 : vector<1x64xf32> to vector<64x64xf32>
    %119 = arith.addf %116, %118 : vector<64x64xf32>
    %120 = arith.addf %1, %119 : vector<64x64xf32>
    %c0_38 = arith.constant 0 : index
    %c0_39 = arith.constant 0 : index
    %c0_40 = arith.constant 0 : index
    %121 = vector.load %arg7[%c0_38, %c0_39, %c0_40] : memref<1x64x64xf32, #tpu.memory_space<vmem>>, vector<1x64x64xf32>
    %122 = vector.shape_cast %121 : vector<1x64x64xf32> to vector<64x64xf32>
    %123 = vector.shape_cast %120 : vector<64x64xf32> to vector<1x64x64xf32>
    tpu.vector_store %arg7[%c0_38, %c0_39, %c0_40], %123 {strides = array<i32>} : memref<1x64x64xf32, #tpu.memory_space<vmem>>, vector<1x64x64xf32>,
    return
  }
  func.func @transform_0(%arg0: i32) -> (i32, i32, i32) {
    %c0_i32 = arith.constant 0 : i32
    %c0_i32_0 = arith.constant 0 : i32
    %c0_i32_1 = arith.constant 0 : i32
    return %arg0, %c0_i32, %c0_i32_0 : i32, i32, i32
  }
  func.func @transform_1(%arg0: i32) -> (i32, i32) {
    %c0_i32 = arith.constant 0 : i32
    %c0_i32_0 = arith.constant 0 : i32
    %c0_i32_1 = arith.constant 0 : i32
    return %c0_i32, %c0_i32_0 : i32, i32
  }
  func.func @transform_2(%arg0: i32) -> (i32, i32) {
    %c0_i32 = arith.constant 0 : i32
    %c0_i32_0 = arith.constant 0 : i32
    %c0_i32_1 = arith.constant 0 : i32
    return %c0_i32, %c0_i32_0 : i32, i32
  }
  func.func @transform_3(%arg0: i32) -> (i32, i32) {
    %c0_i32 = arith.constant 0 : i32
    %c0_i32_0 = arith.constant 0 : i32
    %c0_i32_1 = arith.constant 0 : i32
    return %c0_i32, %c0_i32_0 : i32, i32
  }
  func.func @transform_4(%arg0: i32) -> (i32, i32) {
    %c0_i32 = arith.constant 0 : i32
    %c0_i32_0 = arith.constant 0 : i32
    %c0_i32_1 = arith.constant 0 : i32
    return %c0_i32, %c0_i32_0 : i32, i32
  }
  func.func @transform_5(%arg0: i32) -> (i32, i32) {
    %c0_i32 = arith.constant 0 : i32
    %c0_i32_0 = arith.constant 0 : i32
    %c0_i32_1 = arith.constant 0 : i32
    return %c0_i32, %c0_i32_0 : i32, i32
  }
  func.func @transform_6(%arg0: i32) -> (i32, i32, i32) {
    %c0_i32 = arith.constant 0 : i32
    %c0_i32_0 = arith.constant 0 : i32
    %c0_i32_1 = arith.constant 0 : i32
    return %arg0, %c0_i32, %c0_i32_0 : i32, i32, i32
  }
}

module attributes {stable_mosaic.version = 11 : i64} {
  func.func @_mlp_block_kernel(%arg0: i32, %arg1: memref<128x64xf32, #tpu.memory_space<vmem>>, %arg2: memref<1x64xf32, #tpu.memory_space<vmem>>, %arg3: memref<1x64xf32, #tpu.memory_space<vmem>>, %arg4: memref<64x128xbf16, #tpu.memory_space<vmem>>, %arg5: memref<1x128xf32, #tpu.memory_space<vmem>>, %arg6: memref<128x64xbf16, #tpu.memory_space<vmem>>, %arg7: memref<1x64xf32, #tpu.memory_space<vmem>>, %arg8: memref<128x64xf32, #tpu.memory_space<vmem>>) attributes {dimension_semantics = [#tpu.dimension_semantics<parallel>], iteration_bounds = array<i64: 1>, scalar_prefetch = 0 : i64, scratch_operands = 0 : i64, tpu.core_type = #tpu.core_type<tc>, window_params = [{transform_indices = @transform_0, window_bounds = array<i64: 128, 64>}, {pipeline_mode = #tpu.pipeline_mode<synchronous>, transform_indices = @transform_1, window_bounds = array<i64: 1, 64>}, {pipeline_mode = #tpu.pipeline_mode<synchronous>, transform_indices = @transform_2, window_bounds = array<i64: 1, 64>}, {pipeline_mode = #tpu.pipeline_mode<synchronous>, transform_indices = @transform_3, window_bounds = array<i64: 64, 128>}, {pipeline_mode = #tpu.pipeline_mode<synchronous>, transform_indices = @transform_4, window_bounds = array<i64: 1, 128>}, {pipeline_mode = #tpu.pipeline_mode<synchronous>, transform_indices = @transform_5, window_bounds = array<i64: 128, 64>}, {pipeline_mode = #tpu.pipeline_mode<synchronous>, transform_indices = @transform_6, window_bounds = array<i64: 1, 64>}, {transform_indices = @transform_7, window_bounds = array<i64: 128, 64>}]} {
    %c0 = arith.constant 0 : index
    %c0_0 = arith.constant 0 : index
    %0 = vector.load %arg1[%c0, %c0_0] : memref<128x64xf32, #tpu.memory_space<vmem>>, vector<128x64xf32>
    %c0_1 = arith.constant 0 : index
    %c0_2 = arith.constant 0 : index
    %1 = vector.load %arg2[%c0_1, %c0_2] : memref<1x64xf32, #tpu.memory_space<vmem>>, vector<1x64xf32>
    %c0_3 = arith.constant 0 : index
    %c0_4 = arith.constant 0 : index
    %2 = vector.load %arg3[%c0_3, %c0_4] : memref<1x64xf32, #tpu.memory_space<vmem>>, vector<1x64xf32>
    %cst = arith.constant dense<0.000000e+00> : vector<128xf32>
    %3 = vector.multi_reduction <add>, %0, %cst [1] : vector<128x64xf32> to vector<128xf32>
    %4 = vector.shape_cast %3 : vector<128xf32> to vector<128x1xf32>
    %cst_5 = arith.constant 6.400000e+01 : f32
    %5 = vector.broadcast %cst_5 : f32 to vector<128x1xf32>
    %6 = arith.divf %4, %5 : vector<128x1xf32>
    %7 = vector.broadcast %6 : vector<128x1xf32> to vector<128x64xf32>
    %8 = arith.subf %0, %7 : vector<128x64xf32>
    %9 = arith.mulf %8, %8 : vector<128x64xf32>
    %cst_6 = arith.constant dense<0.000000e+00> : vector<128xf32>
    %10 = vector.multi_reduction <add>, %9, %cst_6 [1] : vector<128x64xf32> to vector<128xf32>
    %11 = vector.shape_cast %10 : vector<128xf32> to vector<128x1xf32>
    %cst_7 = arith.constant 6.400000e+01 : f32
    %12 = vector.broadcast %cst_7 : f32 to vector<128x1xf32>
    %13 = arith.divf %11, %12 : vector<128x1xf32>
    %14 = vector.broadcast %6 : vector<128x1xf32> to vector<128x64xf32>
    %15 = arith.subf %0, %14 : vector<128x64xf32>
    %cst_8 = arith.constant 9.99999974E-6 : f32
    %16 = vector.broadcast %cst_8 : f32 to vector<128x1xf32>
    %17 = arith.addf %13, %16 : vector<128x1xf32>
    %18 = math.rsqrt %17 : vector<128x1xf32>
    %19 = vector.broadcast %18 : vector<128x1xf32> to vector<128x64xf32>
    %20 = arith.mulf %15, %19 : vector<128x64xf32>
    %21 = vector.broadcast %1 : vector<1x64xf32> to vector<128x64xf32>
    %22 = arith.mulf %20, %21 : vector<128x64xf32>
    %23 = vector.broadcast %2 : vector<1x64xf32> to vector<128x64xf32>
    %24 = arith.addf %22, %23 : vector<128x64xf32>
    %25 = arith.truncf %24 : vector<128x64xf32> to vector<128x64xbf16>
    %c0_9 = arith.constant 0 : index
    %c0_10 = arith.constant 0 : index
    %26 = vector.load %arg4[%c0_9, %c0_10] : memref<64x128xbf16, #tpu.memory_space<vmem>>, vector<64x128xbf16>
    %cst_11 = arith.constant dense<0.000000e+00> : vector<128x128xf32>
    %27 = tpu.matmul %25, %26, %cst_11 {dimension_numbers = #tpu.dot_dimension_numbers<[1], [0], [0], [1], [0, 0, 1, 1], [], []>} : vector<128x64xbf16>, vector<64x128xbf16>, vector<128x128xf32> -> vector<128x128xf32>
    %c0_12 = arith.constant 0 : index
    %c0_13 = arith.constant 0 : index
    %28 = vector.load %arg5[%c0_12, %c0_13] : memref<1x128xf32, #tpu.memory_space<vmem>>, vector<1x128xf32>
    %29 = vector.broadcast %28 : vector<1x128xf32> to vector<128x128xf32>
    %30 = arith.addf %27, %29 : vector<128x128xf32>
    %cst_14 = arith.constant 5.000000e-01 : f32
    %31 = vector.broadcast %cst_14 : f32 to vector<128x128xf32>
    %32 = arith.mulf %31, %30 : vector<128x128xf32>
    %cst_15 = arith.constant 0.707106769 : f32
    %33 = vector.broadcast %cst_15 : f32 to vector<128x128xf32>
    %34 = arith.mulf %30, %33 : vector<128x128xf32>
    %35 = math.erf %34 : vector<128x128xf32>
    %cst_16 = arith.constant 1.000000e+00 : f32
    %36 = vector.broadcast %cst_16 : f32 to vector<128x128xf32>
    %37 = arith.addf %36, %35 : vector<128x128xf32>
    %38 = arith.mulf %32, %37 : vector<128x128xf32>
    %39 = arith.truncf %38 : vector<128x128xf32> to vector<128x128xbf16>
    %c0_17 = arith.constant 0 : index
    %c0_18 = arith.constant 0 : index
    %40 = vector.load %arg6[%c0_17, %c0_18] : memref<128x64xbf16, #tpu.memory_space<vmem>>, vector<128x64xbf16>
    %cst_19 = arith.constant dense<0.000000e+00> : vector<128x64xf32>
    %41 = tpu.matmul %39, %40, %cst_19 {dimension_numbers = #tpu.dot_dimension_numbers<[1], [0], [0], [1], [0, 0, 1, 1], [], []>} : vector<128x128xbf16>, vector<128x64xbf16>, vector<128x64xf32> -> vector<128x64xf32>
    %c0_20 = arith.constant 0 : index
    %c0_21 = arith.constant 0 : index
    %42 = vector.load %arg7[%c0_20, %c0_21] : memref<1x64xf32, #tpu.memory_space<vmem>>, vector<1x64xf32>
    %43 = vector.broadcast %42 : vector<1x64xf32> to vector<128x64xf32>
    %44 = arith.addf %41, %43 : vector<128x64xf32>
    %45 = arith.addf %0, %44 : vector<128x64xf32>
    %c0_22 = arith.constant 0 : index
    %c0_23 = arith.constant 0 : index
    %46 = vector.load %arg8[%c0_22, %c0_23] : memref<128x64xf32, #tpu.memory_space<vmem>>, vector<128x64xf32>
    tpu.vector_store %arg8[%c0_22, %c0_23], %45 {strides = array<i32>} : memref<128x64xf32, #tpu.memory_space<vmem>>, vector<128x64xf32>,
    return
  }
  func.func @transform_0(%arg0: i32) -> (i32, i32) {
    %c0_i32 = arith.constant 0 : i32
    %c0_i32_0 = arith.constant 0 : i32
    return %arg0, %c0_i32 : i32, i32
  }
  func.func @transform_1(%arg0: i32) -> (i32, i32) {
    %c0_i32 = arith.constant 0 : i32
    %c0_i32_0 = arith.constant 0 : i32
    %c0_i32_1 = arith.constant 0 : i32
    return %c0_i32, %c0_i32_0 : i32, i32
  }
  func.func @transform_2(%arg0: i32) -> (i32, i32) {
    %c0_i32 = arith.constant 0 : i32
    %c0_i32_0 = arith.constant 0 : i32
    %c0_i32_1 = arith.constant 0 : i32
    return %c0_i32, %c0_i32_0 : i32, i32
  }
  func.func @transform_3(%arg0: i32) -> (i32, i32) {
    %c0_i32 = arith.constant 0 : i32
    %c0_i32_0 = arith.constant 0 : i32
    %c0_i32_1 = arith.constant 0 : i32
    return %c0_i32, %c0_i32_0 : i32, i32
  }
  func.func @transform_4(%arg0: i32) -> (i32, i32) {
    %c0_i32 = arith.constant 0 : i32
    %c0_i32_0 = arith.constant 0 : i32
    %c0_i32_1 = arith.constant 0 : i32
    return %c0_i32, %c0_i32_0 : i32, i32
  }
  func.func @transform_5(%arg0: i32) -> (i32, i32) {
    %c0_i32 = arith.constant 0 : i32
    %c0_i32_0 = arith.constant 0 : i32
    %c0_i32_1 = arith.constant 0 : i32
    return %c0_i32, %c0_i32_0 : i32, i32
  }
  func.func @transform_6(%arg0: i32) -> (i32, i32) {
    %c0_i32 = arith.constant 0 : i32
    %c0_i32_0 = arith.constant 0 : i32
    %c0_i32_1 = arith.constant 0 : i32
    return %c0_i32, %c0_i32_0 : i32, i32
  }
  func.func @transform_7(%arg0: i32) -> (i32, i32) {
    %c0_i32 = arith.constant 0 : i32
    %c0_i32_0 = arith.constant 0 : i32
    return %arg0, %c0_i32 : i32, i32
  }
}

</mosaic_0001>

<bundles_post_ra>
// kernel: transformer_forward.5
= control target key start
LH: loop header
LB: loop body
LE: loop exit
PB: predicated region body
PF: predicated region fallthrough
CT: control target
= control target key end

     0   :  { %vm45_vm0 = vcmask 523264   ;;  %s1479_s0 = inlined_call_operand.vmem [shape: f32[128,64], index: 0, kind: input, shape index: {}]   ;;  %s1480_s3 = inlined_call_operand.vmem [shape: bf16[64,128], index: 3, kind: input, shape index: {}]   ;;  %s1481_s5 = inlined_call_operand.vmem [shape: bf16[128,64], index: 5, kind: input, shape index: {}]   ;;  %s1482_s1 = inlined_call_operand.vmem [shape: f32[1,64], index: 1, kind: input, shape index: {}]   ;;  %s1483_s2 = inlined_call_operand.vmem [shape: f32[1,64], index: 2, kind: input, shape index: {}]   ;;  %s1484_s4 = inlined_call_operand.vmem [shape: f32[1,128], index: 4, kind: input, shape index: {}]   ;;  %s1485_s6 = inlined_call_operand.vmem [shape: f32[1,64], index: 6, kind: input, shape index: {}]   ;;  %s1486_s7 = inlined_call_operand.vmem [shape: f32[128,64], index: 7, kind: output, shape index: {}]  }
   0x1   :  { %v27_v0 = vld [vmem:[%s1479_s0] sm:$0xff]  ;;  %v29_v1 = vld [vmem:[%s1479_s0 + $0x10] sm:$0xff]  ;;  %v28_v2 = vld [vmem:[%s1479_s0 + $0x8] sm:$0xff] }
   0x2   :  { %v46_v3 = vsel %vm45_vm0, %v27_v0, 0.0  ;;  %v52_v4 = vsel %vm45_vm0, %v29_v1, 0.0  ;;  %v30_v5 = vld [vmem:[%s1479_s0 + $0x18] sm:$0xff]  ;;  %v49_v6 = vsel %vm45_vm0, %v28_v2, 0.0  ;;  %v31_v8 = vld [vmem:[%s1479_s0 + $0x20] sm:$0xff]  ;;  %v32_v9 = vld [vmem:[%s1479_s0 + $0x28] sm:$0xff] }
   0x3   :  { %47 = vadd.xlane.f32.xlu0 %v46_v3  ;;  %53 = vadd.xlane.f32.xlu1 %v52_v4  ;;  %v55_v7 = vsel %vm45_vm0, %v30_v5, 0.0  ;;  %v58_v10 = vsel %vm45_vm0, %v31_v8, 0.0  ;;  %v61_v11 = vsel %vm45_vm0, %v32_v9, 0.0  ;;  %v1042_v12 = vld [vmem:[%s1479_s0 + $0x30] sm:$0xff]  ;;  %v1047_v13 = vld [vmem:[%s1479_s0 + $0x38] sm:$0xff]  ;;  %v1056_v16 = vld [vmem:[%s1479_s0 + $0x40] sm:$0xff] }
   0x4   :  { %v64_v14 = vsel %vm45_vm0, %v1042_v12, 0.0  ;;  %v67_v15 = vsel %vm45_vm0, %v1047_v13, 0.0  ;;  %v1061_v17 = vld [vmem:[%s1479_s0 + $0x48] sm:$0xff]  ;;  %v70_v18 = vsel %vm45_vm0, %v1056_v16, 0.0  ;;  %v1070_v20 = vld [vmem:[%s1479_s0 + $0x50] sm:$0xff]  ;;  %v1075_v21 = vld [vmem:[%s1479_s0 + $0x58] sm:$0xff] }
   0x5   :  { %v73_v19 = vsel %vm45_vm0, %v1061_v17, 0.0  ;;  %v76_v22 = vsel %vm45_vm0, %v1070_v20, 0.0  ;;  %v79_v23 = vsel %vm45_vm0, %v1075_v21, 0.0  ;;  %v1084_v24 = vld [vmem:[%s1479_s0 + $0x60] sm:$0xff]  ;;  %v1089_v25 = vld [vmem:[%s1479_s0 + $0x68] sm:$0xff]  ;;  %v1098_v28 = vld [vmem:[%s1479_s0 + $0x70] sm:$0xff] }
   0x6   :  { %v82_v26 = vsel %vm45_vm0, %v1084_v24, 0.0  ;;  %v85_v27 = vsel %vm45_vm0, %v1089_v25, 0.0  ;;  %v1103_v29 = vld [vmem:[%s1479_s0 + $0x78] sm:$0xff]  ;;  %v88_v30 = vsel %vm45_vm0, %v1098_v28, 0.0 }
   0x7   :  { %50 = vadd.xlane.f32.xlu0 %v49_v6  ;;  %56 = vadd.xlane.f32.xlu1 %v55_v7  ;;  %v91_v31 = vsel %vm45_vm0, %v1103_v29, 0.0 }
   0xb   :  { %59 = vadd.xlane.f32.xlu0 %v58_v10  ;;  %62 = vadd.xlane.f32.xlu1 %v61_v11 }
   0xf   :  { %65 = vadd.xlane.f32.xlu0 %v64_v14  ;;  %68 = vadd.xlane.f32.xlu1 %v67_v15 }
  0x13   :  { %71 = vadd.xlane.f32.xlu0 %v70_v18  ;;  %74 = vadd.xlane.f32.xlu1 %v73_v19 }
  0x17   :  { %77 = vadd.xlane.f32.xlu0 %v76_v22  ;;  %80 = vadd.xlane.f32.xlu1 %v79_v23 }
  0x1b   :  { %83 = vadd.xlane.f32.xlu0 %v82_v26  ;;  %86 = vadd.xlane.f32.xlu1 %v85_v27 }
  0x1f   :  { %89 = vadd.xlane.f32.xlu0 %v88_v30  ;;  %92 = vadd.xlane.f32.xlu1 %v91_v31 }
  0x90   :  { %v48_v32 = vpop.xlane.xlu0 %47  ;;  %v54_v33 = vpop.xlane.xlu1 %53 }
  0x91   :  { %v95_v34 = vmul.f32 0.015625, %v48_v32  ;;  %v97_v35 = vmul.f32 0.015625, %v54_v33 }
  0x93   :  { %v1109_v36 = vsub.f32 %v27_v0, %v95_v34  ;;  %v1111_v37 = vsub.f32 %v29_v1, %v97_v35 }
  0x94   :  { %v51_v38 = vpop.xlane.xlu0 %50  ;;  %v57_v39 = vpop.xlane.xlu1 %56 }
  0x95   :  { %v96_v40 = vmul.f32 0.015625, %v51_v38  ;;  %v98_v41 = vmul.f32 0.015625, %v57_v39  ;;  %v127_v42 = vmul.f32 %v1109_v36, %v1109_v36  ;;  %v129_v43 = vmul.f32 %v1111_v37, %v1111_v37 }
  0x97   :  { %v1117_v44 = vsub.f32 %v28_v2, %v96_v40  ;;  %v1119_v45 = vsub.f32 %v30_v5, %v98_v41  ;;  %v143_v46 = vsel %vm45_vm0, %v127_v42, 0.0  ;;  %v149_v49 = vsel %vm45_vm0, %v129_v43, 0.0 }
  0x98   :  { %144 = vadd.xlane.f32.xlu0 %v143_v46  ;;  %v60_v47 = vpop.xlane.xlu0 %59  ;;  %v63_v48 = vpop.xlane.xlu1 %62 }
  0x99   :  { %v99_v50 = vmul.f32 0.015625, %v60_v47  ;;  %v100_v51 = vmul.f32 0.015625, %v63_v48  ;;  %v128_v52 = vmul.f32 %v1117_v44, %v1117_v44  ;;  %v130_v53 = vmul.f32 %v1119_v45, %v1119_v45 }
  0x9b   :  { %v1127_v54 = vsub.f32 %v31_v8, %v99_v50  ;;  %v1129_v55 = vsub.f32 %v32_v9, %v100_v51  ;;  %v146_v56 = vsel %vm45_vm0, %v128_v52, 0.0  ;;  %v152_v59 = vsel %vm45_vm0, %v130_v53, 0.0  ;;  %v884_v53 = vld [vmem:[%s1480_s3 + $0x8] sm:$0xff]  }
  0x9c   :  { %150 = vadd.xlane.f32.xlu0 %v149_v49  ;;  %147 = vadd.xlane.f32.xlu1 %v146_v56  ;;  %v66_v57 = vpop.xlane.xlu0 %65  ;;  %v69_v58 = vpop.xlane.xlu1 %68  ;;  %v885_v56 = vld [vmem:[%s1480_s3 + $0x10] sm:$0xff]  }
  0x9d   :  { %v101_v60 = vmul.f32 0.015625, %v66_v57  ;;  %v102_v61 = vmul.f32 0.015625, %v69_v58  ;;  %v131_v62 = vmul.f32 %v1127_v54, %v1127_v54  ;;  %v132_v63 = vmul.f32 %v1129_v55, %v1129_v55  ;;  %v886_v57 = vld [vmem:[%s1480_s3 + $0x18] sm:$0xff]   ;;  %v1214_v58 = vld [vmem:[%s1481_s5] sm:$0xff]  }
  0x9e   :  { %867 = vmatprep.subr.bf16.mxu1 %v1214_v58 }
  0x9f   :  { %v1138_v0 = vsub.f32 %v1042_v12, %v101_v60  ;;  %v1141_v1 = vsub.f32 %v1047_v13, %v102_v61  ;;  %v155_v2 = vsel %vm45_vm0, %v131_v62, 0.0  ;;  %v158_v5 = vsel %vm45_vm0, %v132_v63, 0.0  ;;  %875 = vmatpush3.bf16.msra.mxu1 %v1214_v58 }
  0xa0   :  { %153 = vadd.xlane.f32.xlu1 %v152_v59  ;;  %156 = vadd.xlane.f32.xlu0 %v155_v2  ;;  %v72_v3 = vpop.xlane.xlu0 %71  ;;  %v75_v4 = vpop.xlane.xlu1 %74  ;;  %v1219_v59 = vld [vmem:[%s1481_s5 + $0x8] sm:$0xff]  }
  0xa1   :  { %v103_v6 = vmul.f32 0.015625, %v72_v3  ;;  %v104_v7 = vmul.f32 0.015625, %v75_v4  ;;  %v133_v8 = vmul.f32 %v1138_v0, %v1138_v0  ;;  %v134_v9 = vmul.f32 %v1141_v1, %v1141_v1  ;;  %868 = vmatprep.subr.bf16.mxu1 %v1219_v59 }
  0xa3   :  { %v1150_v10 = vsub.f32 %v1056_v16, %v103_v6  ;;  %v1153_v11 = vsub.f32 %v1061_v17, %v104_v7  ;;  %v161_v12 = vsel %vm45_vm0, %v133_v8, 0.0  ;;  %v164_v15 = vsel %vm45_vm0, %v134_v9, 0.0  ;;  %876 = vmatpush3.bf16.msra.mxu1 %v1219_v59 }
  0xa4   :  { %159 = vadd.xlane.f32.xlu1 %v158_v5  ;;  %162 = vadd.xlane.f32.xlu0 %v161_v12  ;;  %v78_v13 = vpop.xlane.xlu0 %77  ;;  %v81_v14 = vpop.xlane.xlu1 %80 }
  0xa5   :  { %v105_v18 = vmul.f32 0.015625, %v78_v13  ;;  %v106_v19 = vmul.f32 0.015625, %v81_v14  ;;  %v135_v22 = vmul.f32 %v1150_v10, %v1150_v10  ;;  %v136_v16 = vmul.f32 %v1153_v11, %v1153_v11 }
  0xa7   :  { %v1162_v23 = vsub.f32 %v1070_v20, %v105_v18  ;;  %v1165_v17 = vsub.f32 %v1075_v21, %v106_v19  ;;  %v167_v26 = vsel %vm45_vm0, %v135_v22, 0.0  ;;  %v170_v31 = vsel %vm45_vm0, %v136_v16, 0.0 }
  0xa8   :  { %165 = vadd.xlane.f32.xlu1 %v164_v15  ;;  %168 = vadd.xlane.f32.xlu0 %v167_v26  ;;  %v84_v27 = vpop.xlane.xlu0 %83  ;;  %v87_v30 = vpop.xlane.xlu1 %86 }
  0xa9   :  { %v107_v32 = vmul.f32 0.015625, %v84_v27  ;;  %v108_v33 = vmul.f32 0.015625, %v87_v30  ;;  %v137_v34 = vmul.f32 %v1162_v23, %v1162_v23  ;;  %v138_v20 = vmul.f32 %v1165_v17, %v1165_v17 }
  0xab   :  { %v1174_v35 = vsub.f32 %v1084_v24, %v107_v32  ;;  %v1177_v21 = vsub.f32 %v1089_v25, %v108_v33  ;;  %v173_v38 = vsel %vm45_vm0, %v137_v34, 0.0  ;;  %v176_v41 = vsel %vm45_vm0, %v138_v20, 0.0  ;;  %v1230_v20 = vld [vmem:[%s1482_s1] ss:$0 sm:$0xff] }
  0xac   :  { %171 = vadd.xlane.f32.xlu1 %v170_v31  ;;  %174 = vadd.xlane.f32.xlu0 %v173_v38  ;;  %v90_v39 = vpop.xlane.xlu0 %89  ;;  %v93_v40 = vpop.xlane.xlu1 %92 }
  0xad   :  { %v109_v42 = vmul.f32 0.015625, %v90_v39  ;;  %v110_v43 = vmul.f32 0.015625, %v93_v40  ;;  %v139_v46 = vmul.f32 %v1174_v35, %v1174_v35  ;;  %v140_v24 = vmul.f32 %v1177_v21, %v1177_v21 }
  0xaf   :  { %v1186_v47 = vsub.f32 %v1098_v28, %v109_v42  ;;  %v1189_v25 = vsub.f32 %v1103_v29, %v110_v43  ;;  %v179_v48 = vsel %vm45_vm0, %v139_v46, 0.0  ;;  %v182_v49 = vsel %vm45_vm0, %v140_v24, 0.0  ;;  %v883_v29 = vld [vmem:[%s1480_s3] sm:$0xff]  }
  0xb0   :  { %177 = vadd.xlane.f32.xlu1 %v176_v41  ;;  %180 = vadd.xlane.f32.xlu0 %v179_v48 }
  0xb1   :  { %v141_v50 = vmul.f32 %v1186_v47, %v1186_v47  ;;  %v142_v51 = vmul.f32 %v1189_v25, %v1189_v25  ;;  %811 = vmatprep.subr.bf16.mxu0 %v883_v29 }
  0xb2   :  { %812 = vmatpush3.bf16.msra.mxu0 %v883_v29 }
  0xb3   :  { %v185_v52 = vsel %vm45_vm0, %v141_v50, 0.0  ;;  %v188_v28 = vsel %vm45_vm0, %v142_v51, 0.0  ;;  %813 = vmatprep.subr.bf16.mxu0 %v884_v53  ;;  %v1238_v50 = vld [vmem:[%s1483_s2] ss:$0 sm:$0xff] }
  0xb4   :  { %183 = vadd.xlane.f32.xlu1 %v182_v49  ;;  %186 = vadd.xlane.f32.xlu0 %v185_v52 }
  0xb6   :  { %814 = vmatpush3.bf16.msra.mxu0 %v884_v53 }
  0xb7   :  { %815 = vmatprep.subr.bf16.mxu0 %v885_v56 }
  0xb8   :  { %189 = vadd.xlane.f32.xlu1 %v188_v28 }
  0xba   :  { %816 = vmatpush3.bf16.msra.mxu0 %v885_v56 }
  0xbb   :  { %817 = vmatprep.subr.bf16.mxu0 %v886_v57 }
  0xbe   :  { %818 = vmatpush3.bf16.msra.mxu0 %v886_v57 }
  0xbf   :  { %835 = vmatprep.subr.bf16.mxu0 %v1214_v58 }
 0x125   :  { %v145_v60 = vpop.xlane.xlu0 %144 }
 0x126   :  { %v191_v61 = vmul.f32 0.015625, %v145_v60 }
 0x128   :  { %v207_v62 = vadd.f32 1e-05, %v191_v61 }
 0x129   :  { %v148_v63 = vpop.xlane.xlu1 %147  ;;  %v151_v2 = vpop.xlane.xlu0 %150 }
 0x12a   :  { %895 = vrsqrt.f32 %v207_v62  ;;  %v192_v3 = vmul.f32 0.015625, %v148_v63  ;;  %v193_v4 = vmul.f32 0.015625, %v151_v2 }
 0x12c   :  { %v208_v5 = vadd.f32 1e-05, %v192_v3  ;;  %v209_v6 = vadd.f32 1e-05, %v193_v4 }
 0x12d   :  { %v154_v7 = vpop.xlane.xlu1 %153  ;;  %v157_v8 = vpop.xlane.xlu0 %156 }
 0x12e   :  { %897 = vrsqrt.f32 %v208_v5  ;;  %v194_v9 = vmul.f32 0.015625, %v154_v7  ;;  %v195_v12 = vmul.f32 0.015625, %v157_v8 }
 0x12f   :  { %899 = vrsqrt.f32 %v209_v6 }
 0x130   :  { %v210_v13 = vadd.f32 1e-05, %v194_v9  ;;  %v211_v14 = vadd.f32 1e-05, %v195_v12 }
 0x131   :  { %v160_v15 = vpop.xlane.xlu1 %159  ;;  %v163_v18 = vpop.xlane.xlu0 %162 }
 0x132   :  { %901 = vrsqrt.f32 %v210_v13  ;;  %v196_v19 = vmul.f32 0.015625, %v160_v15  ;;  %v197_v22 = vmul.f32 0.015625, %v163_v18 }
 0x133   :  { %903 = vrsqrt.f32 %v211_v14 }
 0x134   :  { %v896_v16 = vpop.eup %895  ;;  %v212_v26 = vadd.f32 1e-05, %v196_v19  ;;  %v213_v27 = vadd.f32 1e-05, %v197_v22 }
 0x135   :  { %v166_v30 = vpop.xlane.xlu1 %165  ;;  %v169_v31 = vpop.xlane.xlu0 %168  ;;  %v239_v32 = vmul.f32 %v896_v16, %v1109_v36 }
 0x136   :  { %905 = vrsqrt.f32 %v212_v26  ;;  %v198_v33 = vmul.f32 0.015625, %v166_v30  ;;  %v199_v34 = vmul.f32 0.015625, %v169_v31 }
 0x137   :  { %907 = vrsqrt.f32 %v213_v27  ;;  %v261_v24 = vmul.f32 %v1230_v20, %v239_v32 }
 0x138   :  { %v898_v38 = vpop.eup %897  ;;  %v214_v39 = vadd.f32 1e-05, %v198_v33  ;;  %v215_v40 = vadd.f32 1e-05, %v199_v34 }
 0x139   :  { %v900_v41 = vpop.eup %899  ;;  %v172_v42 = vpop.xlane.xlu1 %171  ;;  %v240_v46 = vmul.f32 %v898_v38, %v1117_v44 }
 0x13a   :  { %v175_v43 = vpop.xlane.xlu0 %174  ;;  %v241_v36 = vmul.f32 %v900_v41, %v1111_v37  ;;  %909 = vrsqrt.f32 %v214_v39  ;;  %v200_v48 = vmul.f32 0.015625, %v172_v42  ;;  %v283_v37 = vadd.f32 %v1238_v50, %v261_v24 }
 0x13b   :  { %v201_v49 = vmul.f32 0.015625, %v175_v43  ;;  %911 = vrsqrt.f32 %v215_v40  ;;  %v262_v51 = vmul.f32 %v1230_v20, %v240_v46 }
 0x13c   :  { %v902_v52 = vpop.eup %901  ;;  %v216_v28 = vadd.f32 1e-05, %v200_v48  ;;  %v263_v61 = vmul.f32 %v1230_v20, %v241_v36 }
 0x13d   :  { %v217_v29 = vadd.f32 1e-05, %v201_v49  ;;  %v904_v53 = vpop.eup %903  ;;  %v242_v44 = vmul.f32 %v902_v52, %v1119_v45  ;;  %v178_v56 = vpop.xlane.xlu1 %177  ;;  %v284_v60 = vadd.f32 %v1238_v50, %v262_v51 }
 0x13e   :  { %v181_v57 = vpop.xlane.xlu0 %180  ;;  %v243_v62 = vmul.f32 %v904_v53, %v1127_v54  ;;  %913 = vrsqrt.f32 %v216_v28  ;;  %v202_v63 = vmul.f32 0.015625, %v178_v56  ;;  %v285_v13 = vadd.f32 %v1238_v50, %v263_v61 }
 0x13f   :  { %v203_v2 = vmul.f32 0.015625, %v181_v57  ;;  %915 = vrsqrt.f32 %v217_v29  ;;  %v299_v3 = vpack.c.bf16 %v284_v60, %v283_v37  ;;  %v264_v4 = vmul.f32 %v1230_v20, %v242_v44 }
 0x140   :  { %v906_v5 = vpop.eup %905  ;;  %v218_v6 = vadd.f32 1e-05, %v202_v63  ;;  %v265_v14 = vmul.f32 %v1230_v20, %v243_v62 }
 0x141   :  { %v219_v45 = vadd.f32 1e-05, %v203_v2  ;;  %v908_v7 = vpop.eup %907  ;;  %v244_v8 = vmul.f32 %v906_v5, %v1129_v55  ;;  %v184_v9 = vpop.xlane.xlu1 %183  ;;  %819 = vmatprep.mubr.msk.bf16.mxu0 %vm45_vm0, %v299_v3  ;;  %v286_v54 = vadd.f32 %v1238_v50, %v264_v4 }
 0x142   :  { %v187_v12 = vpop.xlane.xlu0 %186  ;;  %v245_v15 = vmul.f32 %v908_v7, %v1138_v0  ;;  %917 = vrsqrt.f32 %v218_v6  ;;  %v204_v18 = vmul.f32 0.015625, %v184_v9  ;;  %v287_v33 = vadd.f32 %v1238_v50, %v265_v14  ;;  %v892_v9 = vld [vmem:[%s1481_s5 + $0x28] sm:$0xff]  }
 0x143   :  { %v205_v19 = vmul.f32 0.015625, %v187_v12  ;;  %919 = vrsqrt.f32 %v219_v45  ;;  %v300_v22 = vpack.c.bf16 %v286_v54, %v285_v13  ;;  %v266_v16 = vmul.f32 %v1230_v20, %v244_v8  ;;  %v893_v12 = vld [vmem:[%s1481_s5 + $0x30] sm:$0xff]   ;;  %v894_v13 = vld [vmem:[%s1481_s5 + $0x38] sm:$0xff]   ;;  %v1316_v54 = vld [vmem:[%s1484_s4] ss:$0 sm:$0xff] }
 0x144   :  { %v910_v55 = vpop.eup %909  ;;  %v220_v26 = vadd.f32 1e-05, %v204_v18  ;;  %v267_v34 = vmul.f32 %v1230_v20, %v245_v15 }
 0x145   :  { %v221_v27 = vadd.f32 1e-05, %v205_v19  ;;  %v912_v30 = vpop.eup %911  ;;  %v246_v31 = vmul.f32 %v910_v55, %v1141_v1  ;;  %v190_v32 = vpop.xlane.xlu1 %189  ;;  %820 = vmatmul.mubr.msk.bf16.vlgmr.msra.gmra.mrb[0].mxu0 %vm45_vm0, %v300_v22  ;;  %v288_v0 = vadd.f32 %v1238_v50, %v266_v16 }
 0x146   :  { %v247_v38 = vmul.f32 %v912_v30, %v1150_v10  ;;  %921 = vrsqrt.f32 %v220_v26  ;;  %v206_v39 = vmul.f32 0.015625, %v190_v32  ;;  %836 = vmatpush3.bf16.msra.mxu0 %v1214_v58  ;;  %v289_v24 = vadd.f32 %v1238_v50, %v267_v34 }
 0x147   :  { %923 = vrsqrt.f32 %v221_v27  ;;  %v301_v40 = vpack.c.bf16 %v288_v0, %v287_v33  ;;  %v268_v41 = vmul.f32 %v1230_v20, %v246_v31  ;;  %837 = vmatprep.subr.bf16.mxu0 %v1219_v59 }
 0x148   :  { %v914_v1 = vpop.eup %913  ;;  %v222_v42 = vadd.f32 1e-05, %v206_v39  ;;  %v269_v36 = vmul.f32 %v1230_v20, %v247_v38 }
 0x149   :  { %v916_v43 = vpop.eup %915  ;;  %v248_v46 = vmul.f32 %v914_v1, %v1153_v11  ;;  %823 = vmatprep.mubr.msk.bf16.mxu0 %vm45_vm0, %v301_v40  ;;  %v290_v10 = vadd.f32 %v1238_v50, %v268_v41 }
 0x14a   :  { %v249_v58 = vmul.f32 %v916_v43, %v1162_v23  ;;  %925 = vrsqrt.f32 %v222_v42  ;;  %838 = vmatpush3.bf16.msra.mxu0 %v1219_v59  ;;  %v291_v28 = vadd.f32 %v1238_v50, %v269_v36 }
 0x14b   :  { %v302_v48 = vpack.c.bf16 %v290_v10, %v289_v24  ;;  %v270_v49 = vmul.f32 %v1230_v20, %v248_v46 }
 0x14c   :  { %v918_v51 = vpop.eup %917  ;;  %v271_v53 = vmul.f32 %v1230_v20, %v249_v58 }
 0x14d   :  { %v920_v52 = vpop.eup %919  ;;  %v250_v11 = vmul.f32 %v918_v51, %v1165_v17  ;;  %824 = vmatmul.mubr.msk.bf16.gmra.mrb[4].mxu0 %vm45_vm0, %v302_v48  ;;  %v292_v29 = vadd.f32 %v1238_v50, %v270_v49 }
 0x14e   :  { %v251_v23 = vmul.f32 %v920_v52, %v1174_v35  ;;  %v293_v17 = vadd.f32 %v1238_v50, %v271_v53 }
 0x14f   :  { %v303_v44 = vpack.c.bf16 %v292_v29, %v291_v28  ;;  %v272_v59 = vmul.f32 %v1230_v20, %v250_v11 }
 0x150   :  { %v922_v56 = vpop.eup %921  ;;  %v273_v61 = vmul.f32 %v1230_v20, %v251_v23 }
 0x151   :  { %v924_v57 = vpop.eup %923  ;;  %v252_v37 = vmul.f32 %v922_v56, %v1177_v21  ;;  %827 = vmatprep.mubr.msk.bf16.mxu0 %vm45_vm0, %v303_v44  ;;  %v294_v60 = vadd.f32 %v1238_v50, %v272_v59 }
 0x152   :  { %v253_v62 = vmul.f32 %v924_v57, %v1186_v47  ;;  %v295_v21 = vadd.f32 %v1238_v50, %v273_v61 }
 0x153   :  { %v304_v63 = vpack.c.bf16 %v294_v60, %v293_v17  ;;  %v274_v35 = vmul.f32 %v1230_v20, %v252_v37 }
 0x154   :  { %v926_v2 = vpop.eup %925  ;;  %v275_v5 = vmul.f32 %v1230_v20, %v253_v62 }
 0x155   :  { %v254_v3 = vmul.f32 %v926_v2, %v1189_v25  ;;  %828 = vmatmul.mubr.msk.bf16.gmra.mrb[8].mxu0 %vm45_vm0, %v304_v63  ;;  %v296_v4 = vadd.f32 %v1238_v50, %v274_v35  ;;  %v889_v25 = vld [vmem:[%s1481_s5 + $0x10] sm:$0xff]  }
 0x156   :  { %v297_v47 = vadd.f32 %v1238_v50, %v275_v5  ;;  %839 = vmatprep.subr.bf16.mxu0 %v889_v25  ;;  %869 = vmatprep.subr.bf16.mxu1 %v889_v25 }
 0x157   :  { %v305_v6 = vpack.c.bf16 %v296_v4, %v295_v21  ;;  %v276_v45 = vmul.f32 %v1230_v20, %v254_v3  ;;  %840 = vmatpush3.bf16.msra.mxu0 %v889_v25  ;;  %877 = vmatpush3.bf16.msra.mxu1 %v889_v25  ;;  %v890_v20 = vld [vmem:[%s1481_s5 + $0x18] sm:$0xff]  }
 0x158   :  { %841 = vmatprep.subr.bf16.mxu0 %v890_v20  ;;  %870 = vmatprep.subr.bf16.mxu1 %v890_v20 }
 0x159   :  { %831 = vmatprep.mubr.msk.bf16.mxu0 %vm45_vm0, %v305_v6  ;;  %v298_v7 = vadd.f32 %v1238_v50, %v276_v45  ;;  %v891_v50 = vld [vmem:[%s1481_s5 + $0x20] sm:$0xff]  }
 0x15b   :  { %v306_v8 = vpack.c.bf16 %v298_v7, %v297_v47  ;;  %842 = vmatpush3.bf16.msra.mxu0 %v890_v20  ;;  %878 = vmatpush3.bf16.msra.mxu1 %v890_v20 }
 0x15c   :  { %843 = vmatprep.subr.bf16.mxu0 %v891_v50  ;;  %871 = vmatprep.subr.bf16.mxu1 %v891_v50 }
 0x15d   :  { %832 = vmatmul.mubr.msk.bf16.gmra.mrb[12].mxu0 %vm45_vm0, %v306_v8 }
 0x15f   :  { %844 = vmatpush3.bf16.msra.mxu0 %v891_v50  ;;  %879 = vmatpush3.bf16.msra.mxu1 %v891_v50 }
 0x160   :  { %845 = vmatprep.subr.bf16.mxu0 %v892_v9  ;;  %872 = vmatprep.subr.bf16.mxu1 %v892_v9 }
 0x163   :  { %846 = vmatpush3.bf16.msra.mxu0 %v892_v9  ;;  %880 = vmatpush3.bf16.msra.mxu1 %v892_v9 }
 0x164   :  { %847 = vmatprep.subr.bf16.mxu0 %v893_v12  ;;  %873 = vmatprep.subr.bf16.mxu1 %v893_v12 }
 0x167   :  { %848 = vmatpush3.bf16.msra.mxu0 %v893_v12  ;;  %881 = vmatpush3.bf16.msra.mxu1 %v893_v12 }
 0x168   :  { %849 = vmatprep.subr.bf16.mxu0 %v894_v13  ;;  %874 = vmatprep.subr.bf16.mxu1 %v894_v13 }
 0x16b   :  { %850 = vmatpush3.bf16.msra.mxu0 %v894_v13  ;;  %882 = vmatpush3.bf16.msra.mxu1 %v894_v13 }
 0x218   :  { %v821_v14 = vpop.f32.mrb[0].mxu0 }
 0x219   :  { %v413_v15 = vadd.f32 %v821_v14, %v1316_v54  ;;  %v404_v18 = vpop.f32.mrb[1].mxu0 }
 0x21a   :  { %v405_v19 = vadd.f32 %v1316_v54, %v404_v18  ;;  %v822_v22 = vpop.f32.mrb[2].mxu0 }
 0x21b   :  { %v485_v16 = vmul.f32 0.70710677, %v413_v15  ;;  %v416_v55 = vadd.f32 %v822_v22, %v1316_v54  ;;  %v407_v26 = vpop.f32.mrb[3].mxu0  ;;  %v469_v29 = vmul.f32 0.5, %v413_v15 }
 0x21c   :  { %v483_v27 = vmul.f32 0.70710677, %v405_v19  ;;  %v408_v30 = vadd.f32 %v1316_v54, %v407_v26  ;;  %v467_v56 = vmul.f32 0.5, %v405_v19 }
 0x21d   :  { %927 = verf.f32 %v485_v16  ;;  %v486_v31 = vmul.f32 0.70710677, %v416_v55  ;;  %v470_v53 = vmul.f32 0.5, %v416_v55 }
 0x21e   :  { %929 = verf.f32 %v483_v27  ;;  %v484_v32 = vmul.f32 0.70710677, %v408_v30  ;;  %v468_v57 = vmul.f32 0.5, %v408_v30 }
 0x21f   :  { %931 = verf.f32 %v486_v31 }
 0x220   :  { %933 = verf.f32 %v484_v32  ;;  %v825_v33 = vpop.f32.mrb[4].mxu0 }
 0x221   :  { %v429_v0 = vadd.f32 %v825_v33, %v1316_v54  ;;  %v420_v34 = vpop.f32.mrb[5].mxu0 }
 0x222   :  { %v421_v38 = vadd.f32 %v1316_v54, %v420_v34  ;;  %v826_v39 = vpop.f32.mrb[6].mxu0 }
 0x223   :  { %v489_v40 = vmul.f32 0.70710677, %v429_v0  ;;  %v432_v41 = vadd.f32 %v826_v39, %v1316_v54  ;;  %v423_v1 = vpop.f32.mrb[7].mxu0  ;;  %v473_v20 = vmul.f32 0.5, %v429_v0 }
 0x224   :  { %v487_v42 = vmul.f32 0.70710677, %v421_v38  ;;  %v1326_v43 = vadd.f32 %v1316_v54, %v423_v1  ;;  %v471_v16 = vmul.f32 0.5, %v421_v38 }
 0x225   :  { %935 = verf.f32 %v489_v40  ;;  %v490_v46 = vmul.f32 0.70710677, %v432_v41  ;;  %v474_v14 = vmul.f32 0.5, %v432_v41 }
 0x226   :  { %937 = verf.f32 %v487_v42  ;;  %v488_v24 = vmul.f32 0.70710677, %v1326_v43  ;;  %v472_v32 = vmul.f32 0.5, %v1326_v43 }
 0x227   :  { %v928_v10 = vpop.eup %927  ;;  %939 = verf.f32 %v490_v46 }
 0x228   :  { %v930_v36 = vpop.eup %929  ;;  %v517_v58 = vadd.f32 1.0, %v928_v10  ;;  %941 = verf.f32 %v488_v24  ;;  %v829_v48 = vpop.f32.mrb[8].mxu0 }
 0x229   :  { %v932_v49 = vpop.eup %931  ;;  %v515_v51 = vadd.f32 1.0, %v930_v36  ;;  %v1330_v52 = vadd.f32 %v829_v48, %v1316_v54  ;;  %v436_v11 = vpop.f32.mrb[9].mxu0 }
 0x22a   :  { %v934_v28 = vpop.eup %933  ;;  %v518_v23 = vadd.f32 1.0, %v932_v49  ;;  %v1333_v44 = vadd.f32 %v1316_v54, %v436_v11  ;;  %v830_v59 = vpop.f32.mrb[10].mxu0  ;;  %v533_v61 = vmul.f32 %v517_v58, %v469_v29 }
 0x22b   :  { %v516_v37 = vadd.f32 1.0, %v934_v28  ;;  %v493_v17 = vmul.f32 0.70710677, %v1330_v52  ;;  %v439_v60 = vpop.f32.mrb[11].mxu0  ;;  %v448_v35 = vadd.f32 %v830_v59, %v1316_v54  ;;  %v531_v2 = vmul.f32 %v515_v51, %v467_v56 }
 0x22c   :  { %v534_v62 = vmul.f32 %v518_v23, %v470_v53  ;;  %v491_v63 = vmul.f32 0.70710677, %v1333_v44  ;;  %v440_v21 = vadd.f32 %v1316_v54, %v439_v60  ;;  %v475_v51 = vmul.f32 0.5, %v1333_v44 }
 0x22d   :  { %v532_v3 = vmul.f32 %v516_v37, %v468_v57  ;;  %943 = verf.f32 %v493_v17  ;;  %v494_v5 = vmul.f32 0.70710677, %v448_v35  ;;  %v478_v48 = vmul.f32 0.5, %v448_v35 }
 0x22e   :  { %v548_v4 = vpack.c.bf16 %v534_v62, %v533_v61  ;;  %945 = verf.f32 %v491_v63  ;;  %v492_v45 = vmul.f32 0.70710677, %v440_v21  ;;  %v476_v11 = vmul.f32 0.5, %v440_v21 }
 0x22f   :  { %v936_v6 = vpop.eup %935  ;;  %v547_v47 = vpack.c.bf16 %v532_v3, %v531_v2  ;;  %947 = verf.f32 %v494_v5 }
 0x230   :  { %v938_v7 = vpop.eup %937  ;;  %v833_v8 = vpop.f32.mrb[12].mxu0  ;;  %v521_v50 = vadd.f32 1.0, %v936_v6  ;;  %949 = verf.f32 %v492_v45 }
 0x231   :  { %v940_v25 = vpop.eup %939  ;;  %v461_v9 = vadd.f32 %v833_v8, %v1316_v54  ;;  %v452_v12 = vpop.f32.mrb[13].mxu0  ;;  %851 = vmatprep.mubr.bf16.mxu0 %v547_v47  ;;  %v519_v22 = vadd.f32 1.0, %v938_v7  ;;  %v1349_v8 = vld [vmem:[%s1485_s6] ss:$0 sm:$0xff] }
 0x232   :  { %v942_v13 = vpop.eup %941  ;;  %v522_v15 = vadd.f32 1.0, %v940_v25  ;;  %v453_v18 = vadd.f32 %v1316_v54, %v452_v12  ;;  %v834_v19 = vpop.f32.mrb[14].mxu0  ;;  %852 = vmatmul.mubr.bf16.vlgmr.msra.gmra.mrb[16].mxu0 %v548_v4  ;;  %v537_v34 = vmul.f32 %v521_v50, %v473_v20 }
 0x233   :  { %v497_v55 = vmul.f32 0.70710677, %v461_v9  ;;  %v464_v26 = vadd.f32 %v834_v19, %v1316_v54  ;;  %v455_v27 = vpop.f32.mrb[15].mxu0  ;;  %v520_v30 = vadd.f32 1.0, %v942_v13  ;;  %v535_v41 = vmul.f32 %v519_v22, %v471_v16  ;;  %v959_v13 = vld [vmem:[%s1479_s0 + $0x10] sm:$0xff]  ;;  %v960_v19 = vld [vmem:[%s1479_s0] sm:$0xff] }
 0x234   :  { %v538_v31 = vmul.f32 %v522_v15, %v474_v14  ;;  %v495_v33 = vmul.f32 0.70710677, %v453_v18  ;;  %v456_v0 = vadd.f32 %v1316_v54, %v455_v27  ;;  %v477_v54 = vmul.f32 0.5, %v1330_v52  ;;  %v962_v27 = vld [vmem:[%s1479_s0 + $0x8] sm:$0xff] }
 0x235   :  { %951 = verf.f32 %v497_v55  ;;  %v498_v39 = vmul.f32 0.70710677, %v464_v26  ;;  %v536_v1 = vmul.f32 %v520_v30, %v472_v32  ;;  %v481_v52 = vmul.f32 0.5, %v461_v9  ;;  %v961_v55 = vld [vmem:[%s1479_s0 + $0x18] sm:$0xff] }
 0x236   :  { %953 = verf.f32 %v495_v33  ;;  %v496_v40 = vmul.f32 0.70710677, %v456_v0  ;;  %v550_v38 = vpack.c.bf16 %v538_v31, %v537_v34  ;;  %v482_v35 = vmul.f32 0.5, %v464_v26 }
 0x237   :  { %v944_v42 = vpop.eup %943  ;;  %955 = verf.f32 %v498_v39  ;;  %v549_v24 = vpack.c.bf16 %v536_v1, %v535_v41  ;;  %v479_v3 = vmul.f32 0.5, %v453_v18  ;;  %v480_v44 = vmul.f32 0.5, %v456_v0  ;;  %v963_v39 = vld [vmem:[%s1479_s0 + $0x30] sm:$0xff] }
 0x238   :  { %v946_v46 = vpop.eup %945  ;;  %957 = verf.f32 %v496_v40  ;;  %v525_v10 = vadd.f32 1.0, %v944_v42  ;;  %v964_v42 = vld [vmem:[%s1479_s0 + $0x20] sm:$0xff] }
 0x239   :  { %v948_v36 = vpop.eup %947  ;;  %v523_v58 = vadd.f32 1.0, %v946_v46  ;;  %855 = vmatprep.mubr.bf16.mxu1 %v549_v24  ;;  %v965_v24 = vld [vmem:[%s1479_s0 + $0x38] sm:$0xff] }
 0x23a   :  { %v950_v43 = vpop.eup %949  ;;  %v526_v49 = vadd.f32 1.0, %v948_v36  ;;  %856 = vmatmul.mubr.bf16.vlgmr.msra.gmra.mrb[0].mxu1 %v550_v38  ;;  %v541_v29 = vmul.f32 %v525_v10, %v477_v54  ;;  %v966_v36 = vld [vmem:[%s1479_s0 + $0x28] sm:$0xff] }
 0x23b   :  { %v524_v28 = vadd.f32 1.0, %v950_v43  ;;  %v539_v23 = vmul.f32 %v523_v58, %v475_v51 }
 0x23c   :  { %v542_v53 = vmul.f32 %v526_v49, %v478_v48 }
 0x23d   :  { %v540_v59 = vmul.f32 %v524_v28, %v476_v11  ;;  %v967_v11 = vld [vmem:[%s1479_s0 + $0x50] sm:$0xff] }
 0x23e   :  { %v552_v57 = vpack.c.bf16 %v542_v53, %v541_v29 }
 0x23f   :  { %v952_v56 = vpop.eup %951  ;;  %v551_v60 = vpack.c.bf16 %v540_v59, %v539_v23  ;;  %v968_v23 = vld [vmem:[%s1479_s0 + $0x40] sm:$0xff] }
 0x240   :  { %v954_v37 = vpop.eup %953  ;;  %v529_v17 = vadd.f32 1.0, %v952_v56 }
 0x241   :  { %v956_v61 = vpop.eup %955  ;;  %v527_v62 = vadd.f32 1.0, %v954_v37  ;;  %859 = vmatprep.mubr.bf16.mxu1 %v551_v60 }
 0x242   :  { %v958_v63 = vpop.eup %957  ;;  %v530_v2 = vadd.f32 1.0, %v956_v61  ;;  %860 = vmatmul.mubr.bf16.gmra.mrb[4].mxu1 %v552_v57  ;;  %v545_v4 = vmul.f32 %v529_v17, %v481_v52  ;;  %v969_v57 = vld [vmem:[%s1479_s0 + $0x58] sm:$0xff]  ;;  %v970_v17 = vld [vmem:[%s1479_s0 + $0x48] sm:$0xff] }
 0x243   :  { %v528_v21 = vadd.f32 1.0, %v958_v63  ;;  %v543_v6 = vmul.f32 %v527_v62, %v479_v3 }
 0x244   :  { %v546_v5 = vmul.f32 %v530_v2, %v482_v35  ;;  %v971_v2 = vld [vmem:[%s1479_s0 + $0x70] sm:$0xff] }
 0x245   :  { %v544_v45 = vmul.f32 %v528_v21, %v480_v44 }
 0x246   :  { %v554_v47 = vpack.c.bf16 %v546_v5, %v545_v4  ;;  %v972_v4 = vld [vmem:[%s1479_s0 + $0x60] sm:$0xff] }
 0x247   :  { %v553_v7 = vpack.c.bf16 %v544_v45, %v543_v6  ;;  %v973_v45 = vld [vmem:[%s1479_s0 + $0x78] sm:$0xff] }
 0x249   :  { %863 = vmatprep.mubr.bf16.mxu1 %v553_v7  ;;  %v974_v7 = vld [vmem:[%s1479_s0 + $0x68] sm:$0xff] }
 0x24a   :  { %864 = vmatmul.mubr.bf16.gmra.mrb[8].mxu1 %v554_v47 }
 0x305   :  { %v853_v25 = vpop.f32.mrb[16].mxu0 }
 0x306   :  { %v669_v20 = vadd.f32 %v853_v25, %v1349_v8  ;;  %v660_v50 = vpop.f32.mrb[17].mxu0 }
 0x307   :  { %v661_v9 = vadd.f32 %v1349_v8, %v660_v50  ;;  %v854_v12 = vpop.f32.mrb[18].mxu0 }
 0x308   :  { %v725_v14 = vadd.f32 %v959_v13, %v669_v20  ;;  %v672_v15 = vadd.f32 %v854_v12, %v1349_v8  ;;  %v663_v18 = vpop.f32.mrb[19].mxu0 }
 0x309   :  { %v723_v22 = vadd.f32 %v960_v19, %v661_v9  ;;  %v664_v16 = vadd.f32 %v1349_v8, %v663_v18 }
 0x30a   :  { %741 = vst.msk [vmem:[%s1486_s7 + $0x10] sm:$0xff] %vm45_vm0, %v725_v14  ;;  %v726_v26 = vadd.f32 %v961_v55, %v672_v15 }
 0x30b   :  { %739 = vst.msk [vmem:[%s1486_s7] sm:$0xff] %vm45_vm0, %v723_v22  ;;  %v724_v30 = vadd.f32 %v962_v27, %v664_v16 }
 0x30c   :  { %742 = vst.msk [vmem:[%s1486_s7 + $0x18] sm:$0xff] %vm45_vm0, %v726_v26 }
 0x30d   :  { %740 = vst.msk [vmem:[%s1486_s7 + $0x8] sm:$0xff] %vm45_vm0, %v724_v30  ;;  %v857_v31 = vpop.f32.mrb[0].mxu1 }
 0x30e   :  { %v685_v32 = vadd.f32 %v857_v31, %v1349_v8  ;;  %v676_v33 = vpop.f32.mrb[1].mxu1 }
 0x30f   :  { %v677_v0 = vadd.f32 %v1349_v8, %v676_v33  ;;  %v858_v34 = vpop.f32.mrb[2].mxu1 }
 0x310   :  { %v729_v40 = vadd.f32 %v963_v39, %v685_v32  ;;  %v688_v41 = vadd.f32 %v858_v34, %v1349_v8  ;;  %v679_v1 = vpop.f32.mrb[3].mxu1 }
 0x311   :  { %v727_v38 = vadd.f32 %v964_v42, %v677_v0  ;;  %v680_v46 = vadd.f32 %v1349_v8, %v679_v1 }
 0x312   :  { %745 = vst.msk [vmem:[%s1486_s7 + $0x30] sm:$0xff] %vm45_vm0, %v729_v40  ;;  %v730_v10 = vadd.f32 %v965_v24, %v688_v41 }
 0x313   :  { %743 = vst.msk [vmem:[%s1486_s7 + $0x20] sm:$0xff] %vm45_vm0, %v727_v38  ;;  %v728_v58 = vadd.f32 %v966_v36, %v680_v46 }
 0x314   :  { %746 = vst.msk [vmem:[%s1486_s7 + $0x38] sm:$0xff] %vm45_vm0, %v730_v10 }
 0x315   :  { %744 = vst.msk [vmem:[%s1486_s7 + $0x28] sm:$0xff] %vm45_vm0, %v728_v58  ;;  %v861_v43 = vpop.f32.mrb[4].mxu1 }
 0x316   :  { %v701_v54 = vadd.f32 %v861_v43, %v1349_v8  ;;  %v692_v48 = vpop.f32.mrb[5].mxu1 }
 0x317   :  { %v693_v49 = vadd.f32 %v1349_v8, %v692_v48  ;;  %v862_v51 = vpop.f32.mrb[6].mxu1 }
 0x318   :  { %v733_v28 = vadd.f32 %v967_v11, %v701_v54  ;;  %v704_v29 = vadd.f32 %v862_v51, %v1349_v8  ;;  %v695_v53 = vpop.f32.mrb[7].mxu1 }
 0x319   :  { %v731_v59 = vadd.f32 %v968_v23, %v693_v49  ;;  %v696_v56 = vadd.f32 %v1349_v8, %v695_v53 }
 0x31a   :  { %749 = vst.msk [vmem:[%s1486_s7 + $0x50] sm:$0xff] %vm45_vm0, %v733_v28  ;;  %v734_v37 = vadd.f32 %v969_v57, %v704_v29 }
 0x31b   :  { %747 = vst.msk [vmem:[%s1486_s7 + $0x40] sm:$0xff] %vm45_vm0, %v731_v59  ;;  %v732_v60 = vadd.f32 %v970_v17, %v696_v56 }
 0x31c   :  { %750 = vst.msk [vmem:[%s1486_s7 + $0x58] sm:$0xff] %vm45_vm0, %v734_v37 }
 0x31d   :  { %748 = vst.msk [vmem:[%s1486_s7 + $0x48] sm:$0xff] %vm45_vm0, %v732_v60  ;;  %v865_v61 = vpop.f32.mrb[8].mxu1 }
 0x31e   :  { %v717_v62 = vadd.f32 %v865_v61, %v1349_v8  ;;  %v708_v63 = vpop.f32.mrb[9].mxu1 }
 0x31f   :  { %v709_v52 = vadd.f32 %v1349_v8, %v708_v63  ;;  %v866_v35 = vpop.f32.mrb[10].mxu1 }
 0x320   :  { %v737_v3 = vadd.f32 %v971_v2, %v717_v62  ;;  %v720_v44 = vadd.f32 %v866_v35, %v1349_v8  ;;  %v711_v21 = vpop.f32.mrb[11].mxu1 }
 0x321   :  { %v735_v5 = vadd.f32 %v972_v4, %v709_v52  ;;  %v712_v6 = vadd.f32 %v1349_v8, %v711_v21 }
 0x322   :  { %753 = vst.msk [vmem:[%s1486_s7 + $0x70] sm:$0xff] %vm45_vm0, %v737_v3  ;;  %v738_v47 = vadd.f32 %v973_v45, %v720_v44 }
 0x323   :  { %751 = vst.msk [vmem:[%s1486_s7 + $0x60] sm:$0xff] %vm45_vm0, %v735_v5  ;;  %v736_v8 = vadd.f32 %v974_v7, %v712_v6 }
 0x324   :  { %754 = vst.msk [vmem:[%s1486_s7 + $0x78] sm:$0xff] %vm45_vm0, %v738_v47 }
 0x325   :  { %752 = vst.msk [vmem:[%s1486_s7 + $0x68] sm:$0xff] %vm45_vm0, %v736_v8 }

// kernel: transformer_forward.6
= control target key start
LH: loop header
LB: loop body
LE: loop exit
PB: predicated region body
PF: predicated region fallthrough
CT: control target
= control target key end

     0   :  { %s2607_s21 = smov 0   ;;  %s3324_s0 = inlined_call_operand.vmem [shape: f32[2,64,64], index: 0, kind: input, shape index: {}]   ;;  %s3325_s1 = inlined_call_operand.vmem [shape: f32[1,64], index: 1, kind: input, shape index: {}]   ;;  %s3326_s2 = inlined_call_operand.vmem [shape: f32[1,64], index: 2, kind: input, shape index: {}]   ;;  %s3327_s3 = inlined_call_operand.vmem [shape: bf16[64,192], index: 3, kind: input, shape index: {}]   ;;  %s3328_s4 = inlined_call_operand.vmem [shape: bf16[64,64], index: 4, kind: input, shape index: {}]   ;;  %s3329_s5 = inlined_call_operand.vmem [shape: f32[1,64], index: 5, kind: input, shape index: {}]   ;;  %s3330_s6 = inlined_call_operand.vmem [shape: f32[2,64,64], index: 6, kind: output, shape index: {}]  }
   0x1 LB: > { %s2004_s22 = sadd.s32 4294967295, %s2562_s21   ;;  %p2008_p0 = scmp.ge.s32.totalorder %s2562_s21, 1  ;;  %s2562_s21 = sphi %s2607_s21, %s16_s21  }
   0x2   : > { %p212_p1 = scmp.lt.s32.totalorder %s2562_s21, 3 }
   0x4   : > { %p213_p2 = pnand %p2008_p0, %p212_p1 }
   0x5   : > { %p242_p3 = scmp.lt.s32.totalorder (!%p213_p2), %s2004_s22, 1  ;;  %vm263_vm0 = vcmask (!%p213_p2), 523264   ;;  %v2388_v56 = vld [vmem:[%s3327_s3 + $0x4] ss:$8 sps:$4 sm:$0xff] (!%p213_p2)   ;;  %v2390_v57 = vld [vmem:[%s3327_s3] ss:$8 sps:$4 sm:$0xff] (!%p213_p2)  }
   0x6   : > { %216 = sbr.rel (%p213_p2) target bundleno = 2616 (0xa38), region = 44  ;;  %461 = vmatprep.subr.bf16.mxu0 (!%p213_p2), %v2388_v56  ;;  %v2391_v58 = vld [vmem:[%s3327_s3 + $0x14] ss:$8 sps:$4 sm:$0xff] (!%p213_p2)   ;;  %v2393_v59 = vld [vmem:[%s3327_s3 + $0x10] ss:$8 sps:$4 sm:$0xff] (!%p213_p2)   ;;  %vm566_vm1 = vcmask (!%p213_p2), 130048  }
   0x7   : > { %462 = vmatpush1.bf16.msra.mxu0 (!%p213_p2), %v2390_v57  ;;  %v2394_v60 = vld [vmem:[%s3327_s3 + $0x24] ss:$8 sps:$4 sm:$0xff] (!%p213_p2)   ;;  %v2396_v61 = vld [vmem:[%s3327_s3 + $0x20] ss:$8 sps:$4 sm:$0xff] (!%p213_p2)   ;;  %v2397_v62 = vld [vmem:[%s3327_s3 + $0x34] ss:$8 sps:$4 sm:$0xff] (!%p213_p2)  }
   0x8   : > { %463 = vmatprep.subr.bf16.mxu0 (!%p213_p2), %v2391_v58  ;;  %v2399_v63 = vld [vmem:[%s3327_s3 + $0x30] ss:$8 sps:$4 sm:$0xff] (!%p213_p2)   ;;  %s2565_s27 = smov (!%p213_p2), 64   ;;  %s2566_s28 = smov (!%p213_p2), 48   ;;  %vm1795_vm2 = vcmask (!%p213_p2), 261120   ;;  %vm1804_vm3 = vcmask (!%p213_p2), 392192  }
   0x9   : > { %s2567_s29 = smov (!%p213_p2), 112   ;;  %s2568_s30 = smov (!%p213_p2), 32  }
   0xa   : > { %s2569_s7 = smov (!%p213_p2), 96   ;;  %s2570_s8 = smov (!%p213_p2), 16  }
   0xb   : > { %464 = vmatpush1.bf16.msra.mxu0 (!%p213_p2), %v2393_v59  ;;  %s2571_s9 = smov (!%p213_p2), 80  }
   0xc   : > { %465 = vmatprep.subr.bf16.mxu0 (!%p213_p2), %v2394_v60 }
   0xd   : > { %s3332_s22 = smov (!%p242_p3, %s2004_s22), 1 }
   0xe   : > { %s2070_s23 = sshll.u32 %s3332_s22, 6 }
   0xf   : > { %s2623_s26 = scalar_lea.vmem %s3324_s0, %s2070_s23  ;;  %466 = vmatpush1.bf16.msra.mxu0 %v2396_v61  ;;  %s3295_s25 = scalar_lea.vmem %s3330_s6, %s2070_s23 }
  0x10   : > { %v253_v0 = vld [vmem:[%s2623_s26] sm:$0xff]  ;;  %v255_v1 = vld [vmem:[%s2623_s26 + $0x10] sm:$0xff]  ;;  %v254_v2 = vld [vmem:[%s2623_s26 + $0x8] sm:$0xff]  ;;  %467 = vmatprep.subr.bf16.mxu0 %v2397_v62 }
  0x11   : > { %v264_v3 = vsel %vm263_vm0, %v253_v0, 0.0  ;;  %v270_v4 = vsel %vm263_vm0, %v255_v1, 0.0  ;;  %v256_v5 = vld [vmem:[%s2623_s26 + $0x18] sm:$0xff]  ;;  %v267_v6 = vsel %vm263_vm0, %v254_v2, 0.0  ;;  %v257_v8 = vld [vmem:[%s2623_s26 + $0x20] sm:$0xff]  ;;  %v258_v9 = vld [vmem:[%s2623_s26 + $0x28] sm:$0xff] }
  0x12   : > { %265 = vadd.xlane.f32.xlu0 %v264_v3  ;;  %271 = vadd.xlane.f32.xlu1 %v270_v4  ;;  %v273_v7 = vsel %vm263_vm0, %v256_v5, 0.0  ;;  %v276_v10 = vsel %vm263_vm0, %v257_v8, 0.0  ;;  %v279_v11 = vsel %vm263_vm0, %v258_v9, 0.0  ;;  %v259_v12 = vld [vmem:[%s2623_s26 + $0x30] sm:$0xff]  ;;  %v260_v13 = vld [vmem:[%s2623_s26 + $0x38] sm:$0xff] }
  0x13   : > { %v282_v14 = vsel %vm263_vm0, %v259_v12, 0.0  ;;  %v285_v15 = vsel %vm263_vm0, %v260_v13, 0.0  ;;  %468 = vmatpush1.bf16.msra.mxu0 %v2399_v63 }
  0x16   : > { %268 = vadd.xlane.f32.xlu0 %v267_v6  ;;  %274 = vadd.xlane.f32.xlu1 %v273_v7 }
  0x1a   : > { %277 = vadd.xlane.f32.xlu0 %v276_v10  ;;  %280 = vadd.xlane.f32.xlu1 %v279_v11 }
  0x1e   : > { %283 = vadd.xlane.f32.xlu0 %v282_v14  ;;  %286 = vadd.xlane.f32.xlu1 %v285_v15 }
  0x9f   : > { %v266_v16 = vpop.xlane.xlu0 %265  ;;  %v272_v17 = vpop.xlane.xlu1 %271 }
  0xa0   : > { %v289_v18 = vmul.f32 0.015625, %v266_v16  ;;  %v291_v19 = vmul.f32 0.015625, %v272_v17 }
  0xa2   : > { %v2641_v20 = vsub.f32 %v253_v0, %v289_v18  ;;  %v2643_v21 = vsub.f32 %v255_v1, %v291_v19  ;;  %v2564_v0 = vmov 0  }
  0xa3   : > { %v269_v22 = vpop.xlane.xlu0 %268  ;;  %v275_v23 = vpop.xlane.xlu1 %274  ;;  %493 = vmatprep.mubr.bf16.mxu0 %v2564_v0 }
  0xa4   : > { %v290_v24 = vmul.f32 0.015625, %v269_v22  ;;  %v292_v25 = vmul.f32 0.015625, %v275_v23  ;;  %v305_v26 = vmul.f32 %v2641_v20, %v2641_v20  ;;  %v307_v27 = vmul.f32 %v2643_v21, %v2643_v21 }
  0xa6   : > { %v2649_v28 = vsub.f32 %v254_v2, %v290_v24  ;;  %v2651_v29 = vsub.f32 %v256_v5, %v292_v25  ;;  %v313_v30 = vsel %vm263_vm0, %v305_v26, 0.0  ;;  %v319_v33 = vsel %vm263_vm0, %v307_v27, 0.0  ;;  %v2013_v26 = vld [vmem:[%s3325_s1] ss:$0 sm:$0xff] }
  0xa7   : > { %314 = vadd.xlane.f32.xlu0 %v313_v30  ;;  %v278_v31 = vpop.xlane.xlu0 %277  ;;  %v281_v32 = vpop.xlane.xlu1 %280 }
  0xa8   : > { %v293_v34 = vmul.f32 0.015625, %v278_v31  ;;  %v294_v35 = vmul.f32 0.015625, %v281_v32  ;;  %v306_v36 = vmul.f32 %v2649_v28, %v2649_v28  ;;  %v308_v37 = vmul.f32 %v2651_v29, %v2651_v29 }
  0xaa   : > { %v2659_v38 = vsub.f32 %v257_v8, %v293_v34  ;;  %v2661_v39 = vsub.f32 %v258_v9, %v294_v35  ;;  %v316_v40 = vsel %vm263_vm0, %v306_v36, 0.0  ;;  %v322_v43 = vsel %vm263_vm0, %v308_v37, 0.0  ;;  %v2014_v35 = vld [vmem:[%s3326_s2] ss:$0 sm:$0xff] }
  0xab   : > { %320 = vadd.xlane.f32.xlu0 %v319_v33  ;;  %317 = vadd.xlane.f32.xlu1 %v316_v40  ;;  %v284_v41 = vpop.xlane.xlu0 %283  ;;  %v287_v42 = vpop.xlane.xlu1 %286 }
  0xac   : > { %v295_v44 = vmul.f32 0.015625, %v284_v41  ;;  %v296_v45 = vmul.f32 0.015625, %v287_v42  ;;  %v309_v46 = vmul.f32 %v2659_v38, %v2659_v38  ;;  %v310_v47 = vmul.f32 %v2661_v39, %v2661_v39 }
  0xae   : > { %v2669_v48 = vsub.f32 %v259_v12, %v295_v44  ;;  %v2671_v49 = vsub.f32 %v260_v13, %v296_v45  ;;  %v325_v50 = vsel %vm263_vm0, %v309_v46, 0.0  ;;  %v328_v51 = vsel %vm263_vm0, %v310_v47, 0.0 }
  0xaf   : > { %323 = vadd.xlane.f32.xlu1 %v322_v43  ;;  %326 = vadd.xlane.f32.xlu0 %v325_v50 }
  0xb0   : > { %v311_v52 = vmul.f32 %v2669_v48, %v2669_v48  ;;  %v312_v53 = vmul.f32 %v2671_v49, %v2671_v49 }
  0xb2   : > { %v331_v54 = vsel %vm263_vm0, %v311_v52, 0.0  ;;  %v334_v55 = vsel %vm263_vm0, %v312_v53, 0.0 }
  0xb3   : > { %329 = vadd.xlane.f32.xlu1 %v328_v51  ;;  %332 = vadd.xlane.f32.xlu0 %v331_v54 }
  0xb7   : > { %335 = vadd.xlane.f32.xlu1 %v334_v55 }
 0x134   : > { %v315_v1 = vpop.xlane.xlu0 %314 }
 0x135   : > { %v337_v2 = vmul.f32 0.015625, %v315_v1 }
 0x137   : > { %v345_v3 = vadd.f32 1e-05, %v337_v2 }
 0x138   : > { %v318_v4 = vpop.xlane.xlu1 %317  ;;  %v321_v5 = vpop.xlane.xlu0 %320 }
 0x139   : > { %2404 = vrsqrt.f32 %v345_v3  ;;  %v338_v6 = vmul.f32 0.015625, %v318_v4  ;;  %v339_v7 = vmul.f32 0.015625, %v321_v5 }
 0x13b   : > { %v346_v8 = vadd.f32 1e-05, %v338_v6  ;;  %v347_v9 = vadd.f32 1e-05, %v339_v7 }
 0x13c   : > { %v324_v10 = vpop.xlane.xlu1 %323  ;;  %v327_v11 = vpop.xlane.xlu0 %326 }
 0x13d   : > { %2406 = vrsqrt.f32 %v346_v8  ;;  %v340_v12 = vmul.f32 0.015625, %v324_v10  ;;  %v341_v14 = vmul.f32 0.015625, %v327_v11 }
 0x13e   : > { %2408 = vrsqrt.f32 %v347_v9 }
 0x13f   : > { %v348_v13 = vadd.f32 1e-05, %v340_v12  ;;  %v349_v18 = vadd.f32 1e-05, %v341_v14 }
 0x140   : > { %v330_v15 = vpop.xlane.xlu1 %329  ;;  %v333_v22 = vpop.xlane.xlu0 %332 }
 0x141   : > { %2410 = vrsqrt.f32 %v348_v13  ;;  %v342_v16 = vmul.f32 0.015625, %v330_v15  ;;  %v343_v30 = vmul.f32 0.015625, %v333_v22 }
 0x143   : > { %v2405_v17 = vpop.eup %2404  ;;  %v350_v19 = vadd.f32 1e-05, %v342_v16  ;;  %v351_v37 = vadd.f32 1e-05, %v343_v30 }
 0x144   : > { %v336_v23 = vpop.xlane.xlu1 %335  ;;  %v361_v24 = vmul.f32 %v2405_v17, %v2641_v20 }
 0x145   : > { %2412 = vrsqrt.f32 %v350_v19  ;;  %v344_v25 = vmul.f32 0.015625, %v336_v23 }
 0x146   : > { %2414 = vrsqrt.f32 %v349_v18  ;;  %v375_v32 = vmul.f32 %v2013_v26, %v361_v24 }
 0x147   : > { %v2407_v27 = vpop.eup %2406  ;;  %v352_v34 = vadd.f32 1e-05, %v344_v25 }
 0x148   : > { %v362_v31 = vmul.f32 %v2407_v27, %v2649_v28  ;;  %v2409_v33 = vpop.eup %2408  ;;  %v389_v40 = vadd.f32 %v2014_v35, %v375_v32 }
 0x149   : > { %v363_v42 = vmul.f32 %v2409_v33, %v2643_v21  ;;  %2416 = vrsqrt.f32 %v352_v34 }
 0x14a   : > { %v376_v36 = vmul.f32 %v2013_v26, %v362_v31  ;;  %2418 = vrsqrt.f32 %v351_v37 }
 0x14b   : > { %v2411_v20 = vpop.eup %2410  ;;  %v377_v46 = vmul.f32 %v2013_v26, %v363_v42 }
 0x14c   : > { %v390_v41 = vadd.f32 %v2014_v35, %v376_v36  ;;  %v364_v43 = vmul.f32 %v2411_v20, %v2651_v29 }
 0x14d   : > { %v391_v52 = vadd.f32 %v2014_v35, %v377_v46 }
 0x14e   : > { %v397_v44 = vpack.c.bf16 %v390_v41, %v389_v40  ;;  %v378_v45 = vmul.f32 %v2013_v26, %v364_v43 }
 0x14f   : > { %v2413_v28 = vpop.eup %2412 }
 0x150   : > { %2023 = vmatmul.mubr.msk.bf16.vlgmr.msra.gmra.mrb[0].mxu0 %vm263_vm0, %v397_v44  ;;  %v2415_v47 = vpop.eup %2414  ;;  %v392_v50 = vadd.f32 %v2014_v35, %v378_v45  ;;  %v366_v51 = vmul.f32 %v2413_v28, %v2661_v39 }
 0x151   : > { %503 = vmatprep.mubr.bf16.mxu0 %v2564_v0  ;;  %v365_v53 = vmul.f32 %v2415_v47, %v2659_v38 }
 0x152   : > { %v398_v21 = vpack.c.bf16 %v392_v50, %v391_v52  ;;  %v380_v54 = vmul.f32 %v2013_v26, %v366_v51 }
 0x153   : > { %v2417_v29 = vpop.eup %2416  ;;  %v379_v55 = vmul.f32 %v2013_v26, %v365_v53 }
 0x154   : > { %v2419_v56 = vpop.eup %2418  ;;  %v394_v57 = vadd.f32 %v2014_v35, %v380_v54  ;;  %v368_v58 = vmul.f32 %v2417_v29, %v2671_v49 }
 0x155   : > { %v393_v59 = vadd.f32 %v2014_v35, %v379_v55  ;;  %v367_v60 = vmul.f32 %v2419_v56, %v2669_v48 }
 0x156   : > { %v382_v39 = vmul.f32 %v2013_v26, %v368_v58 }
 0x157   : > { %v399_v61 = vpack.c.bf16 %v394_v57, %v393_v59  ;;  %v381_v38 = vmul.f32 %v2013_v26, %v367_v60 }
 0x158   : > { %2024 = vmatmul.mubr.msk.bf16.gmra.mrb[4].mxu0 %vm263_vm0, %v398_v21  ;;  %v396_v62 = vadd.f32 %v2014_v35, %v382_v39 }
 0x159   : > { %513 = vmatprep.mubr.bf16.mxu0 %v2564_v0  ;;  %v395_v63 = vadd.f32 %v2014_v35, %v381_v38 }
 0x15b   : > { %v400_v1 = vpack.c.bf16 %v396_v62, %v395_v63 }
 0x160   : > { %2025 = vmatmul.mubr.msk.bf16.gmra.mrb[8].mxu0 %vm263_vm0, %v399_v61 }
 0x161   : > { %523 = vmatprep.mubr.bf16.mxu0 %v2564_v0 }
 0x168   : > { %2026 = vmatmul.mubr.msk.bf16.gmra.mrb[12].mxu0 %vm263_vm0, %v400_v1 }
 0x223   : > { %v495_v2 = vpop.f32.mrb[0].mxu0 }
 0x224   : > { %v497_v3 = vpop.f32.mrb[1].mxu0  ;;  %v534_v5 = vmul.f32 0.25, %v495_v2 }
 0x225   : > { %v499_v4 = vpop.f32.mrb[2].mxu0 }
 0x226   : > { %v535_v49 = vmul.f32 0.25, %v499_v4  ;;  %v2727_v6 = vpack.c.bf16 %v499_v4, %v495_v2  ;;  %v501_v48 = vpop.f32.mrb[3].mxu0 }
 0x227   : > { %v2729_v7 = vpack.c.bf16 %v501_v48, %v497_v3 }
 0x228   : > { %v2731_v8 = vpack.c.bf16 %v535_v49, %v534_v5  ;;  %558 = vrot.lane.b32.xlu0 %v2727_v6, %s2565_s27 }
 0x229   : > { %2160 = vmatprep.subr.bf16.mxu0 %v2729_v7 }
 0x22a   : > { %2152 = vmatprep.mubr.msk.bf16.mxu1 %vm566_vm1, %v2731_v8  ;;  %2161 = vmatpush3.bf16.msra.mxu0 %v2729_v7 }
 0x22b   : > { %v505_v0 = vpop.f32.mrb[4].mxu0 }
 0x22c   : > { %837 = vrot.lane.b32.xlu0 %v2727_v6, %s2566_s28  ;;  %v507_v9 = vpop.f32.mrb[5].mxu0  ;;  %v536_v11 = vmul.f32 0.25, %v505_v0 }
 0x22d   : > { %v509_v10 = vpop.f32.mrb[6].mxu0 }
 0x22e   : > { %v537_v12 = vmul.f32 0.25, %v509_v10  ;;  %v2741_v13 = vpack.c.bf16 %v509_v10, %v505_v0  ;;  %v511_v14 = vpop.f32.mrb[7].mxu0 }
 0x22f   : > { %v2743_v15 = vpack.c.bf16 %v511_v14, %v507_v9 }
 0x230   : > { %v2745_v16 = vpack.c.bf16 %v537_v12, %v536_v11  ;;  %560 = vrot.lane.b32.xlu1 %v2741_v13, %s2565_s27 }
 0x231   : > { %2162 = vmatprep.subr.bf16.mxu0 %v2743_v15 }
 0x232   : > { %2163 = vmatpush3.bf16.msra.mxu0 %v2743_v15 }
 0x233   : > { %v515_v17 = vpop.f32.mrb[8].mxu0 }
 0x234   : > { %v517_v18 = vpop.f32.mrb[9].mxu0  ;;  %v538_v22 = vmul.f32 0.25, %v515_v17 }
 0x235   : > { %v519_v19 = vpop.f32.mrb[10].mxu0 }
 0x236   : > { %v539_v23 = vmul.f32 0.25, %v519_v19  ;;  %v2751_v24 = vpack.c.bf16 %v519_v19, %v515_v17  ;;  %v521_v25 = vpop.f32.mrb[11].mxu0 }
 0x237   : > { %v2753_v26 = vpack.c.bf16 %v521_v25, %v517_v18 }
 0x238   : > { %v2755_v27 = vpack.c.bf16 %v539_v23, %v538_v22  ;;  %841 = vrot.lane.b32.xlu0 %v2751_v24, %s2566_s28  ;;  %562 = vrot.lane.b32.xlu1 %v2751_v24, %s2565_s27 }
 0x239   : > { %2164 = vmatprep.subr.bf16.mxu0 %v2753_v26 }
 0x23a   : > { %2165 = vmatpush3.bf16.msra.mxu0 %v2753_v26 }
 0x23b   : > { %v525_v30 = vpop.f32.mrb[12].mxu0 }
 0x23c   : > { %829 = vrot.lane.b32.xlu0 %v2731_v8, %s2567_s29  ;;  %v527_v31 = vpop.f32.mrb[13].mxu0  ;;  %v540_v33 = vmul.f32 0.25, %v525_v30 }
 0x23d   : > { %v529_v32 = vpop.f32.mrb[14].mxu0 }
 0x23e   : > { %v541_v34 = vmul.f32 0.25, %v529_v32  ;;  %v2764_v35 = vpack.c.bf16 %v529_v32, %v525_v30  ;;  %v531_v36 = vpop.f32.mrb[15].mxu0 }
 0x23f   : > { %v2766_v20 = vpack.c.bf16 %v531_v36, %v527_v31 }
 0x240   : > { %v2768_v37 = vpack.c.bf16 %v541_v34, %v540_v33  ;;  %833 = vrot.lane.b32.xlu0 %v2755_v27, %s2567_s29  ;;  %564 = vrot.lane.b32.xlu1 %v2764_v35, %s2565_s27 }
 0x241   : > { %2166 = vmatprep.subr.bf16.mxu0 %v2766_v20 }
 0x242   : > { %2167 = vmatpush3.bf16.msra.mxu0 %v2766_v20 }
 0x244   : > { %1014 = vrot.lane.b32.xlu0 %v2729_v7, %s2567_s29  ;;  %839 = vrot.lane.b32.xlu1 %v2741_v13, %s2566_s28 }
 0x248   : > { %843 = vrot.lane.b32.xlu1 %v2764_v35, %s2566_s28 }
 0x24c   : > { %831 = vrot.lane.b32.xlu1 %v2745_v16, %s2567_s29 }
 0x250   : > { %835 = vrot.lane.b32.xlu1 %v2768_v37, %s2567_s29 }
 0x254   : > { %1016 = vrot.lane.b32.xlu1 %v2743_v15, %s2567_s29 }
 0x258   : > { %1018 = vrot.lane.b32.xlu1 %v2753_v26, %s2567_s29 }
 0x25c   : > { %1020 = vrot.lane.b32.xlu1 %v2766_v20, %s2567_s29 }
 0x29a   : > { %v559_v40 = vpop.permute.xlu0 %558 }
 0x29b   : > { %2296 = vmatprep.subr.msk.bf16.mxu1 %vm566_vm1, %v559_v40  ;;  %v580_v41 = vsel %vm566_vm1, %v559_v40, 0 }
 0x29c   : > { %2145 = vmatpush3.bf16.xpose.msra.mxu1 %v580_v41 }
 0x29e   : > { %v838_v44 = vpop.permute.xlu0 %837 }
 0x29f   : > { %v858_v21 = vsel %vm566_vm1, %v838_v44, 0 }
 0x2a2   : > { %v561_v42 = vpop.permute.xlu1 %560 }
 0x2a3   : > { %2297 = vmatprep.subr.msk.bf16.mxu1 %vm566_vm1, %v561_v42  ;;  %v583_v43 = vsel %vm566_vm1, %v561_v42, 0 }
 0x2a4   : > { %2147 = vmatpush3.bf16.xpose.msra.mxu1 %v583_v43 }
 0x2aa   : > { %v563_v45 = vpop.permute.xlu1 %562  ;;  %v842_v28 = vpop.permute.xlu0 %841 }
 0x2ab   : > { %2298 = vmatprep.subr.msk.bf16.mxu1 %vm566_vm1, %v563_v45  ;;  %v586_v46 = vsel %vm566_vm1, %v563_v45, 0  ;;  %v864_v55 = vsel %vm566_vm1, %v842_v28, 0 }
 0x2ac   : > { %2149 = vmatpush3.bf16.xpose.msra.mxu1 %v586_v46 }
 0x2ae   : > { %v830_v47 = vpop.permute.xlu0 %829 }
 0x2b2   : > { %v565_v50 = vpop.permute.xlu1 %564  ;;  %v834_v51 = vpop.permute.xlu0 %833 }
 0x2b3   : > { %2299 = vmatprep.subr.msk.bf16.mxu1 %vm566_vm1, %v565_v50  ;;  %v589_v52 = vsel %vm566_vm1, %v565_v50, 0 }
 0x2b4   : > { %2151 = vmatpush3.bf16.xpose.msra.mxu1 %v589_v52 }
 0x2b5   : > { %2300 = vmatprep.subr.msk.bf16.mxu1 %vm566_vm1, %v838_v44 }
 0x2b6   : > { %v2794_v53 = vpop.permute.xlu0 %1014  ;;  %v840_v54 = vpop.permute.xlu1 %839 }
 0x2b7   : > { %2192 = vmatprep.subr.bf16.mxu0 %v2794_v53  ;;  %v861_v29 = vsel %vm566_vm1, %v840_v54, 0 }
 0x2ba   : > { %v844_v56 = vpop.permute.xlu1 %843 }
 0x2bb   : > { %2153 = vmatmul.mubr.msk.bf16.vlgmr.msra.gmra.mrb[0].mxu1 %vm566_vm1, %v2745_v16  ;;  %v867_v57 = vsel %vm566_vm1, %v844_v56, 0 }
 0x2bc   : > { %2156 = vmatprep.mubr.msk.bf16.mxu1 %vm566_vm1, %v2755_v27  ;;  %2177 = vmatpush3.bf16.xpose.msra.mxu1 %v858_v21 }
 0x2bd   : > { %2301 = vmatprep.subr.msk.bf16.mxu1 %vm566_vm1, %v840_v54 }
 0x2be   : > { %v832_v58 = vpop.permute.xlu1 %831 }
 0x2c2   : > { %v836_v59 = vpop.permute.xlu1 %835 }
 0x2c3   : > { %2157 = vmatmul.mubr.msk.bf16.gmra.mrb[4].mxu1 %vm566_vm1, %v2768_v37 }
 0x2c4   : > { %2179 = vmatpush3.bf16.xpose.msra.mxu1 %v861_v29  ;;  %2184 = vmatprep.mubr.msk.bf16.mxu1 %vm566_vm1, %v830_v47 }
 0x2c5   : > { %2302 = vmatprep.subr.msk.bf16.mxu1 %vm566_vm1, %v842_v28 }
 0x2c6   : > { %v1017_v41 = vpop.permute.xlu1 %1016 }
 0x2ca   : > { %v1019_v42 = vpop.permute.xlu1 %1018 }
 0x2cc   : > { %2181 = vmatpush3.bf16.xpose.msra.mxu1 %v864_v55 }
 0x2cd   : > { %2303 = vmatprep.subr.msk.bf16.mxu1 %vm566_vm1, %v844_v56 }
 0x2ce   : > { %v2894_v43 = vpop.permute.xlu1 %1020 }
 0x2d4   : > { %2183 = vmatpush3.bf16.xpose.msra.mxu1 %v867_v57 }
 0x2db   : > { %2185 = vmatmul.mubr.msk.bf16.vlgmr.msra.gmra.mrb[8].mxu1 %vm566_vm1, %v832_v58 }
 0x2dc   : > { %2188 = vmatprep.mubr.msk.bf16.mxu1 %vm566_vm1, %v834_v51 }
 0x2e3   : > { %2189 = vmatmul.mubr.msk.bf16.gmra.mrb[12].mxu1 %vm566_vm1, %v836_v59 }
 0x38e   : > { %v2814_v60 = vpop.f32.mrb[0].mxu1 }
 0x38f   : > { %v2816_v61 = vpop.f32.mrb[1].mxu1  ;;  %v662_v39 = vsel %vm263_vm0, %v2814_v60, -inf }
 0x390   : > { %663 = vmax.xlane.f32.xlu0 %v662_v39  ;;  %v2820_v38 = vpop.f32.mrb[2].mxu1  ;;  %v656_v1 = vsel %vm263_vm0, %v2816_v61, -inf }
 0x391   : > { %v2822_v62 = vpop.f32.mrb[3].mxu1  ;;  %v665_v4 = vsel %vm263_vm0, %v2820_v38, -inf }
 0x392   : > { %v659_v63 = vsel %vm263_vm0, %v2822_v62, -inf }
 0x393   : > { %660 = vmax.xlane.f32.xlu1 %v659_v63 }
 0x394   : > { %657 = vmax.xlane.f32.xlu0 %v656_v1 }
 0x396   : > { %v2828_v2 = vpop.f32.mrb[4].mxu1 }
 0x397   : > { %v2830_v3 = vpop.f32.mrb[5].mxu1  ;;  %v674_v0 = vsel %vm263_vm0, %v2828_v2, -inf }
 0x398   : > { %666 = vmax.xlane.f32.xlu0 %v665_v4  ;;  %v2834_v5 = vpop.f32.mrb[6].mxu1  ;;  %v668_v10 = vsel %vm263_vm0, %v2830_v3, -inf }
 0x399   : > { %v2836_v49 = vpop.f32.mrb[7].mxu1  ;;  %v677_v48 = vsel %vm263_vm0, %v2834_v5, -inf }
 0x39a   : > { %678 = vmax.xlane.f32.xlu1 %v677_v48  ;;  %v671_v9 = vsel %vm263_vm0, %v2836_v49, -inf }
 0x39c   : > { %675 = vmax.xlane.f32.xlu0 %v674_v0 }
 0x39e   : > { %672 = vmax.xlane.f32.xlu1 %v671_v9 }
 0x3a0   : > { %669 = vmax.xlane.f32.xlu0 %v668_v10 }
 0x3ae   : > { %v2846_v11 = vpop.f32.mrb[8].mxu1 }
 0x3af   : > { %v2848_v12 = vpop.f32.mrb[9].mxu1  ;;  %v940_v14 = vsel %vm263_vm0, %v2846_v11, -inf }
 0x3b0   : > { %941 = vmax.xlane.f32.xlu0 %v940_v14  ;;  %v2852_v17 = vpop.f32.mrb[10].mxu1  ;;  %v934_v22 = vsel %vm263_vm0, %v2848_v12, -inf }
 0x3b1   : > { %v2854_v18 = vpop.f32.mrb[11].mxu1  ;;  %v943_v19 = vsel %vm263_vm0, %v2852_v17, -inf }
 0x3b2   : > { %944 = vmax.xlane.f32.xlu1 %v943_v19  ;;  %v937_v23 = vsel %vm263_vm0, %v2854_v18, -inf }
 0x3b4   : > { %935 = vmax.xlane.f32.xlu0 %v934_v22 }
 0x3b6   : > { %938 = vmax.xlane.f32.xlu1 %v937_v23  ;;  %v2862_v25 = vpop.f32.mrb[12].mxu1 }
 0x3b7   : > { %v2864_v30 = vpop.f32.mrb[13].mxu1  ;;  %v952_v31 = vsel %vm263_vm0, %v2862_v25, -inf }
 0x3b8   : > { %953 = vmax.xlane.f32.xlu0 %v952_v31  ;;  %v2868_v32 = vpop.f32.mrb[14].mxu1  ;;  %v946_v34 = vsel %vm263_vm0, %v2864_v30, -inf }
 0x3b9   : > { %v2870_v33 = vpop.f32.mrb[15].mxu1  ;;  %v955_v36 = vsel %vm263_vm0, %v2868_v32, -inf }
 0x3ba   : > { %v949_v40 = vsel %vm263_vm0, %v2870_v33, -inf }
 0x3bc   : > { %947 = vmax.xlane.f32.xlu0 %v946_v34 }
 0x3c0   : > { %956 = vmax.xlane.f32.xlu0 %v955_v36 }
 0x3c7   : > { %1129 = vrot.lane.b32.xlu1 %v2741_v13, %s2568_s30 }
 0x3cb   : > { %1131 = vrot.lane.b32.xlu1 %v2751_v24, %s2568_s30 }
 0x3d6   : > { %1127 = vrot.lane.b32.xlu0 %v2727_v6, %s2568_s30 }
 0x3da   : > { %1119 = vrot.lane.b32.xlu0 %v2731_v8, %s2569_s7 }
 0x3de   : > { %1123 = vrot.lane.b32.xlu0 %v2755_v27, %s2569_s7 }
 0x3e2   : > { %1300 = vrot.lane.b32.xlu0 %v2729_v7, %s2569_s7 }
 0x3ef   : > { %950 = vmax.xlane.f32.xlu1 %v949_v40 }
 0x400   : > { %1133 = vrot.lane.b32.xlu1 %v2764_v35, %s2568_s30 }
 0x404   : > { %1121 = vrot.lane.b32.xlu1 %v2745_v16, %s2569_s7 }
 0x408   : > { %1125 = vrot.lane.b32.xlu1 %v2768_v37, %s2569_s7 }
 0x40c   : > { %1302 = vrot.lane.b32.xlu1 %v2743_v15, %s2569_s7 }
 0x410   : > { %1304 = vrot.lane.b32.xlu1 %v2753_v26, %s2569_s7 }
 0x414   : > { %1306 = vrot.lane.b32.xlu1 %v2766_v20, %s2569_s7 }
 0x41d   : > { %v664_v44 = vpop.xlane.xlu0 %663 }
 0x41e   : > { %v682_v28 = vsub.f32 %v2814_v60, %v664_v44 }
 0x420   : > { %v661_v45 = vpop.xlane.xlu1 %660  ;;  %v692_v21 = vmul.f32 1.442695, %v682_v28 }
 0x421   : > { %v681_v46 = vsub.f32 %v2822_v62, %v661_v45  ;;  %v658_v47 = vpop.xlane.xlu0 %657 }
 0x422   : > { %v680_v50 = vsub.f32 %v2816_v61, %v658_v47 }
 0x423   : > { %v690_v51 = vmul.f32 1.442695, %v681_v46 }
 0x424   : > { %v688_v52 = vmul.f32 1.442695, %v680_v50 }
 0x425   : > { %2420 = vpow2.f32 %v690_v51  ;;  %v667_v54 = vpop.xlane.xlu0 %666 }
 0x426   : > { %2422 = vpow2.f32 %v688_v52  ;;  %v683_v29 = vsub.f32 %v2820_v38, %v667_v54 }
 0x427   : > { %v679_v55 = vpop.xlane.xlu1 %678  ;;  %2424 = vpow2.f32 %v692_v21 }
 0x428   : > { %v694_v56 = vmul.f32 1.442695, %v683_v29  ;;  %v687_v57 = vsub.f32 %v2834_v5, %v679_v55 }
 0x429   : > { %v676_v58 = vpop.xlane.xlu0 %675 }
 0x42a   : > { %2426 = vpow2.f32 %v694_v56  ;;  %v702_v59 = vmul.f32 1.442695, %v687_v57  ;;  %v686_v60 = vsub.f32 %v2828_v2, %v676_v58 }
 0x42b   : > { %v673_v39 = vpop.xlane.xlu1 %672 }
 0x42c   : > { %v700_v61 = vmul.f32 1.442695, %v686_v60  ;;  %v685_v62 = vsub.f32 %v2836_v49, %v673_v39  ;;  %2428 = vpow2.f32 %v702_v59 }
 0x42d   : > { %v670_v63 = vpop.xlane.xlu0 %669 }
 0x42e   : > { %2430 = vpow2.f32 %v700_v61  ;;  %v698_v1 = vmul.f32 1.442695, %v685_v62  ;;  %v684_v38 = vsub.f32 %v2830_v3, %v670_v63 }
 0x42f   : > { %v2904_v4 = vpop.eup %2420 }
 0x430   : > { %v2906_v48 = vpop.eup %2422  ;;  %v696_v5 = vmul.f32 1.442695, %v684_v38  ;;  %2432 = vpow2.f32 %v698_v1 }
 0x431   : > { %v728_v0 = vpack.c.bf16 %v2904_v4, %v2906_v48  ;;  %v2910_v2 = vpop.eup %2424 }
 0x432   : > { %2434 = vpow2.f32 %v696_v5 }
 0x433   : > { %2168 = vmatprep.mubr.msk.bf16.mxu0 %vm263_vm0, %v728_v0 }
 0x434   : > { %v2913_v49 = vpop.eup %2426 }
 0x435   : > { %v729_v9 = vpack.c.bf16 %v2913_v49, %v2910_v2 }
 0x436   : > { %v2917_v3 = vpop.eup %2428 }
 0x437   : > { %2169 = vmatmul.mubr.msk.bf16.vlgmr.msra.gmra.mrb[16].mxu0 %vm263_vm0, %v729_v9 }
 0x438   : > { %v2920_v10 = vpop.eup %2430  ;;  %2193 = vmatpush3.bf16.msra.mxu0 %v2794_v53 }
 0x439   : > { %2194 = vmatprep.subr.bf16.mxu0 %v1017_v41  ;;  %v731_v14 = vpack.c.bf16 %v2917_v3, %v2920_v10 }
 0x43a   : > { %v2925_v19 = vpop.eup %2432 }
 0x43c   : > { %v2927_v22 = vpop.eup %2434  ;;  %2195 = vmatpush3.bf16.msra.mxu0 %v1017_v41 }
 0x43d   : > { %2196 = vmatprep.subr.bf16.mxu0 %v1019_v42  ;;  %v942_v23 = vpop.xlane.xlu0 %941  ;;  %v730_v31 = vpack.c.bf16 %v2925_v19, %v2927_v22 }
 0x43e   : > { %v960_v34 = vsub.f32 %v2846_v11, %v942_v23 }
 0x43f   : > { %v945_v36 = vpop.xlane.xlu1 %944  ;;  %2172 = vmatprep.mubr.msk.bf16.mxu0 %vm263_vm0, %v730_v31 }
 0x440   : > { %v970_v53 = vmul.f32 1.442695, %v960_v34  ;;  %v961_v40 = vsub.f32 %v2852_v17, %v945_v36  ;;  %2197 = vmatpush3.bf16.msra.mxu0 %v1019_v42 }
 0x441   : > { %2173 = vmatmul.mubr.msk.bf16.gmra.mrb[20].mxu0 %vm263_vm0, %v731_v14  ;;  %2198 = vmatprep.subr.bf16.mxu0 %v2894_v43  ;;  %v936_v44 = vpop.xlane.xlu0 %935 }
 0x442   : > { %v972_v41 = vmul.f32 1.442695, %v961_v40  ;;  %v958_v45 = vsub.f32 %v2848_v12, %v936_v44  ;;  %2436 = vpow2.f32 %v970_v53 }
 0x443   : > { %v939_v28 = vpop.xlane.xlu1 %938 }
 0x444   : > { %2438 = vpow2.f32 %v972_v41  ;;  %v966_v46 = vmul.f32 1.442695, %v958_v45  ;;  %v959_v11 = vsub.f32 %v2854_v18, %v939_v28  ;;  %2199 = vmatpush3.bf16.msra.mxu0 %v2894_v43 }
 0x445   : > { %v954_v47 = vpop.xlane.xlu0 %953 }
 0x446   : > { %v968_v50 = vmul.f32 1.442695, %v959_v11  ;;  %2440 = vpow2.f32 %v966_v46  ;;  %v964_v17 = vsub.f32 %v2862_v25, %v954_v47 }
 0x447   : > { %v1130_v58 = vpop.permute.xlu1 %1129 }
 0x448   : > { %2442 = vpow2.f32 %v968_v50  ;;  %v978_v52 = vmul.f32 1.442695, %v964_v17  ;;  %v1151_v63 = vsel %vm566_vm1, %v1130_v58, 0 }
 0x449   : > { %v948_v42 = vpop.xlane.xlu0 %947 }
 0x44a   : > { %2444 = vpow2.f32 %v978_v52  ;;  %v962_v5 = vsub.f32 %v2864_v30, %v948_v42 }
 0x44b   : > { %v1132_v1 = vpop.permute.xlu1 %1131 }
 0x44c   : > { %v2940_v51 = vpop.eup %2436  ;;  %v1154_v38 = vsel %vm566_vm1, %v1132_v1, 0  ;;  %v974_v0 = vmul.f32 1.442695, %v962_v5 }
 0x44d   : > { %v957_v21 = vpop.xlane.xlu0 %956 }
 0x44e   : > { %v2942_v12 = vpop.eup %2438  ;;  %v965_v54 = vsub.f32 %v2868_v32, %v957_v21 }
 0x44f   : > { %v1007_v18 = vpack.c.bf16 %v2942_v12, %v2940_v51 }
 0x450   : > { %v980_v29 = vmul.f32 1.442695, %v965_v54  ;;  %v2947_v43 = vpop.eup %2440 }
 0x451   : > { %v1128_v55 = vpop.permute.xlu0 %1127 }
 0x452   : > { %v2949_v56 = vpop.eup %2442  ;;  %2446 = vpow2.f32 %v980_v29  ;;  %2304 = vmatprep.subr.msk.bf16.mxu0 %vm566_vm1, %v1128_v55  ;;  %v1148_v32 = vsel %vm566_vm1, %v1128_v55, 0 }
 0x453   : > { %v1006_v25 = vpack.c.bf16 %v2949_v56, %v2947_v43  ;;  %2448 = vpow2.f32 %v974_v0 }
 0x454   : > { %v2958_v60 = vpop.eup %2444 }
 0x455   : > { %2200 = vmatprep.mubr.msk.bf16.mxu0 %vm263_vm0, %v1006_v25  ;;  %v1120_v57 = vpop.permute.xlu0 %1119 }
 0x456   : > { %2201 = vmatmul.mubr.msk.bf16.vlgmr.msra.gmra.mrb[24].mxu0 %vm263_vm0, %v1007_v18 }
 0x457   : > { %2209 = vmatpush3.bf16.xpose.msra.mxu0 %v1148_v32 }
 0x458   : > { %2305 = vmatprep.subr.msk.bf16.mxu0 %vm566_vm1, %v1130_v58 }
 0x459   : > { %v1124_v59 = vpop.permute.xlu0 %1123 }
 0x45c   : > { %v2960_v39 = vpop.eup %2446 }
 0x45d   : > { %v1301_v61 = vpop.permute.xlu0 %1300  ;;  %v1009_v62 = vpack.c.bf16 %v2960_v39, %v2958_v60  ;;  %v2971_v40 = vpop.eup %2448 }
 0x45e   : > { %2224 = vmatprep.subr.bf16.mxu1 %v1301_v61 }
 0x45f   : > { %2211 = vmatpush3.bf16.xpose.msra.mxu0 %v1151_v63  ;;  %2225 = vmatpush3.bf16.msra.mxu1 %v1301_v61 }
 0x460   : > { %2306 = vmatprep.subr.msk.bf16.mxu0 %vm566_vm1, %v1132_v1 }
 0x467   : > { %2213 = vmatpush3.bf16.xpose.msra.mxu0 %v1154_v38 }
 0x47c   : > { %v951_v9 = vpop.xlane.xlu1 %950 }
 0x47d   : > { %v963_v14 = vsub.f32 %v2870_v33, %v951_v9 }
 0x47f   : > { %v976_v23 = vmul.f32 1.442695, %v963_v14 }
 0x480   : > { %v1134_v31 = vpop.permute.xlu1 %1133 }
 0x481   : > { %2450 = vpow2.f32 %v976_v23  ;;  %v1157_v34 = vsel %vm566_vm1, %v1134_v31, 0  ;;  %2307 = vmatprep.subr.msk.bf16.mxu0 %vm566_vm1, %v1134_v31 }
 0x482   : > { %2215 = vmatpush3.bf16.xpose.msra.mxu0 %v1157_v34 }
 0x484   : > { %v1122_v36 = vpop.permute.xlu1 %1121 }
 0x488   : > { %v1126_v53 = vpop.permute.xlu1 %1125 }
 0x48b   : > { %v2973_v44 = vpop.eup %2450 }
 0x48c   : > { %v1303_v30 = vpop.permute.xlu1 %1302  ;;  %v1008_v41 = vpack.c.bf16 %v2973_v44, %v2971_v40 }
 0x48d   : > { %2226 = vmatprep.subr.bf16.mxu1 %v1303_v30 }
 0x48e   : > { %2204 = vmatprep.mubr.msk.bf16.mxu0 %vm263_vm0, %v1008_v41  ;;  %2227 = vmatpush3.bf16.msra.mxu1 %v1303_v30 }
 0x48f   : > { %2205 = vmatmul.mubr.msk.bf16.gmra.mrb[28].mxu0 %vm263_vm0, %v1009_v62 }
 0x490   : > { %v1305_v33 = vpop.permute.xlu1 %1304  ;;  %2216 = vmatprep.mubr.msk.bf16.mxu0 %vm566_vm1, %v1120_v57 }
 0x491   : > { %2228 = vmatprep.subr.bf16.mxu1 %v1305_v33 }
 0x492   : > { %2229 = vmatpush3.bf16.msra.mxu1 %v1305_v33 }
 0x494   : > { %v1307_v45 = vpop.permute.xlu1 %1306 }
 0x495   : > { %2230 = vmatprep.subr.bf16.mxu1 %v1307_v45 }
 0x496   : > { %2231 = vmatpush3.bf16.msra.mxu1 %v1307_v45 }
 0x497   : > { %2217 = vmatmul.mubr.msk.bf16.vlgmr.msra.gmra.mrb[32].mxu0 %vm566_vm1, %v1122_v36 }
 0x498   : > { %2220 = vmatprep.mubr.msk.bf16.mxu0 %vm566_vm1, %v1124_v59 }
 0x49f   : > { %2221 = vmatmul.mubr.msk.bf16.gmra.mrb[36].mxu0 %vm566_vm1, %v1126_v53 }
 0x50a   : > { %v2983_v28 = vpop.f32.mrb[16].mxu0 }
 0x50b   : > { %v2985_v46 = vpop.f32.mrb[17].mxu0 }
 0x50c   : > { %v2987_v11 = vpop.f32.mrb[18].mxu0 }
 0x50d   : > { %v2989_v47 = vpop.f32.mrb[19].mxu0 }
 0x514   : > { %v2991_v50 = vpop.f32.mrb[20].mxu0 }
 0x515   : > { %v2993_v17 = vpop.f32.mrb[21].mxu0 }
 0x516   : > { %v2995_v42 = vpop.f32.mrb[22].mxu0 }
 0x517   : > { %v2997_v52 = vpop.f32.mrb[23].mxu0 }
 0x529   : > { %v2999_v21 = vpop.f32.mrb[24].mxu0 }
 0x52a   : > { %v3001_v54 = vpop.f32.mrb[25].mxu0 }
 0x52b   : > { %v3003_v18 = vpop.f32.mrb[26].mxu0 }
 0x52c   : > { %v3005_v29 = vpop.f32.mrb[27].mxu0 }
 0x562   : > { %v3007_v55 = vpop.f32.mrb[28].mxu0 }
 0x563   : > { %v3009_v25 = vpop.f32.mrb[29].mxu0 }
 0x564   : > { %v3011_v57 = vpop.f32.mrb[30].mxu0 }
 0x565   : > { %v3013_v32 = vpop.f32.mrb[31].mxu0 }
 0x56a   : > { %v2218_v58 = vpop.f32.mrb[32].mxu0 }
 0x56b   : > { %v1193_v59 = vpop.f32.mrb[33].mxu0  ;;  %v1230_v61 = vsel %vm263_vm0, %v2218_v58, -inf }
 0x56c   : > { %1231 = vmax.xlane.f32.xlu0 %v1230_v61  ;;  %v2219_v62 = vpop.f32.mrb[34].mxu0  ;;  %v1224_v38 = vsel %vm263_vm0, %v1193_v59, -inf }
 0x56d   : > { %v1196_v63 = vpop.f32.mrb[35].mxu0  ;;  %v1233_v9 = vsel %vm263_vm0, %v2219_v62, -inf }
 0x56e   : > { %v1227_v1 = vsel %vm263_vm0, %v1196_v63, -inf }
 0x56f   : > { %1228 = vmax.xlane.f32.xlu1 %v1227_v1 }
 0x570   : > { %1225 = vmax.xlane.f32.xlu0 %v1224_v38 }
 0x572   : > { %v2222_v5 = vpop.f32.mrb[36].mxu0 }
 0x573   : > { %v3018_v0 = vpop.f32.mrb[37].mxu0  ;;  %v1242_v31 = vsel %vm263_vm0, %v2222_v5, -inf }
 0x574   : > { %1234 = vmax.xlane.f32.xlu0 %v1233_v9  ;;  %v2223_v14 = vpop.f32.mrb[38].mxu0  ;;  %v1236_v34 = vsel %vm263_vm0, %v3018_v0, -inf }
 0x575   : > { %v3021_v23 = vpop.f32.mrb[39].mxu0  ;;  %v1245_v36 = vsel %vm263_vm0, %v2223_v14, -inf }
 0x576   : > { %v1239_v53 = vsel %vm263_vm0, %v3021_v23, -inf }
 0x578   : > { %1243 = vmax.xlane.f32.xlu0 %v1242_v31 }
 0x57c   : > { %1237 = vmax.xlane.f32.xlu0 %v1236_v34 }
 0x580   : > { %1415 = vrot.lane.b32.xlu1 %v2741_v13, %s2570_s8  ;;  %1246 = vmax.xlane.f32.xlu0 %v1245_v36 }
 0x584   : > { %1417 = vrot.lane.b32.xlu1 %v2751_v24, %s2570_s8 }
 0x596   : > { %1413 = vrot.lane.b32.xlu0 %v2727_v6, %s2570_s8 }
 0x59a   : > { %1405 = vrot.lane.b32.xlu0 %v2731_v8, %s2571_s9 }
 0x59e   : > { %1409 = vrot.lane.b32.xlu0 %v2755_v27, %s2571_s9 }
 0x5a8   : > { %1240 = vmax.xlane.f32.xlu1 %v1239_v53 }
 0x5b9   : > { %1419 = vrot.lane.b32.xlu1 %v2764_v35, %s2570_s8 }
 0x5bd   : > { %1407 = vrot.lane.b32.xlu1 %v2745_v16, %s2571_s9 }
 0x5c1   : > { %1411 = vrot.lane.b32.xlu1 %v2768_v37, %s2571_s9 }
 0x5f9   : > { %v1232_v6 = vpop.xlane.xlu0 %1231 }
 0x5fa   : > { %v1250_v24 = vsub.f32 %v2218_v58, %v1232_v6 }
 0x5fc   : > { %v1229_v13 = vpop.xlane.xlu1 %1228  ;;  %v1260_v45 = vmul.f32 1.442695, %v1250_v24 }
 0x5fd   : > { %v1249_v8 = vsub.f32 %v1196_v63, %v1229_v13  ;;  %v1226_v30 = vpop.xlane.xlu0 %1225 }
 0x5fe   : > { %v1248_v41 = vsub.f32 %v1193_v59, %v1226_v30 }
 0x5ff   : > { %v1258_v27 = vmul.f32 1.442695, %v1249_v8 }
 0x600   : > { %v1256_v33 = vmul.f32 1.442695, %v1248_v41 }
 0x601   : > { %2452 = vpow2.f32 %v1258_v27  ;;  %v1235_v61 = vpop.xlane.xlu0 %1234 }
 0x602   : > { %2454 = vpow2.f32 %v1256_v33  ;;  %v1251_v1 = vsub.f32 %v2219_v62, %v1235_v61 }
 0x603   : > { %2456 = vpow2.f32 %v1260_v45 }
 0x604   : > { %v1262_v35 = vmul.f32 1.442695, %v1251_v1 }
 0x605   : > { %v1244_v38 = vpop.xlane.xlu0 %1243 }
 0x606   : > { %2458 = vpow2.f32 %v1262_v35  ;;  %v1254_v16 = vsub.f32 %v2222_v5, %v1244_v38 }
 0x608   : > { %v1268_v58 = vmul.f32 1.442695, %v1254_v16 }
 0x609   : > { %v1238_v9 = vpop.xlane.xlu0 %1237 }
 0x60a   : > { %2460 = vpow2.f32 %v1268_v58  ;;  %v1252_v45 = vsub.f32 %v3018_v0, %v1238_v9 }
 0x60b   : > { %v3045_v37 = vpop.eup %2452 }
 0x60c   : > { %v3047_v31 = vpop.eup %2454  ;;  %v1264_v61 = vmul.f32 1.442695, %v1252_v45 }
 0x60d   : > { %v1247_v63 = vpop.xlane.xlu0 %1246  ;;  %v1296_v59 = vpack.c.bf16 %v3045_v37, %v3047_v31  ;;  %v3051_v36 = vpop.eup %2456 }
 0x60e   : > { %v1255_v34 = vsub.f32 %v2223_v14, %v1247_v63  ;;  %v1416_v14 = vpop.permute.xlu1 %1415 }
 0x60f   : > { %2232 = vmatprep.mubr.msk.bf16.mxu1 %vm263_vm0, %v1296_v59  ;;  %v1437_v8 = vsel %vm566_vm1, %v1416_v14, 0 }
 0x610   : > { %v3054_v62 = vpop.eup %2458  ;;  %v1270_v53 = vmul.f32 1.442695, %v1255_v34 }
 0x611   : > { %v1297_v5 = vpack.c.bf16 %v3054_v62, %v3051_v36  ;;  %v1414_v6 = vpop.permute.xlu0 %1413 }
 0x612   : > { %2462 = vpow2.f32 %v1270_v53  ;;  %v1434_v13 = vsel %vm566_vm1, %v1414_v6, 0  ;;  %2308 = vmatprep.subr.msk.bf16.mxu1 %vm566_vm1, %v1414_v6  ;;  %v1418_v41 = vpop.permute.xlu1 %1417 }
 0x613   : > { %2233 = vmatmul.mubr.msk.bf16.vlgmr.msra.gmra.mrb[16].mxu1 %vm263_vm0, %v1297_v5  ;;  %v1440_v33 = vsel %vm566_vm1, %v1418_v41, 0  ;;  %2464 = vpow2.f32 %v1264_v61 }
 0x614   : > { %2241 = vmatpush3.bf16.xpose.msra.mxu1 %v1434_v13  ;;  %v3062_v24 = vpop.eup %2460 }
 0x615   : > { %2309 = vmatprep.subr.msk.bf16.mxu1 %vm566_vm1, %v1416_v14  ;;  %v1406_v0 = vpop.permute.xlu0 %1405 }
 0x619   : > { %v1410_v9 = vpop.permute.xlu0 %1409 }
 0x61c   : > { %v3065_v30 = vpop.eup %2462  ;;  %2243 = vmatpush3.bf16.xpose.msra.mxu1 %v1437_v8 }
 0x61d   : > { %2310 = vmatprep.subr.msk.bf16.mxu1 %vm566_vm1, %v1418_v41  ;;  %v1299_v27 = vpack.c.bf16 %v3065_v30, %v3062_v24  ;;  %v2465_v63 = vpop.eup %2464 }
 0x624   : > { %2245 = vmatpush3.bf16.xpose.msra.mxu1 %v1440_v33 }
 0x635   : > { %v1241_v1 = vpop.xlane.xlu1 %1240 }
 0x636   : > { %v1253_v35 = vsub.f32 %v3021_v23, %v1241_v1 }
 0x638   : > { %v1266_v38 = vmul.f32 1.442695, %v1253_v35 }
 0x639   : > { %v1420_v16 = vpop.permute.xlu1 %1419 }
 0x63a   : > { %2466 = vpow2.f32 %v1266_v38  ;;  %v1443_v58 = vsel %vm566_vm1, %v1420_v16, 0  ;;  %2311 = vmatprep.subr.msk.bf16.mxu1 %vm566_vm1, %v1420_v16 }
 0x63b   : > { %2247 = vmatpush3.bf16.xpose.msra.mxu1 %v1443_v58 }
 0x63d   : > { %v1408_v23 = vpop.permute.xlu1 %1407 }
 0x641   : > { %v1412_v53 = vpop.permute.xlu1 %1411 }
 0x644   : > { %v3075_v59 = vpop.eup %2466 }
 0x645   : > { %v1298_v34 = vpack.c.bf16 %v3075_v59, %v2465_v63 }
 0x647   : > { %2236 = vmatprep.mubr.msk.bf16.mxu1 %vm263_vm0, %v1298_v34 }
 0x648   : > { %2237 = vmatmul.mubr.msk.bf16.gmra.mrb[20].mxu1 %vm263_vm0, %v1299_v27 }
 0x649   : > { %2248 = vmatprep.mubr.msk.bf16.mxu1 %vm566_vm1, %v1406_v0 }
 0x650   : > { %2249 = vmatmul.mubr.msk.bf16.vlgmr.msra.gmra.mrb[24].mxu1 %vm566_vm1, %v1408_v23 }
 0x651   : > { %2252 = vmatprep.mubr.msk.bf16.mxu1 %vm566_vm1, %v1410_v9 }
 0x658   : > { %2253 = vmatmul.mubr.msk.bf16.gmra.mrb[28].mxu1 %vm566_vm1, %v1412_v53 }
 0x6e6   : > { %v3084_v5 = vpop.f32.mrb[16].mxu1 }
 0x6e7   : > { %v3086_v6 = vpop.f32.mrb[17].mxu1 }
 0x6e8   : > { %v3088_v13 = vpop.f32.mrb[18].mxu1 }
 0x6e9   : > { %v3090_v14 = vpop.f32.mrb[19].mxu1 }
 0x71b   : > { %v3092_v8 = vpop.f32.mrb[20].mxu1 }
 0x71c   : > { %v3094_v41 = vpop.f32.mrb[21].mxu1 }
 0x71d   : > { %v3096_v27 = vpop.f32.mrb[22].mxu1 }
 0x71e   : > { %v3098_v33 = vpop.f32.mrb[23].mxu1 }
 0x723   : > { %v2250_v45 = vpop.f32.mrb[24].mxu1 }
 0x724   : > { %v3100_v61 = vpop.f32.mrb[25].mxu1  ;;  %v1516_v1 = vsel %vm263_vm0, %v2250_v45, -inf }
 0x725   : > { %1517 = vmax.xlane.f32.xlu0 %v1516_v1  ;;  %v3103_v35 = vpop.f32.mrb[26].mxu1  ;;  %v1510_v58 = vsel %vm263_vm0, %v3100_v61, -inf }
 0x726   : > { %v3105_v38 = vpop.f32.mrb[27].mxu1  ;;  %v1519_v23 = vsel %vm263_vm0, %v3103_v35, -inf }
 0x727   : > { %v1513_v16 = vsel %vm263_vm0, %v3105_v38, -inf }
 0x728   : > { %1514 = vmax.xlane.f32.xlu1 %v1513_v16 }
 0x729   : > { %1511 = vmax.xlane.f32.xlu0 %v1510_v58 }
 0x72b   : > { %v3111_v34 = vpop.f32.mrb[28].mxu1 }
 0x72c   : > { %v3113_v0 = vpop.f32.mrb[29].mxu1  ;;  %v1528_v1 = vsel %vm263_vm0, %v3111_v34, -inf }
 0x72d   : > { %1520 = vmax.xlane.f32.xlu0 %v1519_v23  ;;  %v3117_v9 = vpop.f32.mrb[30].mxu1  ;;  %v1522_v16 = vsel %vm263_vm0, %v3113_v0, -inf }
 0x72e   : > { %v3119_v53 = vpop.f32.mrb[31].mxu1  ;;  %v1531_v58 = vsel %vm263_vm0, %v3117_v9, -inf }
 0x72f   : > { %v1525_v23 = vsel %vm263_vm0, %v3119_v53, -inf }
 0x731   : > { %1529 = vmax.xlane.f32.xlu0 %v1528_v1  ;;  %v982_v1 = vsel %vm263_vm0, %v2947_v43, 0.0  ;;  %v1272_v43 = vsel %vm263_vm0, %v3047_v31, 0.0  ;;  %v1003_v31 = vsel %vm263_vm0, %v2960_v39, 0.0 }
 0x735   : > { %1523 = vmax.xlane.f32.xlu0 %v1522_v16  ;;  %v1000_v16 = vsel %vm263_vm0, %v2958_v60, 0.0  ;;  %v991_v60 = vsel %vm263_vm0, %v2942_v12, 0.0  ;;  %v1293_v12 = vsel %vm263_vm0, %v3065_v30, 0.0 }
 0x739   : > { %1588 = vrot.lane.b32.xlu1 %v2743_v15, %s2571_s9  ;;  %v994_v15 = vsel %vm263_vm0, %v2971_v40, 0.0  ;;  %v1284_v40 = vsel %vm263_vm0, %v2465_v63, 0.0 }
 0x73d   : > { %1590 = vrot.lane.b32.xlu1 %v2753_v26, %s2571_s9  ;;  %v997_v26 = vsel %vm263_vm0, %v2973_v44, 0.0  ;;  %v1278_v44 = vsel %vm263_vm0, %v3051_v36, 0.0  ;;  %v1275_v36 = vsel %vm263_vm0, %v3045_v37, 0.0 }
 0x74b   : > { %1586 = vrot.lane.b32.xlu0 %v2729_v7, %s2571_s9  ;;  %v988_v7 = vsel %vm263_vm0, %v2940_v51, 0.0  ;;  %v1290_v51 = vsel %vm263_vm0, %v3062_v24, 0.0  ;;  %v1287_v24 = vsel %vm263_vm0, %v3075_v59, 0.0 }
 0x761   : > { %1532 = vmax.xlane.f32.xlu1 %v1531_v58 }
 0x765   : > { %1526 = vmax.xlane.f32.xlu1 %v1525_v23 }
 0x76a   : > { %983 = vadd.xlane.f32.xlu0 %v982_v1 }
 0x76e   : > { %995 = vadd.xlane.f32.xlu0 %v994_v15 }
 0x772   : > { %998 = vadd.xlane.f32.xlu0 %v997_v26 }
 0x776   : > { %989 = vadd.xlane.f32.xlu0 %v988_v7  ;;  %1592 = vrot.lane.b32.xlu1 %v2766_v20, %s2571_s9  ;;  %v985_v20 = vsel %vm263_vm0, %v2949_v56, 0.0  ;;  %v1281_v56 = vsel %vm263_vm0, %v3054_v62, 0.0 }
 0x77a   : > { %1001 = vadd.xlane.f32.xlu0 %v1000_v16 }
 0x77e   : > { %1273 = vadd.xlane.f32.xlu0 %v1272_v43 }
 0x782   : > { %1285 = vadd.xlane.f32.xlu0 %v1284_v40 }
 0x786   : > { %1279 = vadd.xlane.f32.xlu0 %v1278_v44 }
 0x78a   : > { %1291 = vadd.xlane.f32.xlu0 %v1290_v51 }
 0x79a   : > { %986 = vadd.xlane.f32.xlu1 %v985_v20 }
 0x79e   : > { %992 = vadd.xlane.f32.xlu1 %v991_v60 }
 0x7a2   : > { %1004 = vadd.xlane.f32.xlu1 %v1003_v31 }
 0x7a6   : > { %1276 = vadd.xlane.f32.xlu1 %v1275_v36 }
 0x7aa   : > { %1288 = vadd.xlane.f32.xlu1 %v1287_v24 }
 0x7ae   : > { %1282 = vadd.xlane.f32.xlu1 %v1281_v56 }
 0x7b2   : > { %1294 = vadd.xlane.f32.xlu1 %v1293_v12  ;;  %v1518_v63 = vpop.xlane.xlu0 %1517 }
 0x7b3   : > { %v1536_v58 = vsub.f32 %v2250_v45, %v1518_v63 }
 0x7b5   : > { %v1546_v39 = vmul.f32 1.442695, %v1536_v58  ;;  %v1515_v23 = vpop.xlane.xlu1 %1514 }
 0x7b6   : > { %v1535_v1 = vsub.f32 %v3105_v38, %v1515_v23  ;;  %v1512_v37 = vpop.xlane.xlu0 %1511 }
 0x7b7   : > { %2468 = vpow2.f32 %v1546_v39  ;;  %v1534_v15 = vsub.f32 %v3100_v61, %v1512_v37  ;;  %v704_v37 = vsel %vm263_vm0, %v2906_v48, 0.0 }
 0x7b8   : > { %v1544_v59 = vmul.f32 1.442695, %v1535_v1 }
 0x7b9   : > { %v1542_v26 = vmul.f32 1.442695, %v1534_v15  ;;  %v1589_v31 = vpop.permute.xlu1 %1588  ;;  %v716_v15 = vsel %vm263_vm0, %v2927_v22, 0.0 }
 0x7ba   : > { %2470 = vpow2.f32 %v1544_v59  ;;  %v1521_v7 = vpop.xlane.xlu0 %1520  ;;  %v710_v59 = vsel %vm263_vm0, %v2910_v2, 0.0 }
 0x7bb   : > { %2472 = vpow2.f32 %v1542_v26  ;;  %v1537_v62 = vsub.f32 %v3103_v35, %v1521_v7  ;;  %v722_v26 = vsel %vm263_vm0, %v2920_v10, 0.0 }
 0x7bd   : > { %v1548_v16 = vmul.f32 1.442695, %v1537_v62  ;;  %v1591_v12 = vpop.permute.xlu1 %1590 }
 0x7be   : > { %v1530_v30 = vpop.xlane.xlu0 %1529 }
 0x7bf   : > { %2474 = vpow2.f32 %v1548_v16  ;;  %v1540_v45 = vsub.f32 %v3111_v34, %v1530_v30 }
 0x7c1   : > { %v2469_v43 = vpop.eup %2468  ;;  %v1554_v20 = vmul.f32 1.442695, %v1540_v45 }
 0x7c2   : > { %v1524_v40 = vpop.xlane.xlu0 %1523  ;;  %v1564_v38 = vsel %vm263_vm0, %v2469_v43, 0.0 }
 0x7c3   : > { %v1538_v44 = vsub.f32 %v3113_v0, %v1524_v40  ;;  %1565 = vadd.xlane.f32.xlu0 %v1564_v38 }
 0x7c4   : > { %v2471_v61 = vpop.eup %2470 }
 0x7c5   : > { %v2473_v51 = vpop.eup %2472  ;;  %v1550_v60 = vmul.f32 1.442695, %v1538_v44  ;;  %v1561_v63 = vsel %vm263_vm0, %v2471_v61, 0.0 }
 0x7c6   : > { %v1587_v36 = vpop.permute.xlu0 %1586  ;;  %v1558_v35 = vsel %vm263_vm0, %v2473_v51, 0.0  ;;  %v1582_v24 = vpack.c.bf16 %v2471_v61, %v2473_v51 }
 0x7c7   : > { %2476 = vpow2.f32 %v1550_v60  ;;  %1559 = vadd.xlane.f32.xlu0 %v1558_v35  ;;  %2256 = vmatprep.subr.bf16.mxu0 %v1587_v36  ;;  %v707_v60 = vsel %vm263_vm0, %v2904_v4, 0.0 }
 0x7c8   : > { %2257 = vmatpush3.bf16.msra.mxu0 %v1587_v36  ;;  %2264 = vmatprep.mubr.msk.bf16.mxu0 %vm263_vm0, %v1582_v24  ;;  %2478 = vpow2.f32 %v1554_v20  ;;  %v719_v24 = vsel %vm263_vm0, %v2925_v19, 0.0 }
 0x7c9   : > { %v2475_v34 = vpop.eup %2474  ;;  %2258 = vmatprep.subr.bf16.mxu0 %v1589_v31 }
 0x7ca   : > { %v1583_v0 = vpack.c.bf16 %v2475_v34, %v2469_v43  ;;  %v1567_v56 = vsel %vm263_vm0, %v2475_v34, 0.0  ;;  %v713_v34 = vsel %vm263_vm0, %v2913_v49, 0.0 }
 0x7cb   : > { %1568 = vadd.xlane.f32.xlu1 %v1567_v56 }
 0x7cc   : > { %2259 = vmatpush3.bf16.msra.mxu0 %v1589_v31 }
 0x7cd   : > { %2260 = vmatprep.subr.bf16.mxu0 %v1591_v12 }
 0x7cf   : > { %1562 = vadd.xlane.f32.xlu1 %v1561_v63 }
 0x7d0   : > { %2261 = vmatpush3.bf16.msra.mxu0 %v1591_v12 }
 0x7d1   : > { %v2477_v58 = vpop.eup %2476 }
 0x7d2   : > { %v1570_v39 = vsel %vm263_vm0, %v2477_v58, 0.0  ;;  %v2479_v23 = vpop.eup %2478 }
 0x7d3   : > { %1571 = vadd.xlane.f32.xlu0 %v1570_v39  ;;  %v1576_v1 = vsel %vm263_vm0, %v2479_v23, 0.0 }
 0x7d7   : > { %1577 = vadd.xlane.f32.xlu0 %v1576_v1 }
 0x7db   : > { %705 = vadd.xlane.f32.xlu0 %v704_v37 }
 0x7df   : > { %717 = vadd.xlane.f32.xlu0 %v716_v15 }
 0x7e3   : > { %711 = vadd.xlane.f32.xlu0 %v710_v59 }
 0x7e7   : > { %723 = vadd.xlane.f32.xlu0 %v722_v26 }
 0x7ee   : > { %v1533_v7 = vpop.xlane.xlu1 %1532 }
 0x7ef   : > { %v1541_v62 = vsub.f32 %v3117_v9, %v1533_v7 }
 0x7f1   : > { %v1556_v16 = vmul.f32 1.442695, %v1541_v62 }
 0x7f2   : > { %v1527_v30 = vpop.xlane.xlu1 %1526 }
 0x7f3   : > { %2480 = vpow2.f32 %v1556_v16  ;;  %v1539_v48 = vsub.f32 %v3119_v53, %v1527_v30 }
 0x7f5   : > { %v1552_v43 = vmul.f32 1.442695, %v1539_v48 }
 0x7f6   : > { %v1593_v45 = vpop.permute.xlu1 %1592 }
 0x7f7   : > { %2482 = vpow2.f32 %v1552_v43  ;;  %2262 = vmatprep.subr.bf16.mxu0 %v1593_v45  ;;  %v984_v22 = vpop.xlane.xlu0 %983 }
 0x7f8   : > { %2263 = vmatpush3.bf16.msra.mxu0 %v1593_v45 }
 0x7fb   : > { %2265 = vmatmul.mubr.msk.bf16.vlgmr.msra.gmra.mrb[40].mxu0 %vm263_vm0, %v1583_v0  ;;  %v996_v2 = vpop.xlane.xlu0 %995  ;;  %v725_v0 = vsel %vm263_vm0, %v2917_v3, 0.0 }
 0x7fc   : > { %2484 = vrcp.f32 %v996_v2 }
 0x7fd   : > { %v2481_v40 = vpop.eup %2480 }
 0x7fe   : > { %v1585_v10 = vpack.c.bf16 %v2481_v40, %v2479_v23  ;;  %v1579_v53 = vsel %vm263_vm0, %v2481_v40, 0.0 }
 0x7ff   : > { %v999_v38 = vpop.xlane.xlu0 %998 }
 0x800   : > { %2486 = vrcp.f32 %v999_v38 }
 0x801   : > { %v2483_v9 = vpop.eup %2482  ;;  %2488 = vrcp.f32 %v984_v22 }
 0x802   : > { %v1573_v44 = vsel %vm263_vm0, %v2483_v9, 0.0  ;;  %v1584_v61 = vpack.c.bf16 %v2483_v9, %v2477_v58 }
 0x803   : > { %1574 = vadd.xlane.f32.xlu1 %v1573_v44  ;;  %v990_v56 = vpop.xlane.xlu0 %989 }
 0x804   : > { %2268 = vmatprep.mubr.msk.bf16.mxu0 %vm263_vm0, %v1584_v61 }
 0x805   : > { %2269 = vmatmul.mubr.msk.bf16.gmra.mrb[44].mxu0 %vm263_vm0, %v1585_v10 }
 0x806   : > { %v2485_v51 = vpop.eup %2484 }
 0x807   : > { %1580 = vadd.xlane.f32.xlu1 %v1579_v53  ;;  %v1115_v31 = vmul.f32 %v2485_v51, %v3009_v25  ;;  %v1002_v4 = vpop.xlane.xlu0 %1001 }
 0x80a   : > { %v2487_v20 = vpop.eup %2486 }
 0x80b   : > { %708 = vadd.xlane.f32.xlu1 %v707_v60  ;;  %v1116_v36 = vmul.f32 %v2487_v20, %v3013_v32  ;;  %v1274_v25 = vpop.xlane.xlu0 %1273  ;;  %v2489_v49 = vpop.eup %2488 }
 0x80c   : > { %v1111_v39 = vmul.f32 %v2489_v49, %v3001_v54 }
 0x80d   : > { %v2333_v35 = vpack.i.bf16 %v1116_v36, %v1115_v31 }
 0x80f   : > { %720 = vadd.xlane.f32.xlu1 %v719_v24  ;;  %v1286_v19 = vpop.xlane.xlu0 %1285 }
 0x813   : > { %714 = vadd.xlane.f32.xlu1 %v713_v34  ;;  %v1280_v37 = vpop.xlane.xlu0 %1279 }
 0x817   : > { %726 = vadd.xlane.f32.xlu1 %v725_v0  ;;  %v1292_v54 = vpop.xlane.xlu0 %1291 }
 0x827   : > { %v987_v12 = vpop.xlane.xlu1 %986 }
 0x828   : > { %2490 = vrcp.f32 %v987_v12  ;;  %2334 = vrot.lane.b32.xlu1 %v2333_v35, %s2570_s8 }
 0x829   : > { %2492 = vrcp.f32 %v990_v56  ;;  %v2402_v56 = vld [vmem:[%s3328_s4 + $0x10] sm:$0xff]  }
 0x82b   : > { %v993_v32 = vpop.xlane.xlu1 %992 }
 0x82c   : > { %2494 = vrcp.f32 %v993_v32 }
 0x82d   : > { %2496 = vrcp.f32 %v1002_v4 }
 0x82f   : > { %v1005_v63 = vpop.xlane.xlu1 %1004 }
 0x830   : > { %2498 = vrcp.f32 %v1005_v63 }
 0x831   : > { %2500 = vrcp.f32 %v1274_v25  ;;  %v2403_v25 = vld [vmem:[%s3328_s4 + $0x18] sm:$0xff]  }
 0x832   : > { %v2491_v58 = vpop.eup %2490 }
 0x833   : > { %v1277_v3 = vpop.xlane.xlu1 %1276  ;;  %v1112_v23 = vmul.f32 %v2491_v58, %v3005_v29  ;;  %v2493_v1 = vpop.eup %2492 }
 0x834   : > { %2502 = vrcp.f32 %v1277_v3  ;;  %v1113_v7 = vmul.f32 %v2493_v1, %v2999_v21 }
 0x835   : > { %v2328_v15 = vpack.i.bf16 %v1112_v23, %v1111_v39  ;;  %2504 = vrcp.f32 %v1286_v19 }
 0x836   : > { %v2495_v59 = vpop.eup %2494 }
 0x837   : > { %v1289_v26 = vpop.xlane.xlu1 %1288  ;;  %2329 = vrot.lane.b32.xlu0 %v2328_v15, %s2570_s8  ;;  %v1114_v62 = vmul.f32 %v2495_v59, %v3003_v18  ;;  %v2497_v16 = vpop.eup %2496 }
 0x838   : > { %2506 = vrcp.f32 %v1289_v26  ;;  %v1117_v43 = vmul.f32 %v2497_v16, %v3007_v55 }
 0x839   : > { %v2338_v30 = vpack.i.bf16 %v1114_v62, %v1113_v7  ;;  %2508 = vrcp.f32 %v1280_v37 }
 0x83a   : > { %v2499_v48 = vpop.eup %2498 }
 0x83b   : > { %v1283_v29 = vpop.xlane.xlu1 %1282  ;;  %2339 = vrot.lane.b32.xlu1 %v2338_v30, %s2570_s8  ;;  %v1118_v45 = vmul.f32 %v2499_v48, %v3011_v57  ;;  %v2501_v22 = vpop.eup %2500 }
 0x83c   : > { %2510 = vrcp.f32 %v1283_v29  ;;  %v1397_v18 = vmul.f32 %v2501_v22, %v3086_v6 }
 0x83d   : > { %v2343_v2 = vpack.i.bf16 %v1118_v45, %v1117_v43  ;;  %2512 = vrcp.f32 %v1292_v54 }
 0x83e   : > { %v2503_v40 = vpop.eup %2502 }
 0x83f   : > { %v1295_v21 = vpop.xlane.xlu1 %1294  ;;  %2344 = vrot.lane.b32.xlu1 %v2343_v2, %s2570_s8  ;;  %v1398_v10 = vmul.f32 %v2503_v40, %v3090_v14  ;;  %v2505_v38 = vpop.eup %2504 }
 0x840   : > { %2514 = vrcp.f32 %v1295_v21  ;;  %v1401_v55 = vmul.f32 %v2505_v38, %v3094_v41 }
 0x841   : > { %v2348_v9 = vpack.i.bf16 %v1398_v10, %v1397_v18 }
 0x842   : > { %v2507_v44 = vpop.eup %2506 }
 0x843   : > { %2349 = vrot.lane.b32.xlu0 %v2348_v9, %s2568_s30  ;;  %v1402_v57 = vmul.f32 %v2507_v44, %v3098_v33  ;;  %v2509_v61 = vpop.eup %2508  ;;  %v2400_v33 = vld [vmem:[%s3328_s4] sm:$0xff]  }
 0x844   : > { %v1399_v20 = vmul.f32 %v2509_v61, %v3084_v5  ;;  %v2401_v5 = vld [vmem:[%s3328_s4 + $0x8] sm:$0xff]   ;;  %2272 = vmatprep.subr.bf16.mxu0 %v2400_v33  ;;  %2288 = vmatprep.subr.bf16.mxu1 %v2400_v33 }
 0x845   : > { %v2353_v53 = vpack.i.bf16 %v1402_v57, %v1401_v55  ;;  %2273 = vmatpush3.bf16.msra.mxu0 %v2400_v33  ;;  %2292 = vmatpush3.bf16.msra.mxu1 %v2400_v33 }
 0x846   : > { %v2511_v51 = vpop.eup %2510  ;;  %2274 = vmatprep.subr.bf16.mxu0 %v2401_v5  ;;  %2289 = vmatprep.subr.bf16.mxu1 %v2401_v5 }
 0x847   : > { %2354 = vrot.lane.b32.xlu1 %v2353_v53, %s2568_s30  ;;  %v1400_v6 = vmul.f32 %v2511_v51, %v3088_v13  ;;  %v2513_v14 = vpop.eup %2512 }
 0x848   : > { %v1403_v36 = vmul.f32 %v2513_v14, %v3092_v8 }
 0x849   : > { %v2358_v60 = vpack.i.bf16 %v1400_v6, %v1399_v20  ;;  %2275 = vmatpush3.bf16.msra.mxu0 %v2401_v5  ;;  %2293 = vmatpush3.bf16.msra.mxu1 %v2401_v5 }
 0x84a   : > { %v2515_v31 = vpop.eup %2514  ;;  %2276 = vmatprep.subr.bf16.mxu0 %v2402_v56  ;;  %2290 = vmatprep.subr.bf16.mxu1 %v2402_v56 }
 0x84b   : > { %2359 = vrot.lane.b32.xlu0 %v2358_v60, %s2568_s30  ;;  %v1404_v41 = vmul.f32 %v2515_v31, %v3096_v27 }
 0x84d   : > { %v2363_v35 = vpack.i.bf16 %v1404_v41, %v1403_v36  ;;  %2277 = vmatpush3.bf16.msra.mxu0 %v2402_v56  ;;  %2294 = vmatpush3.bf16.msra.mxu1 %v2402_v56 }
 0x84e   : > { %2278 = vmatprep.subr.bf16.mxu0 %v2403_v25  ;;  %2291 = vmatprep.subr.bf16.mxu1 %v2403_v25 }
 0x84f   : > { %2364 = vrot.lane.b32.xlu1 %v2363_v35, %s2568_s30 }
 0x850   : > { %v1566_v13 = vpop.xlane.xlu0 %1565 }
 0x851   : > { %2516 = vrcp.f32 %v1566_v13  ;;  %2279 = vmatpush3.bf16.msra.mxu0 %v2403_v25  ;;  %2295 = vmatpush3.bf16.msra.mxu1 %v2403_v25 }
 0x854   : > { %v1560_v27 = vpop.xlane.xlu0 %1559 }
 0x855   : > { %2518 = vrcp.f32 %v1560_v27 }
 0x858   : > { %v1569_v8 = vpop.xlane.xlu1 %1568 }
 0x859   : > { %2520 = vrcp.f32 %v1569_v8 }
 0x85b   : > { %v2517_v32 = vpop.eup %2516 }
 0x85c   : > { %v1563_v24 = vpop.xlane.xlu1 %1562 }
 0x85d   : > { %2522 = vrcp.f32 %v1563_v24 }
 0x85f   : > { %v2519_v63 = vpop.eup %2518 }
 0x860   : > { %v1572_v34 = vpop.xlane.xlu0 %1571 }
 0x861   : > { %2524 = vrcp.f32 %v1572_v34 }
 0x863   : > { %v2521_v58 = vpop.eup %2520 }
 0x864   : > { %v1578_v4 = vpop.xlane.xlu0 %1577 }
 0x865   : > { %2526 = vrcp.f32 %v1578_v4 }
 0x867   : > { %v2523_v39 = vpop.eup %2522 }
 0x868   : > { %v706_v9 = vpop.xlane.xlu0 %705 }
 0x86b   : > { %v2525_v62 = vpop.eup %2524 }
 0x86c   : > { %v718_v55 = vpop.xlane.xlu0 %717 }
 0x86f   : > { %v2527_v30 = vpop.eup %2526 }
 0x870   : > { %v712_v61 = vpop.xlane.xlu0 %711 }
 0x874   : > { %v724_v51 = vpop.xlane.xlu0 %723 }
 0x890   : > { %v1575_v0 = vpop.xlane.xlu1 %1574 }
 0x894   : > { %v1581_v12 = vpop.xlane.xlu1 %1580 }
 0x895   : > { %2528 = vrcp.f32 %v1581_v12 }
 0x896   : > { %2530 = vrcp.f32 %v1575_v0 }
 0x897   : > { %2532 = vrcp.f32 %v706_v9 }
 0x898   : > { %v709_v38 = vpop.xlane.xlu1 %708 }
 0x899   : > { %2534 = vrcp.f32 %v709_v38 }
 0x89a   : > { %2536 = vrcp.f32 %v712_v61 }
 0x89c   : > { %v721_v44 = vpop.xlane.xlu1 %720 }
 0x89f   : > { %v2529_v54 = vpop.eup %2528 }
 0x8a0   : > { %v2531_v43 = vpop.eup %2530  ;;  %v715_v57 = vpop.xlane.xlu1 %714 }
 0x8a1   : > { %2538 = vrcp.f32 %v715_v57  ;;  %v2533_v31 = vpop.eup %2532 }
 0x8a2   : > { %2540 = vrcp.f32 %v721_v44  ;;  %v817_v5 = vmul.f32 %v2533_v31, %v2985_v46 }
 0x8a3   : > { %v2535_v36 = vpop.eup %2534  ;;  %2542 = vrcp.f32 %v718_v55 }
 0x8a4   : > { %v727_v53 = vpop.xlane.xlu1 %726  ;;  %v818_v13 = vmul.f32 %v2535_v36, %v2989_v47  ;;  %v2537_v34 = vpop.eup %2536  ;;  %2544 = vrcp.f32 %v724_v51 }
 0x8a5   : > { %2546 = vrcp.f32 %v727_v53 }
 0x8a8   : > { %v3243_v20 = vpop.permute.xlu1 %2334 }
 0x8a9   : > { %v2330_v6 = vpop.permute.xlu0 %2329 }
 0x8aa   : > { %v2332_v41 = vunpack.i.h.bf16 %v2330_v6  ;;  %v2331_v35 = vunpack.i.l.bf16 %v2330_v6 }
 0x8ab   : > { %v2539_v0 = vpop.eup %2538 }
 0x8ac   : > { %v1788_v56 = vsel %vm566_vm1, %v818_v13, %v2332_v41  ;;  %v1787_v4 = vsel %vm566_vm1, %v817_v5, %v2331_v35  ;;  %v2541_v25 = vpop.eup %2540 }
 0x8ad   : > { %v2340_v14 = vpop.permute.xlu1 %2339 }
 0x8ae   : > { %v2341_v46 = vunpack.i.l.bf16 %v2340_v14 }
 0x8b1   : > { %v3247_v8 = vpop.permute.xlu1 %2344 }
 0x8b2   : > { %v2347_v57 = vunpack.i.h.bf16 %v3247_v8  ;;  %v2346_v61 = vunpack.i.l.bf16 %v3247_v8 }
 0x8b5   : > { %v2350_v60 = vpop.permute.xlu0 %2349 }
 0x8b6   : > { %v2352_v27 = vunpack.i.h.bf16 %v2350_v60  ;;  %v2351_v24 = vunpack.i.l.bf16 %v2350_v60 }
 0x8bd   : > { %v2360_v33 = vpop.permute.xlu0 %2359 }
 0x8ce   : > { %v2266_v19 = vpop.f32.mrb[40].mxu0 }
 0x8cf   : > { %v1644_v49 = vpop.f32.mrb[41].mxu0  ;;  %v1685_v23 = vmul.f32 %v2517_v32, %v2266_v19  ;;  %v2342_v32 = vunpack.i.h.bf16 %v2340_v14 }
 0x8d0   : > { %v2267_v3 = vpop.f32.mrb[42].mxu0  ;;  %v1683_v15 = vmul.f32 %v2519_v63, %v1644_v49  ;;  %v1796_v63 = vsel %vm1795_vm2, %v1787_v4, %v2351_v24  ;;  %v1797_v49 = vsel %vm1795_vm2, %v1788_v56, %v2352_v27  ;;  %v2059_v56 = vld [vmem:[%s3329_s5] ss:$0 sm:$0xff] }
 0x8d1   : > { %v1686_v1 = vmul.f32 %v2521_v58, %v2267_v3  ;;  %v1647_v37 = vpop.f32.mrb[43].mxu0  ;;  %v2355_v58 = vpop.permute.xlu1 %2354  ;;  %v2362_v3 = vunpack.i.h.bf16 %v2360_v33 }
 0x8d2   : > { %v1684_v59 = vmul.f32 %v2523_v39, %v1647_v37  ;;  %v2361_v39 = vunpack.i.l.bf16 %v2360_v33 }
 0x8d3   : > { %v2378_v26 = vpack.i.bf16 %v1686_v1, %v1685_v23  ;;  %v820_v23 = vmul.f32 %v2539_v0, %v2987_v11  ;;  %v819_v1 = vmul.f32 %v2537_v34, %v2983_v28  ;;  %v2336_v11 = vunpack.i.l.bf16 %v3243_v20 }
 0x8d4   : > { %v2368_v7 = vpack.i.bf16 %v1684_v59, %v1683_v15  ;;  %v822_v59 = vmul.f32 %v2541_v25, %v2997_v52 }
 0x8d6   : > { %2369 = vrot.lane.b32.xlu0 %v2368_v7, %s2566_s28 }
 0x8d8   : > { %v2270_v16 = vpop.f32.mrb[44].mxu0 }
 0x8d9   : > { %v1660_v48 = vpop.f32.mrb[45].mxu0  ;;  %v1689_v45 = vmul.f32 %v2527_v30, %v2270_v16  ;;  %v1790_v16 = vsel %vm566_vm1, %v820_v23, %v2342_v32  ;;  %v1789_v30 = vsel %vm566_vm1, %v819_v1, %v2341_v46  ;;  %v2550_v23 = vld [vmem:[%s2623_s26 + $0x18] sm:$0xff] }
 0x8da   : > { %v2271_v29 = vpop.f32.mrb[46].mxu0  ;;  %2379 = vrot.lane.b32.xlu0 %v2378_v26, %s2566_s28  ;;  %v1687_v40 = vmul.f32 %v2525_v62, %v1660_v48  ;;  %v2543_v62 = vpop.eup %2542  ;;  %v1799_v28 = vsel %vm1795_vm2, %v1790_v16, %v2362_v3 }
 0x8db   : > { %v1690_v22 = vmul.f32 %v2529_v54, %v2271_v29  ;;  %v1663_v2 = vpop.f32.mrb[47].mxu0  ;;  %v2337_v29 = vunpack.i.h.bf16 %v3243_v20 }
 0x8dc   : > { %v1688_v21 = vmul.f32 %v2531_v43, %v1663_v2  ;;  %v1798_v43 = vsel %vm1795_vm2, %v1789_v30, %v2361_v39  ;;  %v821_v2 = vmul.f32 %v2543_v62, %v2993_v17  ;;  %v2552_v30 = vld [vmem:[%s2623_s26 + $0x30] sm:$0xff] }
 0x8dd   : > { %v2383_v18 = vpack.i.bf16 %v1690_v22, %v1689_v45  ;;  %v2365_v45 = vpop.permute.xlu1 %2364  ;;  %v1792_v9 = vsel %vm566_vm1, %v822_v59, %v2337_v29 }
 0x8de   : > { %v2373_v10 = vpack.i.bf16 %v1688_v21, %v1687_v40  ;;  %v2357_v40 = vunpack.i.h.bf16 %v2355_v58  ;;  %v2356_v21 = vunpack.i.l.bf16 %v2355_v58  ;;  %v1791_v44 = vsel %vm566_vm1, %v821_v2, %v2336_v11  ;;  %v2549_v58 = vld [vmem:[%s2623_s26] sm:$0xff] }
 0x8df   : > { %v2367_v6 = vunpack.i.h.bf16 %v2365_v45  ;;  %v2366_v14 = vunpack.i.l.bf16 %v2365_v45  ;;  %v2553_v11 = vld [vmem:[%s2623_s26 + $0x20] sm:$0xff]  ;;  %v2554_v45 = vld [vmem:[%s2623_s26 + $0x38] sm:$0xff] }
 0x8e0   : > { %2374 = vrot.lane.b32.xlu1 %v2373_v10, %s2566_s28  ;;  %v2545_v10 = vpop.eup %2544  ;;  %v1801_v17 = vsel %vm1795_vm2, %v1792_v9, %v2357_v40  ;;  %v1800_v20 = vsel %vm1795_vm2, %v1791_v44, %v2356_v21 }
 0x8e1   : > { %v2547_v38 = vpop.eup %2546  ;;  %v823_v31 = vmul.f32 %v2545_v10, %v2991_v50 }
 0x8e2   : > { %v824_v60 = vmul.f32 %v2547_v38, %v2995_v42 }
 0x8e3   : > { %v1793_v13 = vsel %vm566_vm1, %v823_v31, %v2346_v61 }
 0x8e4   : > { %2384 = vrot.lane.b32.xlu1 %v2383_v18, %s2566_s28  ;;  %v1794_v5 = vsel %vm566_vm1, %v824_v60, %v2347_v57  ;;  %v1802_v42 = vsel %vm1795_vm2, %v1793_v13, %v2366_v14 }
 0x8e5   : > { %v1803_v24 = vsel %vm1795_vm2, %v1794_v5, %v2367_v6 }
 0x948   : > { %v2370_v12 = vpop.permute.xlu0 %2369 }
 0x949   : > { %v2372_v19 = vunpack.i.h.bf16 %v2370_v12  ;;  %v2371_v47 = vunpack.i.l.bf16 %v2370_v12 }
 0x94b   : > { %v1805_v37 = vsel %vm1804_vm3, %v1796_v63, %v2371_v47  ;;  %v1806_v15 = vsel %vm1804_vm3, %v1797_v49, %v2372_v19  ;;  %v2548_v19 = vld [vmem:[%s2623_s26 + $0x10] sm:$0xff] }
 0x94c   : > { %v1813_v26 = vpack.c.bf16 %v1806_v15, %v1805_v37  ;;  %v2380_v7 = vpop.permute.xlu0 %2379  ;;  %v2551_v37 = vld [vmem:[%s2623_s26 + $0x8] sm:$0xff] }
 0x94d   : > { %v2382_v48 = vunpack.i.h.bf16 %v2380_v7  ;;  %v2381_v54 = vunpack.i.l.bf16 %v2380_v7 }
 0x94e   : > { %2280 = vmatprep.mubr.msk.bf16.mxu0 %vm263_vm0, %v1813_v26 }
 0x94f   : > { %v1807_v52 = vsel %vm1804_vm3, %v1798_v43, %v2381_v54  ;;  %v1808_v22 = vsel %vm1804_vm3, %v1799_v28, %v2382_v48 }
 0x950   : > { %v1814_v18 = vpack.c.bf16 %v1808_v22, %v1807_v52  ;;  %v2555_v22 = vld [vmem:[%s2623_s26 + $0x28] sm:$0xff] }
 0x952   : > { %v2375_v55 = vpop.permute.xlu1 %2374  ;;  %2281 = vmatmul.mubr.msk.bf16.vlgmr.msra.gmra.mrb[48].mxu0 %vm263_vm0, %v1814_v18 }
 0x953   : > { %v2377_v53 = vunpack.i.h.bf16 %v2375_v55  ;;  %v2376_v51 = vunpack.i.l.bf16 %v2375_v55 }
 0x955   : > { %v1810_v36 = vsel %vm1804_vm3, %v1801_v17, %v2377_v53  ;;  %v1809_v41 = vsel %vm1804_vm3, %v1800_v20, %v2376_v51 }
 0x956   : > { %v1815_v35 = vpack.c.bf16 %v1810_v36, %v1809_v41  ;;  %v2385_v33 = vpop.permute.xlu1 %2384 }
 0x957   : > { %v2387_v8 = vunpack.i.h.bf16 %v2385_v33  ;;  %v2386_v27 = vunpack.i.l.bf16 %v2385_v33 }
 0x958   : > { %2284 = vmatprep.mubr.msk.bf16.mxu1 %vm263_vm0, %v1815_v35 }
 0x959   : > { %v1812_v50 = vsel %vm1804_vm3, %v1803_v24, %v2387_v8  ;;  %v1811_v34 = vsel %vm1804_vm3, %v1802_v42, %v2386_v27 }
 0x95a   : > { %v1816_v0 = vpack.c.bf16 %v1812_v50, %v1811_v34 }
 0x95c   : > { %2285 = vmatmul.mubr.msk.bf16.vlgmr.msra.gmra.mrb[32].mxu1 %vm263_vm0, %v1816_v0 }
 0xa25   : > { %v2282_v4 = vpop.f32.mrb[48].mxu0 }
 0xa26   : > { %v1911_v12 = vadd.f32 %v2282_v4, %v2059_v56  ;;  %v1902_v25 = vpop.f32.mrb[49].mxu0 }
 0xa27   : > { %v1903_v32 = vadd.f32 %v2059_v56, %v1902_v25  ;;  %v2283_v46 = vpop.f32.mrb[50].mxu0 }
 0xa28   : > { %v1935_v47 = vadd.f32 %v2548_v19, %v1911_v12  ;;  %v1914_v63 = vadd.f32 %v2283_v46, %v2059_v56  ;;  %v1905_v49 = vpop.f32.mrb[51].mxu0 }
 0xa29   : > { %v1933_v3 = vadd.f32 %v2549_v58, %v1903_v32  ;;  %v1906_v39 = vadd.f32 %v2059_v56, %v1905_v49 }
 0xa2a   : > { %1943 = vst.msk [vmem:[%s3295_s25 + $0x10] sm:$0xff] %vm263_vm0, %v1935_v47  ;;  %v1936_v1 = vadd.f32 %v2550_v23, %v1914_v63 }
 0xa2b   : > { %1941 = vst.msk [vmem:[%s3295_s25] sm:$0xff] %vm263_vm0, %v1933_v3  ;;  %v1934_v15 = vadd.f32 %v2551_v37, %v1906_v39 }
 0xa2c   : > { %1944 = vst.msk [vmem:[%s3295_s25 + $0x18] sm:$0xff] %vm263_vm0, %v1936_v1 }
 0xa2d   : > { %1942 = vst.msk [vmem:[%s3295_s25 + $0x8] sm:$0xff] %vm263_vm0, %v1934_v15 }
 0xa2f   : > { %v2286_v59 = vpop.f32.mrb[32].mxu1 }
 0xa30   : > { %v1927_v26 = vadd.f32 %v2286_v59, %v2059_v56  ;;  %v1918_v7 = vpop.f32.mrb[33].mxu1 }
 0xa31   : > { %v1919_v62 = vadd.f32 %v2059_v56, %v1918_v7  ;;  %v2287_v16 = vpop.f32.mrb[34].mxu1 }
 0xa32   : > { %v1939_v48 = vadd.f32 %v2552_v30, %v1927_v26  ;;  %v1930_v54 = vadd.f32 %v2287_v16, %v2059_v56  ;;  %v1921_v29 = vpop.f32.mrb[35].mxu1 }
 0xa33   : > { %v1937_v28 = vadd.f32 %v2553_v11, %v1919_v62  ;;  %v1922_v43 = vadd.f32 %v2059_v56, %v1921_v29 }
 0xa34   : > { %1947 = vst.msk [vmem:[%s3295_s25 + $0x30] sm:$0xff] %vm263_vm0, %v1939_v48  ;;  %v1940_v52 = vadd.f32 %v2554_v45, %v1930_v54 }
 0xa35   : > { %1945 = vst.msk [vmem:[%s3295_s25 + $0x20] sm:$0xff] %vm263_vm0, %v1937_v28  ;;  %v1938_v2 = vadd.f32 %v2555_v22, %v1922_v43 }
 0xa36   : > { %1948 = vst.msk [vmem:[%s3295_s25 + $0x38] sm:$0xff] %vm263_vm0, %v1940_v52 }
 0xa37   : > { %1946 = vst.msk [vmem:[%s3295_s25 + $0x28] sm:$0xff] %vm263_vm0, %v1938_v2 }
 0xa38 PF: > { %s16_s21 = sadd.s32 1, %s2562_s21  }
 0xa39   : > { %p13_p4 = scmp.ge.s32.totalorder %s16_s21, 4  }
 0xa3b   :  { %15 = sbr.rel (!%p13_p4) target bundleno = 1 (0x1), region = 74 }

// kernel: transformer_forward.4
= control target key start
LH: loop header
LB: loop body
LE: loop exit
PB: predicated region body
PF: predicated region fallthrough
CT: control target
= control target key end

     0   :  { %11 = vsyncpa [#allocation3], 0  ;;  %s3632_s0 = inlined_call_operand.hbm [shape: f32[2,64,64], index: 0, kind: input, shape index: {}]   ;;  %s3633_s1 = inlined_call_operand.vmem [shape: f32[1,64], index: 1, kind: input, shape index: {}]   ;;  %s3634_s2 = inlined_call_operand.vmem [shape: f32[1,64], index: 2, kind: input, shape index: {}]   ;;  %s3635_s3 = inlined_call_operand.vmem [shape: bf16[64,192], index: 3, kind: input, shape index: {}]   ;;  %s3636_s4 = inlined_call_operand.hbm [shape: bf16[64,64], index: 4, kind: input, shape index: {}]   ;;  %s3637_s5 = inlined_call_operand.vmem [shape: f32[1,64], index: 5, kind: input, shape index: {}]   ;;  %s3638_s6 = inlined_call_operand.vmem [shape: f32[2,64,64], index: 6, kind: output, shape index: {}]  }
   0x1   :  { %13 = vsyncpa [#allocation3 + $0x1], 0 }
   0x2   :  { %14 = vsyncpa [#allocation5], 0  ;;  %s2809_s21 = smov 0   ;;  %s2811_s22 = smov 0  }
   0x3   :  { %s2813_s23 = smov 0   ;;  %s2815_s24 = smov 0  }
   0x4 LB: > { %s2828_s25 = sadd.s32 4294967295, %s2758_s24   ;;  %p40_p0 = scmp.ne.s32.totalorder %s2750_s22, %s2746_s21  ;;  %s2758_s24 = sphi %s2815_s24, %s3653_s24   ;;  %s2754_s23 = sphi %s2813_s23, %s3652_s23   ;;  %s2750_s22 = sphi %s2811_s22, %s3651_s22   ;;  %s2746_s21 = sphi %s2809_s21, %s3650_s21  }
   0x5   : > { %p3639_p1 = scmp.eq.s32.totalorder %s2828_s25, 0  ;;  %p2062_p2 = scmp.ge.s32.totalorder %s2758_s24, 1 }
   0x6   : > { %p182_p3 = scmp.lt.s32.totalorder %s2758_s24, 3  ;;  %s2760_s28 = smov [#allocation4]  }
   0x7   : > { %p2836_p4 = por %p3639_p1, %p40_p0  ;;  %s203_s29 = sshll.u32 %s2760_s28, 4  ;;  %s204_s29 = int_to_ptr.vmem [resolvable:$true] %s203_s29 }
   0x8   : > { %p2840_p5 = pnand %p2062_p2, %p182_p3  ;;  %s2853_s7 = sadd.s32 1, %s2758_s24  }
   0x9   : > { %s3642_s26 = scalar_select %p2836_p4, 1, 0 }
   0xa   : > { %s3643_s27 = scalar_select %p2840_p5, 1, 0 }
   0xb   : > { %p2378_p6 = pneg %p2840_p5  ;;  %s27_s8 = sadd.s32 1, %s2754_s23 }
   0xc   : > { %s24_s9 = ssub.s32 %s2758_s24, %s2853_s7  ;;  %s2662_s12 = scalar_lea.hbm %s3636_s4, 512 }
   0xd   : > { %p2848_p7 = pnand %p2378_p6, %p3639_p1  ;;  %p2663_p8 = scmp.ne.s32.totalorder %s3636_s4, %s2662_s12 }
   0xe   : > { %p2669_p12 = scmp.lt.u32.totalorder %s2662_s12, %s3636_s4 }
   0xf   : > { %p2664_p9 = pneg %p2848_p7 }
  0x11   : > { %p2665_p10 = pnand %p2664_p9, %p2663_p8 }
  0x13   : > { %p2666_p11 = pneg %p2665_p10 }
  0x15   : > { %p2671_p13 = pnand %p2669_p12, %p2666_p11 }
  0x17   : > { %2674 = shalt.err (!%p2671_p13)
}
  0x18   : > { %s2675_s17 = scalar_lea.vmem %s204_s29, 512  ;;  %p2683_p6 = scmp.lt.s32.totalorder %s204_s29, %s204_s29 }
  0x19   : > { %p2676_p0 = scmp.ne.s32.totalorder %s204_s29, %s2675_s17  ;;  %p2684_p1 = scmp.lt.s32.totalorder %s2675_s17, %s2675_s17 }
  0x1b   : > { %p2678_p2 = pnand %p2676_p0, %p2664_p9  ;;  %p2685_p4 = por %p2684_p1, %p2683_p6 }
  0x1d   : > { %p2679_p3 = pneg %p2678_p2 }
  0x1f   : > { %p2686_p5 = pnand %p2685_p4, %p2679_p3 }
  0x21   : > { %2689 = shalt.err (!%p2686_p5)
}
  0x22   : > { %s2761_s18 = smov 64   ;;  %s2762_s19 = smov 4  }
  0x23   : > { %2381 = dma.hbm_to_vmem [thread:$0]  (!%p2848_p7), %s3636_s4, 512, %s204_s29, [#allocation5], %s2761_s18, %s2761_s18, %s2762_s19  }
  0x24   : > { %p25_p8 = scmp.eq.s32.totalorder %s24_s9, 0  ;;  %p34_p9 = scmp.ne.s32.totalorder %s2754_s23, %s2750_s22 }
  0x25   : > { %p35_p1 = scmp.eq.s32.totalorder %s2758_s24, 0  ;;  %p2387_p4 = scmp.lt.s32.totalorder %s2758_s24, 2 }
  0x26   : > { %s2879_s28 = scalar_select %p25_p8, %s2754_s23, %s27_s8  }
  0x27   : > { %p36_p5 = por %p35_p1, %p34_p9  ;;  %s220_s10 = sand.u32 1, %s2754_s23  }
  0x28   : > { %s2065_s11 = sshll.u32 %s220_s10, 6  ;;  %s2130_s12 = sshll.u32 %s2758_s24, 10 }
  0x29   : > { %s2886_s15 = scalar_lea.hbm %s3632_s0, %s2130_s12  ;;  %s224_s29 = scalar_lea.vmem [#allocation2], %s2065_s11 }
  0x2a   : > { %s231_s30 = sshll.u32 %s224_s29, 4  ;;  %p2890_p7 = pnand %p2387_p4, %p36_p5  ;;  %s2888_s30 = int_to_ptr.vmem [resolvable:$true] %s231_s30 }
  0x2b   : > { %s2894_s24 = scalar_lea.sflag [#allocation3], %s220_s10  ;;  %s2690_s9 = scalar_lea.hbm %s2886_s15, 1024 }
  0x2c   : > { %p2691_p10 = scmp.ne.s32.totalorder %s2886_s15, %s2690_s9  ;;  %p2692_p11 = pneg %p2890_p7 }
  0x2d   : > { %s2695_s18 = scalar_lea.hbm %s3632_s0, 2048  ;;  %p2696_p0 = scmp.lt.u32.totalorder %s2886_s15, %s3632_s0 }
  0x2e   : > { %p2693_p12 = pnand %p2692_p11, %p2691_p10  ;;  %p2697_p2 = scmp.lt.u32.totalorder %s2695_s18, %s2690_s9 }
  0x2f   : > { %p2699_p6 = scmp.lt.u32.totalorder %s2690_s9, %s2886_s15 }
  0x30   : > { %p2694_p13 = pneg %p2693_p12  ;;  %p2698_p3 = por %p2697_p2, %p2696_p0 }
  0x32   : > { %p2700_p8 = por %p2699_p6, %p2698_p3 }
  0x34   : > { %p2701_p9 = pnand %p2700_p8, %p2694_p13 }
  0x36   : > { %2704 = shalt.err (!%p2701_p9)
}
  0x37   : > { %s2705_s21 = scalar_lea.vmem %s2888_s30, 1024  ;;  %s2763_s10 = smov [#allocation2]  }
  0x38   : > { %p2706_p1 = scmp.ne.s32.totalorder %s2888_s30, %s2705_s21  ;;  %s2710_s11 = sshll.u32 %s2763_s10, 4  ;;  %s2711_s11 = int_to_ptr.vmem [resolvable:$false] %s2710_s11 }
  0x39   : > { %s2712_s12 = scalar_lea.vmem %s2711_s11, 2048  ;;  %p2713_p10 = scmp.lt.s32.totalorder %s2888_s30, %s2711_s11 }
  0x3a   : > { %p2708_p4 = pnand %p2706_p1, %p2692_p11  ;;  %p2714_p12 = scmp.lt.s32.totalorder %s2712_s12, %s2705_s21 }
  0x3c   : > { %p2709_p5 = pneg %p2708_p4  ;;  %p2715_p0 = por %p2714_p12, %p2713_p10 }
  0x3e   : > { %p2716_p2 = pnand %p2715_p0, %p2709_p5 }
  0x40   : > { %2719 = shalt.err (!%p2716_p2)
}
  0x41   : > { %s2764_s13 = smov 128   ;;  %s2765_s14 = smov 8  }
  0x42   : > { %2385 = dma.hbm_to_vmem [thread:$0]  (!%p2890_p7), %s2886_s15, 1024, %s2888_s30, %s2894_s24, %s2764_s13, %s2764_s13, %s2765_s14  }
  0x43   : > { %p3646_p11 = scmp.ne.s32.totalorder %s3643_s27, 0 }
  0x44   : > { %s245_s29 = sand.u32 (!%p3646_p11), 1, %s2750_s22   ;;  %p3647_p13 = scmp.ne.s32.totalorder (!%p3646_p11), %s3642_s26, 0 }
  0x45   : > { %243 = sbr.rel (%p3646_p11) target bundleno = 2680 (0xa78), region = 44  ;;  %s2069_s9 = sshll.u32 (!%p3646_p11), %s245_s29, 6 }
  0x46   : > { %s246_s16 = scalar_lea.sflag (!%p3646_p11), [#allocation3], %s245_s29  ;;  %s2925_s17 = scalar_lea.vmem (!%p3646_p11), [#allocation2], %s2069_s9 }
  0x4c   : > { %2737 = dma.done.wait (%p3647_p13), %s246_s16, 1024  }
  0x4d   : > { %2739 = vsyncadd (%p3647_p13), %s246_s16, 4294966272  ;;  %p3648_p3 = scmp.eq.s32.totalorder %s2828_s25, 0 }
  0x4f   : > { %2741 = dma.done.wait (%p3648_p3), [#allocation5], 512   ;;  %p3649_p7 = pmov %p3648_p3 }
  0x50   : > { %vm298_vm0 = vcmask 523264   ;;  %v288_v0 = vld [vmem:[%s2925_s17] sm:$0xff]  ;;  %v290_v1 = vld [vmem:[%s2925_s17 + $0x10] sm:$0xff]  ;;  %v289_v2 = vld [vmem:[%s2925_s17 + $0x8] sm:$0xff]  ;;  %vm601_vm1 = vcmask 130048   ;;  %s2767_s15 = smov 64  }
  0x51   : > { %2743 = vsyncadd (%p3649_p7), [#allocation5], 4294966784  ;;  %v299_v3 = vsel %vm298_vm0, %v288_v0, 0.0  ;;  %v305_v4 = vsel %vm298_vm0, %v290_v1, 0.0  ;;  %v291_v5 = vld [vmem:[%s2925_s17 + $0x18] sm:$0xff]  ;;  %v292_v6 = vld [vmem:[%s2925_s17 + $0x20] sm:$0xff] }
  0x52   : > { %300 = vadd.xlane.f32.xlu0 %v299_v3  ;;  %306 = vadd.xlane.f32.xlu1 %v305_v4  ;;  %v293_v7 = vld [vmem:[%s2925_s17 + $0x28] sm:$0xff]  ;;  %v302_v8 = vsel %vm298_vm0, %v289_v2, 0.0  ;;  %v308_v9 = vsel %vm298_vm0, %v291_v5, 0.0  ;;  %v311_v10 = vsel %vm298_vm0, %v292_v6, 0.0  ;;  %v294_v12 = vld [vmem:[%s2925_s17 + $0x30] sm:$0xff]  ;;  %v295_v13 = vld [vmem:[%s2925_s17 + $0x38] sm:$0xff] }
  0x53   : > { %v314_v11 = vsel %vm298_vm0, %v293_v7, 0.0  ;;  %v317_v14 = vsel %vm298_vm0, %v294_v12, 0.0  ;;  %v320_v15 = vsel %vm298_vm0, %v295_v13, 0.0  ;;  %v2494_v56 = vld [vmem:[%s3635_s3 + $0x4] ss:$8 sps:$4 sm:$0xff]   ;;  %s2768_s30 = smov 48  }
  0x54   : > { %v2496_v57 = vld [vmem:[%s3635_s3] ss:$8 sps:$4 sm:$0xff]   ;;  %496 = vmatprep.subr.bf16.mxu0 %v2494_v56  ;;  %v2497_v58 = vld [vmem:[%s3635_s3 + $0x14] ss:$8 sps:$4 sm:$0xff]   ;;  %v2499_v59 = vld [vmem:[%s3635_s3 + $0x10] ss:$8 sps:$4 sm:$0xff]  }
  0x55   : > { %497 = vmatpush1.bf16.msra.mxu0 %v2496_v57  ;;  %v2500_v60 = vld [vmem:[%s3635_s3 + $0x24] ss:$8 sps:$4 sm:$0xff]   ;;  %v2502_v61 = vld [vmem:[%s3635_s3 + $0x20] ss:$8 sps:$4 sm:$0xff]   ;;  %v2503_v62 = vld [vmem:[%s3635_s3 + $0x34] ss:$8 sps:$4 sm:$0xff]  }
  0x56   : > { %303 = vadd.xlane.f32.xlu0 %v302_v8  ;;  %309 = vadd.xlane.f32.xlu1 %v308_v9  ;;  %v2505_v63 = vld [vmem:[%s3635_s3 + $0x30] ss:$8 sps:$4 sm:$0xff]   ;;  %s2769_s8 = smov 112   ;;  %s2770_s24 = smov 32   ;;  %vm1830_vm2 = vcmask 261120   ;;  %vm1839_vm3 = vcmask 392192  }
  0x57   : > { %498 = vmatprep.subr.bf16.mxu0 %v2497_v58  ;;  %s2771_s18 = smov 96   ;;  %s2772_s19 = smov 16  }
  0x58   : > { %s2773_s20 = smov 80   ;;  %p282_p6 = scmp.lt.s32.totalorder %s2828_s25, 1 }
  0x59   : > { %499 = vmatpush1.bf16.msra.mxu0 %v2499_v59 }
  0x5a   : > { %312 = vadd.xlane.f32.xlu0 %v311_v10  ;;  %315 = vadd.xlane.f32.xlu1 %v314_v11  ;;  %s3655_s25 = smov (!%p282_p6, %s2828_s25), 1 }
  0x5b   : > { %500 = vmatprep.subr.bf16.mxu0 %v2500_v60  ;;  %s2131_s11 = sshll.u32 %s3655_s25, 6 }
  0x5c   : > { %s3593_s14 = scalar_lea.vmem %s3638_s6, %s2131_s11 }
  0x5d   : > { %501 = vmatpush1.bf16.msra.mxu0 %v2502_v61 }
  0x5e   : > { %318 = vadd.xlane.f32.xlu0 %v317_v14  ;;  %321 = vadd.xlane.f32.xlu1 %v320_v15 }
  0x5f   : > { %502 = vmatprep.subr.bf16.mxu0 %v2503_v62 }
  0x61   : > { %503 = vmatpush1.bf16.msra.mxu0 %v2505_v63 }
  0xdf   : > { %v301_v16 = vpop.xlane.xlu0 %300  ;;  %v307_v17 = vpop.xlane.xlu1 %306 }
  0xe0   : > { %v324_v18 = vmul.f32 0.015625, %v301_v16  ;;  %v326_v19 = vmul.f32 0.015625, %v307_v17 }
  0xe2   : > { %v2951_v20 = vsub.f32 %v288_v0, %v324_v18  ;;  %v2953_v21 = vsub.f32 %v290_v1, %v326_v19  ;;  %v2766_v0 = vmov 0  }
  0xe3   : > { %v304_v22 = vpop.xlane.xlu0 %303  ;;  %v310_v23 = vpop.xlane.xlu1 %309  ;;  %528 = vmatprep.mubr.bf16.mxu0 %v2766_v0 }
  0xe4   : > { %v325_v24 = vmul.f32 0.015625, %v304_v22  ;;  %v327_v25 = vmul.f32 0.015625, %v310_v23  ;;  %v340_v26 = vmul.f32 %v2951_v20, %v2951_v20  ;;  %v342_v27 = vmul.f32 %v2953_v21, %v2953_v21 }
  0xe6   : > { %v2959_v28 = vsub.f32 %v289_v2, %v325_v24  ;;  %v2961_v29 = vsub.f32 %v291_v5, %v327_v25  ;;  %v348_v30 = vsel %vm298_vm0, %v340_v26, 0.0  ;;  %v354_v33 = vsel %vm298_vm0, %v342_v27, 0.0  ;;  %v2073_v26 = vld [vmem:[%s3633_s1] ss:$0 sm:$0xff] }
  0xe7   : > { %349 = vadd.xlane.f32.xlu0 %v348_v30  ;;  %v313_v31 = vpop.xlane.xlu0 %312  ;;  %v316_v32 = vpop.xlane.xlu1 %315 }
  0xe8   : > { %v328_v34 = vmul.f32 0.015625, %v313_v31  ;;  %v329_v35 = vmul.f32 0.015625, %v316_v32  ;;  %v341_v36 = vmul.f32 %v2959_v28, %v2959_v28  ;;  %v343_v37 = vmul.f32 %v2961_v29, %v2961_v29 }
  0xea   : > { %v2969_v38 = vsub.f32 %v292_v6, %v328_v34  ;;  %v2971_v39 = vsub.f32 %v293_v7, %v329_v35  ;;  %v351_v40 = vsel %vm298_vm0, %v341_v36, 0.0  ;;  %v357_v43 = vsel %vm298_vm0, %v343_v37, 0.0  ;;  %v2074_v35 = vld [vmem:[%s3634_s2] ss:$0 sm:$0xff] }
  0xeb   : > { %355 = vadd.xlane.f32.xlu0 %v354_v33  ;;  %352 = vadd.xlane.f32.xlu1 %v351_v40  ;;  %v319_v41 = vpop.xlane.xlu0 %318  ;;  %v322_v42 = vpop.xlane.xlu1 %321 }
  0xec   : > { %v330_v44 = vmul.f32 0.015625, %v319_v41  ;;  %v331_v45 = vmul.f32 0.015625, %v322_v42  ;;  %v344_v46 = vmul.f32 %v2969_v38, %v2969_v38  ;;  %v345_v47 = vmul.f32 %v2971_v39, %v2971_v39 }
  0xee   : > { %v2979_v48 = vsub.f32 %v294_v12, %v330_v44  ;;  %v2981_v49 = vsub.f32 %v295_v13, %v331_v45  ;;  %v360_v50 = vsel %vm298_vm0, %v344_v46, 0.0  ;;  %v363_v51 = vsel %vm298_vm0, %v345_v47, 0.0 }
  0xef   : > { %358 = vadd.xlane.f32.xlu1 %v357_v43  ;;  %361 = vadd.xlane.f32.xlu0 %v360_v50 }
  0xf0   : > { %v346_v52 = vmul.f32 %v2979_v48, %v2979_v48  ;;  %v347_v53 = vmul.f32 %v2981_v49, %v2981_v49 }
  0xf2   : > { %v366_v54 = vsel %vm298_vm0, %v346_v52, 0.0  ;;  %v369_v55 = vsel %vm298_vm0, %v347_v53, 0.0 }
  0xf3   : > { %364 = vadd.xlane.f32.xlu1 %v363_v51  ;;  %367 = vadd.xlane.f32.xlu0 %v366_v54 }
  0xf7   : > { %370 = vadd.xlane.f32.xlu1 %v369_v55 }
 0x174   : > { %v350_v1 = vpop.xlane.xlu0 %349 }
 0x175   : > { %v372_v2 = vmul.f32 0.015625, %v350_v1 }
 0x177   : > { %v380_v3 = vadd.f32 1e-05, %v372_v2 }
 0x178   : > { %v353_v4 = vpop.xlane.xlu1 %352  ;;  %v356_v5 = vpop.xlane.xlu0 %355 }
 0x179   : > { %2510 = vrsqrt.f32 %v380_v3  ;;  %v373_v6 = vmul.f32 0.015625, %v353_v4  ;;  %v374_v7 = vmul.f32 0.015625, %v356_v5 }
 0x17b   : > { %v381_v8 = vadd.f32 1e-05, %v373_v6  ;;  %v382_v9 = vadd.f32 1e-05, %v374_v7 }
 0x17c   : > { %v359_v10 = vpop.xlane.xlu1 %358  ;;  %v362_v11 = vpop.xlane.xlu0 %361 }
 0x17d   : > { %2512 = vrsqrt.f32 %v381_v8  ;;  %v375_v12 = vmul.f32 0.015625, %v359_v10  ;;  %v376_v14 = vmul.f32 0.015625, %v362_v11 }
 0x17e   : > { %2514 = vrsqrt.f32 %v382_v9 }
 0x17f   : > { %v383_v13 = vadd.f32 1e-05, %v375_v12  ;;  %v384_v18 = vadd.f32 1e-05, %v376_v14 }
 0x180   : > { %v365_v15 = vpop.xlane.xlu1 %364  ;;  %v368_v22 = vpop.xlane.xlu0 %367 }
 0x181   : > { %2516 = vrsqrt.f32 %v383_v13  ;;  %v377_v16 = vmul.f32 0.015625, %v365_v15  ;;  %v378_v30 = vmul.f32 0.015625, %v368_v22 }
 0x183   : > { %v2511_v17 = vpop.eup %2510  ;;  %v385_v19 = vadd.f32 1e-05, %v377_v16  ;;  %v386_v37 = vadd.f32 1e-05, %v378_v30 }
 0x184   : > { %v371_v23 = vpop.xlane.xlu1 %370  ;;  %v396_v24 = vmul.f32 %v2511_v17, %v2951_v20 }
 0x185   : > { %2518 = vrsqrt.f32 %v385_v19  ;;  %v379_v25 = vmul.f32 0.015625, %v371_v23 }
 0x186   : > { %2520 = vrsqrt.f32 %v384_v18  ;;  %v410_v32 = vmul.f32 %v2073_v26, %v396_v24 }
 0x187   : > { %v2513_v27 = vpop.eup %2512  ;;  %v387_v34 = vadd.f32 1e-05, %v379_v25 }
 0x188   : > { %v397_v31 = vmul.f32 %v2513_v27, %v2959_v28  ;;  %v2515_v33 = vpop.eup %2514  ;;  %v424_v40 = vadd.f32 %v2074_v35, %v410_v32 }
 0x189   : > { %v398_v42 = vmul.f32 %v2515_v33, %v2953_v21  ;;  %2522 = vrsqrt.f32 %v387_v34 }
 0x18a   : > { %v411_v36 = vmul.f32 %v2073_v26, %v397_v31  ;;  %2524 = vrsqrt.f32 %v386_v37 }
 0x18b   : > { %v2517_v20 = vpop.eup %2516  ;;  %v412_v46 = vmul.f32 %v2073_v26, %v398_v42 }
 0x18c   : > { %v425_v41 = vadd.f32 %v2074_v35, %v411_v36  ;;  %v399_v43 = vmul.f32 %v2517_v20, %v2961_v29 }
 0x18d   : > { %v426_v52 = vadd.f32 %v2074_v35, %v412_v46 }
 0x18e   : > { %v432_v44 = vpack.c.bf16 %v425_v41, %v424_v40  ;;  %v413_v45 = vmul.f32 %v2073_v26, %v399_v43 }
 0x18f   : > { %v2519_v28 = vpop.eup %2518 }
 0x190   : > { %2083 = vmatmul.mubr.msk.bf16.vlgmr.msra.gmra.mrb[0].mxu0 %vm298_vm0, %v432_v44  ;;  %v2521_v47 = vpop.eup %2520  ;;  %v427_v50 = vadd.f32 %v2074_v35, %v413_v45  ;;  %v401_v51 = vmul.f32 %v2519_v28, %v2971_v39 }
 0x191   : > { %538 = vmatprep.mubr.bf16.mxu0 %v2766_v0  ;;  %v400_v53 = vmul.f32 %v2521_v47, %v2969_v38 }
 0x192   : > { %v433_v21 = vpack.c.bf16 %v427_v50, %v426_v52  ;;  %v415_v54 = vmul.f32 %v2073_v26, %v401_v51 }
 0x193   : > { %v2523_v29 = vpop.eup %2522  ;;  %v414_v55 = vmul.f32 %v2073_v26, %v400_v53 }
 0x194   : > { %v2525_v56 = vpop.eup %2524  ;;  %v429_v57 = vadd.f32 %v2074_v35, %v415_v54  ;;  %v403_v58 = vmul.f32 %v2523_v29, %v2981_v49 }
 0x195   : > { %v428_v59 = vadd.f32 %v2074_v35, %v414_v55  ;;  %v402_v60 = vmul.f32 %v2525_v56, %v2979_v48 }
 0x196   : > { %v417_v39 = vmul.f32 %v2073_v26, %v403_v58 }
 0x197   : > { %v434_v61 = vpack.c.bf16 %v429_v57, %v428_v59  ;;  %v416_v38 = vmul.f32 %v2073_v26, %v402_v60 }
 0x198   : > { %2084 = vmatmul.mubr.msk.bf16.gmra.mrb[4].mxu0 %vm298_vm0, %v433_v21  ;;  %v431_v62 = vadd.f32 %v2074_v35, %v417_v39 }
 0x199   : > { %548 = vmatprep.mubr.bf16.mxu0 %v2766_v0  ;;  %v430_v63 = vadd.f32 %v2074_v35, %v416_v38 }
 0x19b   : > { %v435_v1 = vpack.c.bf16 %v431_v62, %v430_v63 }
 0x1a0   : > { %2085 = vmatmul.mubr.msk.bf16.gmra.mrb[8].mxu0 %vm298_vm0, %v434_v61 }
 0x1a1   : > { %558 = vmatprep.mubr.bf16.mxu0 %v2766_v0 }
 0x1a8   : > { %2086 = vmatmul.mubr.msk.bf16.gmra.mrb[12].mxu0 %vm298_vm0, %v435_v1 }
 0x263   : > { %v530_v2 = vpop.f32.mrb[0].mxu0 }
 0x264   : > { %v532_v3 = vpop.f32.mrb[1].mxu0  ;;  %v569_v5 = vmul.f32 0.25, %v530_v2 }
 0x265   : > { %v534_v4 = vpop.f32.mrb[2].mxu0 }
 0x266   : > { %v570_v49 = vmul.f32 0.25, %v534_v4  ;;  %v3037_v6 = vpack.c.bf16 %v534_v4, %v530_v2  ;;  %v536_v48 = vpop.f32.mrb[3].mxu0 }
 0x267   : > { %v3039_v7 = vpack.c.bf16 %v536_v48, %v532_v3 }
 0x268   : > { %v3041_v8 = vpack.c.bf16 %v570_v49, %v569_v5  ;;  %593 = vrot.lane.b32.xlu0 %v3037_v6, %s2767_s15 }
 0x269   : > { %2220 = vmatprep.subr.bf16.mxu0 %v3039_v7 }
 0x26a   : > { %2212 = vmatprep.mubr.msk.bf16.mxu1 %vm601_vm1, %v3041_v8  ;;  %2221 = vmatpush3.bf16.msra.mxu0 %v3039_v7 }
 0x26b   : > { %v540_v0 = vpop.f32.mrb[4].mxu0 }
 0x26c   : > { %872 = vrot.lane.b32.xlu0 %v3037_v6, %s2768_s30  ;;  %v542_v9 = vpop.f32.mrb[5].mxu0  ;;  %v571_v11 = vmul.f32 0.25, %v540_v0 }
 0x26d   : > { %v544_v10 = vpop.f32.mrb[6].mxu0 }
 0x26e   : > { %v572_v12 = vmul.f32 0.25, %v544_v10  ;;  %v3051_v13 = vpack.c.bf16 %v544_v10, %v540_v0  ;;  %v546_v14 = vpop.f32.mrb[7].mxu0 }
 0x26f   : > { %v3053_v15 = vpack.c.bf16 %v546_v14, %v542_v9 }
 0x270   : > { %v3055_v16 = vpack.c.bf16 %v572_v12, %v571_v11  ;;  %595 = vrot.lane.b32.xlu1 %v3051_v13, %s2767_s15 }
 0x271   : > { %2222 = vmatprep.subr.bf16.mxu0 %v3053_v15 }
 0x272   : > { %2223 = vmatpush3.bf16.msra.mxu0 %v3053_v15 }
 0x273   : > { %v550_v17 = vpop.f32.mrb[8].mxu0 }
 0x274   : > { %v552_v18 = vpop.f32.mrb[9].mxu0  ;;  %v573_v22 = vmul.f32 0.25, %v550_v17 }
 0x275   : > { %v554_v19 = vpop.f32.mrb[10].mxu0 }
 0x276   : > { %v574_v23 = vmul.f32 0.25, %v554_v19  ;;  %v3061_v24 = vpack.c.bf16 %v554_v19, %v550_v17  ;;  %v556_v25 = vpop.f32.mrb[11].mxu0 }
 0x277   : > { %v3063_v26 = vpack.c.bf16 %v556_v25, %v552_v18 }
 0x278   : > { %v3065_v27 = vpack.c.bf16 %v574_v23, %v573_v22  ;;  %876 = vrot.lane.b32.xlu0 %v3061_v24, %s2768_s30  ;;  %597 = vrot.lane.b32.xlu1 %v3061_v24, %s2767_s15 }
 0x279   : > { %2224 = vmatprep.subr.bf16.mxu0 %v3063_v26 }
 0x27a   : > { %2225 = vmatpush3.bf16.msra.mxu0 %v3063_v26 }
 0x27b   : > { %v560_v30 = vpop.f32.mrb[12].mxu0 }
 0x27c   : > { %864 = vrot.lane.b32.xlu0 %v3041_v8, %s2769_s8  ;;  %v562_v31 = vpop.f32.mrb[13].mxu0  ;;  %v575_v33 = vmul.f32 0.25, %v560_v30 }
 0x27d   : > { %v564_v32 = vpop.f32.mrb[14].mxu0 }
 0x27e   : > { %v576_v34 = vmul.f32 0.25, %v564_v32  ;;  %v3074_v35 = vpack.c.bf16 %v564_v32, %v560_v30  ;;  %v566_v36 = vpop.f32.mrb[15].mxu0 }
 0x27f   : > { %v3076_v20 = vpack.c.bf16 %v566_v36, %v562_v31 }
 0x280   : > { %v3078_v37 = vpack.c.bf16 %v576_v34, %v575_v33  ;;  %868 = vrot.lane.b32.xlu0 %v3065_v27, %s2769_s8  ;;  %599 = vrot.lane.b32.xlu1 %v3074_v35, %s2767_s15 }
 0x281   : > { %2226 = vmatprep.subr.bf16.mxu0 %v3076_v20 }
 0x282   : > { %2227 = vmatpush3.bf16.msra.mxu0 %v3076_v20 }
 0x284   : > { %1049 = vrot.lane.b32.xlu0 %v3039_v7, %s2769_s8  ;;  %874 = vrot.lane.b32.xlu1 %v3051_v13, %s2768_s30 }
 0x288   : > { %878 = vrot.lane.b32.xlu1 %v3074_v35, %s2768_s30 }
 0x28c   : > { %866 = vrot.lane.b32.xlu1 %v3055_v16, %s2769_s8 }
 0x290   : > { %870 = vrot.lane.b32.xlu1 %v3078_v37, %s2769_s8 }
 0x294   : > { %1051 = vrot.lane.b32.xlu1 %v3053_v15, %s2769_s8 }
 0x298   : > { %1053 = vrot.lane.b32.xlu1 %v3063_v26, %s2769_s8 }
 0x29c   : > { %1055 = vrot.lane.b32.xlu1 %v3076_v20, %s2769_s8 }
 0x2da   : > { %v594_v40 = vpop.permute.xlu0 %593 }
 0x2db   : > { %2356 = vmatprep.subr.msk.bf16.mxu1 %vm601_vm1, %v594_v40  ;;  %v615_v41 = vsel %vm601_vm1, %v594_v40, 0 }
 0x2dc   : > { %2205 = vmatpush3.bf16.xpose.msra.mxu1 %v615_v41 }
 0x2de   : > { %v873_v44 = vpop.permute.xlu0 %872 }
 0x2df   : > { %v893_v21 = vsel %vm601_vm1, %v873_v44, 0 }
 0x2e2   : > { %v596_v42 = vpop.permute.xlu1 %595 }
 0x2e3   : > { %2357 = vmatprep.subr.msk.bf16.mxu1 %vm601_vm1, %v596_v42  ;;  %v618_v43 = vsel %vm601_vm1, %v596_v42, 0 }
 0x2e4   : > { %2207 = vmatpush3.bf16.xpose.msra.mxu1 %v618_v43 }
 0x2ea   : > { %v598_v45 = vpop.permute.xlu1 %597  ;;  %v877_v28 = vpop.permute.xlu0 %876 }
 0x2eb   : > { %2358 = vmatprep.subr.msk.bf16.mxu1 %vm601_vm1, %v598_v45  ;;  %v621_v46 = vsel %vm601_vm1, %v598_v45, 0  ;;  %v899_v55 = vsel %vm601_vm1, %v877_v28, 0 }
 0x2ec   : > { %2209 = vmatpush3.bf16.xpose.msra.mxu1 %v621_v46 }
 0x2ee   : > { %v865_v47 = vpop.permute.xlu0 %864 }
 0x2f2   : > { %v600_v50 = vpop.permute.xlu1 %599  ;;  %v869_v51 = vpop.permute.xlu0 %868 }
 0x2f3   : > { %2359 = vmatprep.subr.msk.bf16.mxu1 %vm601_vm1, %v600_v50  ;;  %v624_v52 = vsel %vm601_vm1, %v600_v50, 0 }
 0x2f4   : > { %2211 = vmatpush3.bf16.xpose.msra.mxu1 %v624_v52 }
 0x2f5   : > { %2360 = vmatprep.subr.msk.bf16.mxu1 %vm601_vm1, %v873_v44 }
 0x2f6   : > { %v3104_v53 = vpop.permute.xlu0 %1049  ;;  %v875_v54 = vpop.permute.xlu1 %874 }
 0x2f7   : > { %2252 = vmatprep.subr.bf16.mxu0 %v3104_v53  ;;  %v896_v29 = vsel %vm601_vm1, %v875_v54, 0 }
 0x2fa   : > { %v879_v56 = vpop.permute.xlu1 %878 }
 0x2fb   : > { %2213 = vmatmul.mubr.msk.bf16.vlgmr.msra.gmra.mrb[0].mxu1 %vm601_vm1, %v3055_v16  ;;  %v902_v57 = vsel %vm601_vm1, %v879_v56, 0 }
 0x2fc   : > { %2216 = vmatprep.mubr.msk.bf16.mxu1 %vm601_vm1, %v3065_v27  ;;  %2237 = vmatpush3.bf16.xpose.msra.mxu1 %v893_v21 }
 0x2fd   : > { %2361 = vmatprep.subr.msk.bf16.mxu1 %vm601_vm1, %v875_v54 }
 0x2fe   : > { %v867_v58 = vpop.permute.xlu1 %866 }
 0x302   : > { %v871_v59 = vpop.permute.xlu1 %870 }
 0x303   : > { %2217 = vmatmul.mubr.msk.bf16.gmra.mrb[4].mxu1 %vm601_vm1, %v3078_v37 }
 0x304   : > { %2239 = vmatpush3.bf16.xpose.msra.mxu1 %v896_v29  ;;  %2244 = vmatprep.mubr.msk.bf16.mxu1 %vm601_vm1, %v865_v47 }
 0x305   : > { %2362 = vmatprep.subr.msk.bf16.mxu1 %vm601_vm1, %v877_v28 }
 0x306   : > { %v1052_v41 = vpop.permute.xlu1 %1051 }
 0x30a   : > { %v1054_v42 = vpop.permute.xlu1 %1053 }
 0x30c   : > { %2241 = vmatpush3.bf16.xpose.msra.mxu1 %v899_v55 }
 0x30d   : > { %2363 = vmatprep.subr.msk.bf16.mxu1 %vm601_vm1, %v879_v56 }
 0x30e   : > { %v3204_v43 = vpop.permute.xlu1 %1055 }
 0x314   : > { %2243 = vmatpush3.bf16.xpose.msra.mxu1 %v902_v57 }
 0x31b   : > { %2245 = vmatmul.mubr.msk.bf16.vlgmr.msra.gmra.mrb[8].mxu1 %vm601_vm1, %v867_v58 }
 0x31c   : > { %2248 = vmatprep.mubr.msk.bf16.mxu1 %vm601_vm1, %v869_v51 }
 0x323   : > { %2249 = vmatmul.mubr.msk.bf16.gmra.mrb[12].mxu1 %vm601_vm1, %v871_v59 }
 0x3ce   : > { %v3124_v60 = vpop.f32.mrb[0].mxu1 }
 0x3cf   : > { %v3126_v61 = vpop.f32.mrb[1].mxu1  ;;  %v697_v39 = vsel %vm298_vm0, %v3124_v60, -inf }
 0x3d0   : > { %698 = vmax.xlane.f32.xlu0 %v697_v39  ;;  %v3130_v38 = vpop.f32.mrb[2].mxu1  ;;  %v691_v1 = vsel %vm298_vm0, %v3126_v61, -inf }
 0x3d1   : > { %v3132_v62 = vpop.f32.mrb[3].mxu1  ;;  %v700_v4 = vsel %vm298_vm0, %v3130_v38, -inf }
 0x3d2   : > { %v694_v63 = vsel %vm298_vm0, %v3132_v62, -inf }
 0x3d3   : > { %695 = vmax.xlane.f32.xlu1 %v694_v63 }
 0x3d4   : > { %692 = vmax.xlane.f32.xlu0 %v691_v1 }
 0x3d6   : > { %v3138_v2 = vpop.f32.mrb[4].mxu1 }
 0x3d7   : > { %v3140_v3 = vpop.f32.mrb[5].mxu1  ;;  %v709_v0 = vsel %vm298_vm0, %v3138_v2, -inf }
 0x3d8   : > { %701 = vmax.xlane.f32.xlu0 %v700_v4  ;;  %v3144_v5 = vpop.f32.mrb[6].mxu1  ;;  %v703_v10 = vsel %vm298_vm0, %v3140_v3, -inf }
 0x3d9   : > { %v3146_v49 = vpop.f32.mrb[7].mxu1  ;;  %v712_v48 = vsel %vm298_vm0, %v3144_v5, -inf }
 0x3da   : > { %713 = vmax.xlane.f32.xlu1 %v712_v48  ;;  %v706_v9 = vsel %vm298_vm0, %v3146_v49, -inf }
 0x3dc   : > { %710 = vmax.xlane.f32.xlu0 %v709_v0 }
 0x3de   : > { %707 = vmax.xlane.f32.xlu1 %v706_v9 }
 0x3e0   : > { %704 = vmax.xlane.f32.xlu0 %v703_v10 }
 0x3ee   : > { %v3156_v11 = vpop.f32.mrb[8].mxu1 }
 0x3ef   : > { %v3158_v12 = vpop.f32.mrb[9].mxu1  ;;  %v975_v14 = vsel %vm298_vm0, %v3156_v11, -inf }
 0x3f0   : > { %976 = vmax.xlane.f32.xlu0 %v975_v14  ;;  %v3162_v17 = vpop.f32.mrb[10].mxu1  ;;  %v969_v22 = vsel %vm298_vm0, %v3158_v12, -inf }
 0x3f1   : > { %v3164_v18 = vpop.f32.mrb[11].mxu1  ;;  %v978_v19 = vsel %vm298_vm0, %v3162_v17, -inf }
 0x3f2   : > { %979 = vmax.xlane.f32.xlu1 %v978_v19  ;;  %v972_v23 = vsel %vm298_vm0, %v3164_v18, -inf }
 0x3f4   : > { %970 = vmax.xlane.f32.xlu0 %v969_v22 }
 0x3f6   : > { %973 = vmax.xlane.f32.xlu1 %v972_v23  ;;  %v3172_v25 = vpop.f32.mrb[12].mxu1 }
 0x3f7   : > { %v3174_v30 = vpop.f32.mrb[13].mxu1  ;;  %v987_v31 = vsel %vm298_vm0, %v3172_v25, -inf }
 0x3f8   : > { %988 = vmax.xlane.f32.xlu0 %v987_v31  ;;  %v3178_v32 = vpop.f32.mrb[14].mxu1  ;;  %v981_v34 = vsel %vm298_vm0, %v3174_v30, -inf }
 0x3f9   : > { %v3180_v33 = vpop.f32.mrb[15].mxu1  ;;  %v990_v36 = vsel %vm298_vm0, %v3178_v32, -inf }
 0x3fa   : > { %v984_v40 = vsel %vm298_vm0, %v3180_v33, -inf }
 0x3fc   : > { %982 = vmax.xlane.f32.xlu0 %v981_v34 }
 0x400   : > { %991 = vmax.xlane.f32.xlu0 %v990_v36 }
 0x407   : > { %1164 = vrot.lane.b32.xlu1 %v3051_v13, %s2770_s24 }
 0x40b   : > { %1166 = vrot.lane.b32.xlu1 %v3061_v24, %s2770_s24 }
 0x416   : > { %1162 = vrot.lane.b32.xlu0 %v3037_v6, %s2770_s24 }
 0x41a   : > { %1154 = vrot.lane.b32.xlu0 %v3041_v8, %s2771_s18 }
 0x41e   : > { %1158 = vrot.lane.b32.xlu0 %v3065_v27, %s2771_s18 }
 0x422   : > { %1335 = vrot.lane.b32.xlu0 %v3039_v7, %s2771_s18 }
 0x42f   : > { %985 = vmax.xlane.f32.xlu1 %v984_v40 }
 0x440   : > { %1168 = vrot.lane.b32.xlu1 %v3074_v35, %s2770_s24 }
 0x444   : > { %1156 = vrot.lane.b32.xlu1 %v3055_v16, %s2771_s18 }
 0x448   : > { %1160 = vrot.lane.b32.xlu1 %v3078_v37, %s2771_s18 }
 0x44c   : > { %1337 = vrot.lane.b32.xlu1 %v3053_v15, %s2771_s18 }
 0x450   : > { %1339 = vrot.lane.b32.xlu1 %v3063_v26, %s2771_s18 }
 0x454   : > { %1341 = vrot.lane.b32.xlu1 %v3076_v20, %s2771_s18 }
 0x45d   : > { %v699_v44 = vpop.xlane.xlu0 %698 }
 0x45e   : > { %v717_v28 = vsub.f32 %v3124_v60, %v699_v44 }
 0x460   : > { %v696_v45 = vpop.xlane.xlu1 %695  ;;  %v727_v21 = vmul.f32 1.442695, %v717_v28 }
 0x461   : > { %v716_v46 = vsub.f32 %v3132_v62, %v696_v45  ;;  %v693_v47 = vpop.xlane.xlu0 %692 }
 0x462   : > { %v715_v50 = vsub.f32 %v3126_v61, %v693_v47 }
 0x463   : > { %v725_v51 = vmul.f32 1.442695, %v716_v46 }
 0x464   : > { %v723_v52 = vmul.f32 1.442695, %v715_v50 }
 0x465   : > { %2526 = vpow2.f32 %v725_v51  ;;  %v702_v54 = vpop.xlane.xlu0 %701 }
 0x466   : > { %2528 = vpow2.f32 %v723_v52  ;;  %v718_v29 = vsub.f32 %v3130_v38, %v702_v54 }
 0x467   : > { %v714_v55 = vpop.xlane.xlu1 %713  ;;  %2530 = vpow2.f32 %v727_v21 }
 0x468   : > { %v729_v56 = vmul.f32 1.442695, %v718_v29  ;;  %v722_v57 = vsub.f32 %v3144_v5, %v714_v55 }
 0x469   : > { %v711_v58 = vpop.xlane.xlu0 %710 }
 0x46a   : > { %2532 = vpow2.f32 %v729_v56  ;;  %v737_v59 = vmul.f32 1.442695, %v722_v57  ;;  %v721_v60 = vsub.f32 %v3138_v2, %v711_v58 }
 0x46b   : > { %v708_v39 = vpop.xlane.xlu1 %707 }
 0x46c   : > { %v735_v61 = vmul.f32 1.442695, %v721_v60  ;;  %v720_v62 = vsub.f32 %v3146_v49, %v708_v39  ;;  %2534 = vpow2.f32 %v737_v59 }
 0x46d   : > { %v705_v63 = vpop.xlane.xlu0 %704 }
 0x46e   : > { %2536 = vpow2.f32 %v735_v61  ;;  %v733_v1 = vmul.f32 1.442695, %v720_v62  ;;  %v719_v38 = vsub.f32 %v3140_v3, %v705_v63 }
 0x46f   : > { %v3214_v4 = vpop.eup %2526 }
 0x470   : > { %v3216_v48 = vpop.eup %2528  ;;  %v731_v5 = vmul.f32 1.442695, %v719_v38  ;;  %2538 = vpow2.f32 %v733_v1 }
 0x471   : > { %v763_v0 = vpack.c.bf16 %v3214_v4, %v3216_v48  ;;  %v3220_v2 = vpop.eup %2530 }
 0x472   : > { %2540 = vpow2.f32 %v731_v5 }
 0x473   : > { %2228 = vmatprep.mubr.msk.bf16.mxu0 %vm298_vm0, %v763_v0 }
 0x474   : > { %v3223_v49 = vpop.eup %2532 }
 0x475   : > { %v764_v9 = vpack.c.bf16 %v3223_v49, %v3220_v2 }
 0x476   : > { %v3227_v3 = vpop.eup %2534 }
 0x477   : > { %2229 = vmatmul.mubr.msk.bf16.vlgmr.msra.gmra.mrb[16].mxu0 %vm298_vm0, %v764_v9 }
 0x478   : > { %v3230_v10 = vpop.eup %2536  ;;  %2253 = vmatpush3.bf16.msra.mxu0 %v3104_v53 }
 0x479   : > { %2254 = vmatprep.subr.bf16.mxu0 %v1052_v41  ;;  %v766_v14 = vpack.c.bf16 %v3227_v3, %v3230_v10 }
 0x47a   : > { %v3235_v19 = vpop.eup %2538 }
 0x47c   : > { %v3237_v22 = vpop.eup %2540  ;;  %2255 = vmatpush3.bf16.msra.mxu0 %v1052_v41 }
 0x47d   : > { %2256 = vmatprep.subr.bf16.mxu0 %v1054_v42  ;;  %v977_v23 = vpop.xlane.xlu0 %976  ;;  %v765_v31 = vpack.c.bf16 %v3235_v19, %v3237_v22 }
 0x47e   : > { %v995_v34 = vsub.f32 %v3156_v11, %v977_v23 }
 0x47f   : > { %v980_v36 = vpop.xlane.xlu1 %979  ;;  %2232 = vmatprep.mubr.msk.bf16.mxu0 %vm298_vm0, %v765_v31 }
 0x480   : > { %v1005_v53 = vmul.f32 1.442695, %v995_v34  ;;  %v996_v40 = vsub.f32 %v3162_v17, %v980_v36  ;;  %2257 = vmatpush3.bf16.msra.mxu0 %v1054_v42 }
 0x481   : > { %2233 = vmatmul.mubr.msk.bf16.gmra.mrb[20].mxu0 %vm298_vm0, %v766_v14  ;;  %2258 = vmatprep.subr.bf16.mxu0 %v3204_v43  ;;  %v971_v44 = vpop.xlane.xlu0 %970 }
 0x482   : > { %v1007_v41 = vmul.f32 1.442695, %v996_v40  ;;  %v993_v45 = vsub.f32 %v3158_v12, %v971_v44  ;;  %2542 = vpow2.f32 %v1005_v53 }
 0x483   : > { %v974_v28 = vpop.xlane.xlu1 %973 }
 0x484   : > { %2544 = vpow2.f32 %v1007_v41  ;;  %v1001_v46 = vmul.f32 1.442695, %v993_v45  ;;  %v994_v11 = vsub.f32 %v3164_v18, %v974_v28  ;;  %2259 = vmatpush3.bf16.msra.mxu0 %v3204_v43 }
 0x485   : > { %v989_v47 = vpop.xlane.xlu0 %988 }
 0x486   : > { %v1003_v50 = vmul.f32 1.442695, %v994_v11  ;;  %2546 = vpow2.f32 %v1001_v46  ;;  %v999_v17 = vsub.f32 %v3172_v25, %v989_v47 }
 0x487   : > { %v1165_v58 = vpop.permute.xlu1 %1164 }
 0x488   : > { %2548 = vpow2.f32 %v1003_v50  ;;  %v1013_v52 = vmul.f32 1.442695, %v999_v17  ;;  %v1186_v63 = vsel %vm601_vm1, %v1165_v58, 0 }
 0x489   : > { %v983_v42 = vpop.xlane.xlu0 %982 }
 0x48a   : > { %2550 = vpow2.f32 %v1013_v52  ;;  %v997_v5 = vsub.f32 %v3174_v30, %v983_v42 }
 0x48b   : > { %v1167_v1 = vpop.permute.xlu1 %1166 }
 0x48c   : > { %v3250_v51 = vpop.eup %2542  ;;  %v1189_v38 = vsel %vm601_vm1, %v1167_v1, 0  ;;  %v1009_v0 = vmul.f32 1.442695, %v997_v5 }
 0x48d   : > { %v992_v21 = vpop.xlane.xlu0 %991 }
 0x48e   : > { %v3252_v12 = vpop.eup %2544  ;;  %v1000_v54 = vsub.f32 %v3178_v32, %v992_v21 }
 0x48f   : > { %v1042_v18 = vpack.c.bf16 %v3252_v12, %v3250_v51 }
 0x490   : > { %v1015_v29 = vmul.f32 1.442695, %v1000_v54  ;;  %v3257_v43 = vpop.eup %2546 }
 0x491   : > { %v1163_v55 = vpop.permute.xlu0 %1162 }
 0x492   : > { %v3259_v56 = vpop.eup %2548  ;;  %2552 = vpow2.f32 %v1015_v29  ;;  %2364 = vmatprep.subr.msk.bf16.mxu0 %vm601_vm1, %v1163_v55  ;;  %v1183_v32 = vsel %vm601_vm1, %v1163_v55, 0 }
 0x493   : > { %v1041_v25 = vpack.c.bf16 %v3259_v56, %v3257_v43  ;;  %2554 = vpow2.f32 %v1009_v0 }
 0x494   : > { %v3268_v60 = vpop.eup %2550 }
 0x495   : > { %2260 = vmatprep.mubr.msk.bf16.mxu0 %vm298_vm0, %v1041_v25  ;;  %v1155_v57 = vpop.permute.xlu0 %1154 }
 0x496   : > { %2261 = vmatmul.mubr.msk.bf16.vlgmr.msra.gmra.mrb[24].mxu0 %vm298_vm0, %v1042_v18 }
 0x497   : > { %2269 = vmatpush3.bf16.xpose.msra.mxu0 %v1183_v32 }
 0x498   : > { %2365 = vmatprep.subr.msk.bf16.mxu0 %vm601_vm1, %v1165_v58 }
 0x499   : > { %v1159_v59 = vpop.permute.xlu0 %1158 }
 0x49c   : > { %v3270_v39 = vpop.eup %2552 }
 0x49d   : > { %v1336_v61 = vpop.permute.xlu0 %1335  ;;  %v1044_v62 = vpack.c.bf16 %v3270_v39, %v3268_v60  ;;  %v3281_v40 = vpop.eup %2554 }
 0x49e   : > { %2284 = vmatprep.subr.bf16.mxu1 %v1336_v61 }
 0x49f   : > { %2271 = vmatpush3.bf16.xpose.msra.mxu0 %v1186_v63  ;;  %2285 = vmatpush3.bf16.msra.mxu1 %v1336_v61 }
 0x4a0   : > { %2366 = vmatprep.subr.msk.bf16.mxu0 %vm601_vm1, %v1167_v1 }
 0x4a7   : > { %2273 = vmatpush3.bf16.xpose.msra.mxu0 %v1189_v38 }
 0x4bc   : > { %v986_v9 = vpop.xlane.xlu1 %985 }
 0x4bd   : > { %v998_v14 = vsub.f32 %v3180_v33, %v986_v9 }
 0x4bf   : > { %v1011_v23 = vmul.f32 1.442695, %v998_v14 }
 0x4c0   : > { %v1169_v31 = vpop.permute.xlu1 %1168 }
 0x4c1   : > { %2556 = vpow2.f32 %v1011_v23  ;;  %v1192_v34 = vsel %vm601_vm1, %v1169_v31, 0  ;;  %2367 = vmatprep.subr.msk.bf16.mxu0 %vm601_vm1, %v1169_v31 }
 0x4c2   : > { %2275 = vmatpush3.bf16.xpose.msra.mxu0 %v1192_v34 }
 0x4c4   : > { %v1157_v36 = vpop.permute.xlu1 %1156 }
 0x4c8   : > { %v1161_v53 = vpop.permute.xlu1 %1160 }
 0x4cb   : > { %v3283_v44 = vpop.eup %2556 }
 0x4cc   : > { %v1338_v30 = vpop.permute.xlu1 %1337  ;;  %v1043_v41 = vpack.c.bf16 %v3283_v44, %v3281_v40 }
 0x4cd   : > { %2286 = vmatprep.subr.bf16.mxu1 %v1338_v30 }
 0x4ce   : > { %2264 = vmatprep.mubr.msk.bf16.mxu0 %vm298_vm0, %v1043_v41  ;;  %2287 = vmatpush3.bf16.msra.mxu1 %v1338_v30 }
 0x4cf   : > { %2265 = vmatmul.mubr.msk.bf16.gmra.mrb[28].mxu0 %vm298_vm0, %v1044_v62 }
 0x4d0   : > { %v1340_v33 = vpop.permute.xlu1 %1339  ;;  %2276 = vmatprep.mubr.msk.bf16.mxu0 %vm601_vm1, %v1155_v57 }
 0x4d1   : > { %2288 = vmatprep.subr.bf16.mxu1 %v1340_v33 }
 0x4d2   : > { %2289 = vmatpush3.bf16.msra.mxu1 %v1340_v33 }
 0x4d4   : > { %v1342_v45 = vpop.permute.xlu1 %1341 }
 0x4d5   : > { %2290 = vmatprep.subr.bf16.mxu1 %v1342_v45 }
 0x4d6   : > { %2291 = vmatpush3.bf16.msra.mxu1 %v1342_v45 }
 0x4d7   : > { %2277 = vmatmul.mubr.msk.bf16.vlgmr.msra.gmra.mrb[32].mxu0 %vm601_vm1, %v1157_v36 }
 0x4d8   : > { %2280 = vmatprep.mubr.msk.bf16.mxu0 %vm601_vm1, %v1159_v59 }
 0x4df   : > { %2281 = vmatmul.mubr.msk.bf16.gmra.mrb[36].mxu0 %vm601_vm1, %v1161_v53 }
 0x54a   : > { %v3293_v28 = vpop.f32.mrb[16].mxu0 }
 0x54b   : > { %v3295_v46 = vpop.f32.mrb[17].mxu0 }
 0x54c   : > { %v3297_v11 = vpop.f32.mrb[18].mxu0 }
 0x54d   : > { %v3299_v47 = vpop.f32.mrb[19].mxu0 }
 0x554   : > { %v3301_v50 = vpop.f32.mrb[20].mxu0 }
 0x555   : > { %v3303_v17 = vpop.f32.mrb[21].mxu0 }
 0x556   : > { %v3305_v42 = vpop.f32.mrb[22].mxu0 }
 0x557   : > { %v3307_v52 = vpop.f32.mrb[23].mxu0 }
 0x569   : > { %v3309_v21 = vpop.f32.mrb[24].mxu0 }
 0x56a   : > { %v3311_v54 = vpop.f32.mrb[25].mxu0 }
 0x56b   : > { %v3313_v18 = vpop.f32.mrb[26].mxu0 }
 0x56c   : > { %v3315_v29 = vpop.f32.mrb[27].mxu0 }
 0x5a2   : > { %v3317_v55 = vpop.f32.mrb[28].mxu0 }
 0x5a3   : > { %v3319_v25 = vpop.f32.mrb[29].mxu0 }
 0x5a4   : > { %v3321_v57 = vpop.f32.mrb[30].mxu0 }
 0x5a5   : > { %v3323_v32 = vpop.f32.mrb[31].mxu0 }
 0x5aa   : > { %v2278_v58 = vpop.f32.mrb[32].mxu0 }
 0x5ab   : > { %v1228_v59 = vpop.f32.mrb[33].mxu0  ;;  %v1265_v61 = vsel %vm298_vm0, %v2278_v58, -inf }
 0x5ac   : > { %1266 = vmax.xlane.f32.xlu0 %v1265_v61  ;;  %v2279_v62 = vpop.f32.mrb[34].mxu0  ;;  %v1259_v38 = vsel %vm298_vm0, %v1228_v59, -inf }
 0x5ad   : > { %v1231_v63 = vpop.f32.mrb[35].mxu0  ;;  %v1268_v9 = vsel %vm298_vm0, %v2279_v62, -inf }
 0x5ae   : > { %v1262_v1 = vsel %vm298_vm0, %v1231_v63, -inf }
 0x5af   : > { %1263 = vmax.xlane.f32.xlu1 %v1262_v1 }
 0x5b0   : > { %1260 = vmax.xlane.f32.xlu0 %v1259_v38 }
 0x5b2   : > { %v2282_v5 = vpop.f32.mrb[36].mxu0 }
 0x5b3   : > { %v3328_v0 = vpop.f32.mrb[37].mxu0  ;;  %v1277_v31 = vsel %vm298_vm0, %v2282_v5, -inf }
 0x5b4   : > { %1269 = vmax.xlane.f32.xlu0 %v1268_v9  ;;  %v2283_v14 = vpop.f32.mrb[38].mxu0  ;;  %v1271_v34 = vsel %vm298_vm0, %v3328_v0, -inf }
 0x5b5   : > { %v3331_v23 = vpop.f32.mrb[39].mxu0  ;;  %v1280_v36 = vsel %vm298_vm0, %v2283_v14, -inf }
 0x5b6   : > { %v1274_v53 = vsel %vm298_vm0, %v3331_v23, -inf }
 0x5b8   : > { %1278 = vmax.xlane.f32.xlu0 %v1277_v31 }
 0x5bc   : > { %1272 = vmax.xlane.f32.xlu0 %v1271_v34 }
 0x5c0   : > { %1450 = vrot.lane.b32.xlu1 %v3051_v13, %s2772_s19  ;;  %1281 = vmax.xlane.f32.xlu0 %v1280_v36 }
 0x5c4   : > { %1452 = vrot.lane.b32.xlu1 %v3061_v24, %s2772_s19 }
 0x5d6   : > { %1448 = vrot.lane.b32.xlu0 %v3037_v6, %s2772_s19 }
 0x5da   : > { %1440 = vrot.lane.b32.xlu0 %v3041_v8, %s2773_s20 }
 0x5de   : > { %1444 = vrot.lane.b32.xlu0 %v3065_v27, %s2773_s20 }
 0x5e8   : > { %1275 = vmax.xlane.f32.xlu1 %v1274_v53 }
 0x5f9   : > { %1454 = vrot.lane.b32.xlu1 %v3074_v35, %s2772_s19 }
 0x5fd   : > { %1442 = vrot.lane.b32.xlu1 %v3055_v16, %s2773_s20 }
 0x601   : > { %1446 = vrot.lane.b32.xlu1 %v3078_v37, %s2773_s20 }
 0x639   : > { %v1267_v6 = vpop.xlane.xlu0 %1266 }
 0x63a   : > { %v1285_v24 = vsub.f32 %v2278_v58, %v1267_v6 }
 0x63c   : > { %v1264_v13 = vpop.xlane.xlu1 %1263  ;;  %v1295_v45 = vmul.f32 1.442695, %v1285_v24 }
 0x63d   : > { %v1284_v8 = vsub.f32 %v1231_v63, %v1264_v13  ;;  %v1261_v30 = vpop.xlane.xlu0 %1260 }
 0x63e   : > { %v1283_v41 = vsub.f32 %v1228_v59, %v1261_v30 }
 0x63f   : > { %v1293_v27 = vmul.f32 1.442695, %v1284_v8 }
 0x640   : > { %v1291_v33 = vmul.f32 1.442695, %v1283_v41 }
 0x641   : > { %2558 = vpow2.f32 %v1293_v27  ;;  %v1270_v61 = vpop.xlane.xlu0 %1269 }
 0x642   : > { %2560 = vpow2.f32 %v1291_v33  ;;  %v1286_v1 = vsub.f32 %v2279_v62, %v1270_v61 }
 0x643   : > { %2562 = vpow2.f32 %v1295_v45 }
 0x644   : > { %v1297_v35 = vmul.f32 1.442695, %v1286_v1 }
 0x645   : > { %v1279_v38 = vpop.xlane.xlu0 %1278 }
 0x646   : > { %2564 = vpow2.f32 %v1297_v35  ;;  %v1289_v16 = vsub.f32 %v2282_v5, %v1279_v38 }
 0x648   : > { %v1303_v58 = vmul.f32 1.442695, %v1289_v16 }
 0x649   : > { %v1273_v9 = vpop.xlane.xlu0 %1272 }
 0x64a   : > { %2566 = vpow2.f32 %v1303_v58  ;;  %v1287_v45 = vsub.f32 %v3328_v0, %v1273_v9 }
 0x64b   : > { %v3355_v37 = vpop.eup %2558 }
 0x64c   : > { %v3357_v31 = vpop.eup %2560  ;;  %v1299_v61 = vmul.f32 1.442695, %v1287_v45 }
 0x64d   : > { %v1282_v63 = vpop.xlane.xlu0 %1281  ;;  %v1331_v59 = vpack.c.bf16 %v3355_v37, %v3357_v31  ;;  %v3361_v36 = vpop.eup %2562 }
 0x64e   : > { %v1290_v34 = vsub.f32 %v2283_v14, %v1282_v63  ;;  %v1451_v14 = vpop.permute.xlu1 %1450 }
 0x64f   : > { %2292 = vmatprep.mubr.msk.bf16.mxu1 %vm298_vm0, %v1331_v59  ;;  %v1472_v8 = vsel %vm601_vm1, %v1451_v14, 0 }
 0x650   : > { %v3364_v62 = vpop.eup %2564  ;;  %v1305_v53 = vmul.f32 1.442695, %v1290_v34 }
 0x651   : > { %v1332_v5 = vpack.c.bf16 %v3364_v62, %v3361_v36  ;;  %v1449_v6 = vpop.permute.xlu0 %1448 }
 0x652   : > { %2568 = vpow2.f32 %v1305_v53  ;;  %v1469_v13 = vsel %vm601_vm1, %v1449_v6, 0  ;;  %2368 = vmatprep.subr.msk.bf16.mxu1 %vm601_vm1, %v1449_v6  ;;  %v1453_v41 = vpop.permute.xlu1 %1452 }
 0x653   : > { %2293 = vmatmul.mubr.msk.bf16.vlgmr.msra.gmra.mrb[16].mxu1 %vm298_vm0, %v1332_v5  ;;  %v1475_v33 = vsel %vm601_vm1, %v1453_v41, 0  ;;  %2570 = vpow2.f32 %v1299_v61 }
 0x654   : > { %2301 = vmatpush3.bf16.xpose.msra.mxu1 %v1469_v13  ;;  %v3372_v24 = vpop.eup %2566 }
 0x655   : > { %2369 = vmatprep.subr.msk.bf16.mxu1 %vm601_vm1, %v1451_v14  ;;  %v1441_v0 = vpop.permute.xlu0 %1440 }
 0x659   : > { %v1445_v9 = vpop.permute.xlu0 %1444 }
 0x65c   : > { %v3375_v30 = vpop.eup %2568  ;;  %2303 = vmatpush3.bf16.xpose.msra.mxu1 %v1472_v8 }
 0x65d   : > { %2370 = vmatprep.subr.msk.bf16.mxu1 %vm601_vm1, %v1453_v41  ;;  %v1334_v27 = vpack.c.bf16 %v3375_v30, %v3372_v24  ;;  %v2571_v63 = vpop.eup %2570 }
 0x664   : > { %2305 = vmatpush3.bf16.xpose.msra.mxu1 %v1475_v33 }
 0x675   : > { %v1276_v1 = vpop.xlane.xlu1 %1275 }
 0x676   : > { %v1288_v35 = vsub.f32 %v3331_v23, %v1276_v1 }
 0x678   : > { %v1301_v38 = vmul.f32 1.442695, %v1288_v35 }
 0x679   : > { %v1455_v16 = vpop.permute.xlu1 %1454 }
 0x67a   : > { %2572 = vpow2.f32 %v1301_v38  ;;  %v1478_v58 = vsel %vm601_vm1, %v1455_v16, 0  ;;  %2371 = vmatprep.subr.msk.bf16.mxu1 %vm601_vm1, %v1455_v16 }
 0x67b   : > { %2307 = vmatpush3.bf16.xpose.msra.mxu1 %v1478_v58 }
 0x67d   : > { %v1443_v23 = vpop.permute.xlu1 %1442 }
 0x681   : > { %v1447_v53 = vpop.permute.xlu1 %1446 }
 0x684   : > { %v3385_v59 = vpop.eup %2572 }
 0x685   : > { %v1333_v34 = vpack.c.bf16 %v3385_v59, %v2571_v63 }
 0x687   : > { %2296 = vmatprep.mubr.msk.bf16.mxu1 %vm298_vm0, %v1333_v34 }
 0x688   : > { %2297 = vmatmul.mubr.msk.bf16.gmra.mrb[20].mxu1 %vm298_vm0, %v1334_v27 }
 0x689   : > { %2308 = vmatprep.mubr.msk.bf16.mxu1 %vm601_vm1, %v1441_v0 }
 0x690   : > { %2309 = vmatmul.mubr.msk.bf16.vlgmr.msra.gmra.mrb[24].mxu1 %vm601_vm1, %v1443_v23 }
 0x691   : > { %2312 = vmatprep.mubr.msk.bf16.mxu1 %vm601_vm1, %v1445_v9 }
 0x698   : > { %2313 = vmatmul.mubr.msk.bf16.gmra.mrb[28].mxu1 %vm601_vm1, %v1447_v53 }
 0x726   : > { %v3394_v5 = vpop.f32.mrb[16].mxu1 }
 0x727   : > { %v3396_v6 = vpop.f32.mrb[17].mxu1 }
 0x728   : > { %v3398_v13 = vpop.f32.mrb[18].mxu1 }
 0x729   : > { %v3400_v14 = vpop.f32.mrb[19].mxu1 }
 0x75b   : > { %v3402_v8 = vpop.f32.mrb[20].mxu1 }
 0x75c   : > { %v3404_v41 = vpop.f32.mrb[21].mxu1 }
 0x75d   : > { %v3406_v27 = vpop.f32.mrb[22].mxu1 }
 0x75e   : > { %v3408_v33 = vpop.f32.mrb[23].mxu1 }
 0x763   : > { %v2310_v45 = vpop.f32.mrb[24].mxu1 }
 0x764   : > { %v3410_v61 = vpop.f32.mrb[25].mxu1  ;;  %v1551_v1 = vsel %vm298_vm0, %v2310_v45, -inf }
 0x765   : > { %1552 = vmax.xlane.f32.xlu0 %v1551_v1  ;;  %v3413_v35 = vpop.f32.mrb[26].mxu1  ;;  %v1545_v58 = vsel %vm298_vm0, %v3410_v61, -inf }
 0x766   : > { %v3415_v38 = vpop.f32.mrb[27].mxu1  ;;  %v1554_v23 = vsel %vm298_vm0, %v3413_v35, -inf }
 0x767   : > { %v1548_v16 = vsel %vm298_vm0, %v3415_v38, -inf }
 0x768   : > { %1549 = vmax.xlane.f32.xlu1 %v1548_v16 }
 0x769   : > { %1546 = vmax.xlane.f32.xlu0 %v1545_v58 }
 0x76b   : > { %v3421_v34 = vpop.f32.mrb[28].mxu1 }
 0x76c   : > { %v3423_v0 = vpop.f32.mrb[29].mxu1  ;;  %v1563_v1 = vsel %vm298_vm0, %v3421_v34, -inf }
 0x76d   : > { %1555 = vmax.xlane.f32.xlu0 %v1554_v23  ;;  %v3427_v9 = vpop.f32.mrb[30].mxu1  ;;  %v1557_v16 = vsel %vm298_vm0, %v3423_v0, -inf }
 0x76e   : > { %v3429_v53 = vpop.f32.mrb[31].mxu1  ;;  %v1566_v58 = vsel %vm298_vm0, %v3427_v9, -inf }
 0x76f   : > { %v1560_v23 = vsel %vm298_vm0, %v3429_v53, -inf }
 0x771   : > { %1564 = vmax.xlane.f32.xlu0 %v1563_v1  ;;  %v1017_v1 = vsel %vm298_vm0, %v3257_v43, 0.0  ;;  %v1307_v43 = vsel %vm298_vm0, %v3357_v31, 0.0  ;;  %v1038_v31 = vsel %vm298_vm0, %v3270_v39, 0.0 }
 0x775   : > { %1558 = vmax.xlane.f32.xlu0 %v1557_v16  ;;  %v1035_v16 = vsel %vm298_vm0, %v3268_v60, 0.0  ;;  %v1026_v60 = vsel %vm298_vm0, %v3252_v12, 0.0  ;;  %v1328_v12 = vsel %vm298_vm0, %v3375_v30, 0.0 }
 0x779   : > { %1623 = vrot.lane.b32.xlu1 %v3053_v15, %s2773_s20  ;;  %v1029_v15 = vsel %vm298_vm0, %v3281_v40, 0.0  ;;  %v1319_v40 = vsel %vm298_vm0, %v2571_v63, 0.0 }
 0x77d   : > { %1625 = vrot.lane.b32.xlu1 %v3063_v26, %s2773_s20  ;;  %v1032_v26 = vsel %vm298_vm0, %v3283_v44, 0.0  ;;  %v1313_v44 = vsel %vm298_vm0, %v3361_v36, 0.0  ;;  %v1310_v36 = vsel %vm298_vm0, %v3355_v37, 0.0 }
 0x78b   : > { %1621 = vrot.lane.b32.xlu0 %v3039_v7, %s2773_s20  ;;  %v1023_v7 = vsel %vm298_vm0, %v3250_v51, 0.0  ;;  %v1325_v51 = vsel %vm298_vm0, %v3372_v24, 0.0  ;;  %v1322_v24 = vsel %vm298_vm0, %v3385_v59, 0.0 }
 0x7a1   : > { %1567 = vmax.xlane.f32.xlu1 %v1566_v58 }
 0x7a5   : > { %1561 = vmax.xlane.f32.xlu1 %v1560_v23 }
 0x7aa   : > { %1018 = vadd.xlane.f32.xlu0 %v1017_v1 }
 0x7ae   : > { %1030 = vadd.xlane.f32.xlu0 %v1029_v15 }
 0x7b2   : > { %1033 = vadd.xlane.f32.xlu0 %v1032_v26 }
 0x7b6   : > { %1024 = vadd.xlane.f32.xlu0 %v1023_v7  ;;  %1627 = vrot.lane.b32.xlu1 %v3076_v20, %s2773_s20  ;;  %v1020_v20 = vsel %vm298_vm0, %v3259_v56, 0.0  ;;  %v1316_v56 = vsel %vm298_vm0, %v3364_v62, 0.0 }
 0x7ba   : > { %1036 = vadd.xlane.f32.xlu0 %v1035_v16 }
 0x7be   : > { %1308 = vadd.xlane.f32.xlu0 %v1307_v43 }
 0x7c2   : > { %1320 = vadd.xlane.f32.xlu0 %v1319_v40 }
 0x7c6   : > { %1314 = vadd.xlane.f32.xlu0 %v1313_v44 }
 0x7ca   : > { %1326 = vadd.xlane.f32.xlu0 %v1325_v51 }
 0x7da   : > { %1021 = vadd.xlane.f32.xlu1 %v1020_v20 }
 0x7de   : > { %1027 = vadd.xlane.f32.xlu1 %v1026_v60 }
 0x7e2   : > { %1039 = vadd.xlane.f32.xlu1 %v1038_v31 }
 0x7e6   : > { %1311 = vadd.xlane.f32.xlu1 %v1310_v36 }
 0x7ea   : > { %1323 = vadd.xlane.f32.xlu1 %v1322_v24 }
 0x7ee   : > { %1317 = vadd.xlane.f32.xlu1 %v1316_v56 }
 0x7f2   : > { %1329 = vadd.xlane.f32.xlu1 %v1328_v12  ;;  %v1553_v63 = vpop.xlane.xlu0 %1552 }
 0x7f3   : > { %v1571_v58 = vsub.f32 %v2310_v45, %v1553_v63 }
 0x7f5   : > { %v1581_v39 = vmul.f32 1.442695, %v1571_v58  ;;  %v1550_v23 = vpop.xlane.xlu1 %1549 }
 0x7f6   : > { %v1570_v1 = vsub.f32 %v3415_v38, %v1550_v23  ;;  %v1547_v37 = vpop.xlane.xlu0 %1546 }
 0x7f7   : > { %2574 = vpow2.f32 %v1581_v39  ;;  %v1569_v15 = vsub.f32 %v3410_v61, %v1547_v37  ;;  %v739_v37 = vsel %vm298_vm0, %v3216_v48, 0.0 }
 0x7f8   : > { %v1579_v59 = vmul.f32 1.442695, %v1570_v1 }
 0x7f9   : > { %v1577_v26 = vmul.f32 1.442695, %v1569_v15  ;;  %v1624_v31 = vpop.permute.xlu1 %1623  ;;  %v751_v15 = vsel %vm298_vm0, %v3237_v22, 0.0 }
 0x7fa   : > { %2576 = vpow2.f32 %v1579_v59  ;;  %v1556_v7 = vpop.xlane.xlu0 %1555  ;;  %v745_v59 = vsel %vm298_vm0, %v3220_v2, 0.0 }
 0x7fb   : > { %2578 = vpow2.f32 %v1577_v26  ;;  %v1572_v62 = vsub.f32 %v3413_v35, %v1556_v7  ;;  %v757_v26 = vsel %vm298_vm0, %v3230_v10, 0.0 }
 0x7fd   : > { %v1583_v16 = vmul.f32 1.442695, %v1572_v62  ;;  %v1626_v12 = vpop.permute.xlu1 %1625 }
 0x7fe   : > { %v1565_v30 = vpop.xlane.xlu0 %1564 }
 0x7ff   : > { %2580 = vpow2.f32 %v1583_v16  ;;  %v1575_v45 = vsub.f32 %v3421_v34, %v1565_v30 }
 0x801   : > { %v2575_v43 = vpop.eup %2574  ;;  %v1589_v20 = vmul.f32 1.442695, %v1575_v45 }
 0x802   : > { %v1559_v40 = vpop.xlane.xlu0 %1558  ;;  %v1599_v38 = vsel %vm298_vm0, %v2575_v43, 0.0 }
 0x803   : > { %v1573_v44 = vsub.f32 %v3423_v0, %v1559_v40  ;;  %1600 = vadd.xlane.f32.xlu0 %v1599_v38 }
 0x804   : > { %v2577_v61 = vpop.eup %2576 }
 0x805   : > { %v2579_v51 = vpop.eup %2578  ;;  %v1585_v60 = vmul.f32 1.442695, %v1573_v44  ;;  %v1596_v63 = vsel %vm298_vm0, %v2577_v61, 0.0 }
 0x806   : > { %v1622_v36 = vpop.permute.xlu0 %1621  ;;  %v1593_v35 = vsel %vm298_vm0, %v2579_v51, 0.0  ;;  %v1617_v24 = vpack.c.bf16 %v2577_v61, %v2579_v51 }
 0x807   : > { %2582 = vpow2.f32 %v1585_v60  ;;  %1594 = vadd.xlane.f32.xlu0 %v1593_v35  ;;  %2316 = vmatprep.subr.bf16.mxu0 %v1622_v36  ;;  %v742_v60 = vsel %vm298_vm0, %v3214_v4, 0.0 }
 0x808   : > { %2317 = vmatpush3.bf16.msra.mxu0 %v1622_v36  ;;  %2324 = vmatprep.mubr.msk.bf16.mxu0 %vm298_vm0, %v1617_v24  ;;  %2584 = vpow2.f32 %v1589_v20  ;;  %v754_v24 = vsel %vm298_vm0, %v3235_v19, 0.0 }
 0x809   : > { %v2581_v34 = vpop.eup %2580  ;;  %2318 = vmatprep.subr.bf16.mxu0 %v1624_v31 }
 0x80a   : > { %v1618_v0 = vpack.c.bf16 %v2581_v34, %v2575_v43  ;;  %v1602_v56 = vsel %vm298_vm0, %v2581_v34, 0.0  ;;  %v748_v34 = vsel %vm298_vm0, %v3223_v49, 0.0 }
 0x80b   : > { %1603 = vadd.xlane.f32.xlu1 %v1602_v56 }
 0x80c   : > { %2319 = vmatpush3.bf16.msra.mxu0 %v1624_v31 }
 0x80d   : > { %2320 = vmatprep.subr.bf16.mxu0 %v1626_v12 }
 0x80f   : > { %1597 = vadd.xlane.f32.xlu1 %v1596_v63 }
 0x810   : > { %2321 = vmatpush3.bf16.msra.mxu0 %v1626_v12 }
 0x811   : > { %v2583_v58 = vpop.eup %2582 }
 0x812   : > { %v1605_v39 = vsel %vm298_vm0, %v2583_v58, 0.0  ;;  %v2585_v23 = vpop.eup %2584 }
 0x813   : > { %1606 = vadd.xlane.f32.xlu0 %v1605_v39  ;;  %v1611_v1 = vsel %vm298_vm0, %v2585_v23, 0.0 }
 0x817   : > { %1612 = vadd.xlane.f32.xlu0 %v1611_v1 }
 0x81b   : > { %740 = vadd.xlane.f32.xlu0 %v739_v37 }
 0x81f   : > { %752 = vadd.xlane.f32.xlu0 %v751_v15 }
 0x823   : > { %746 = vadd.xlane.f32.xlu0 %v745_v59 }
 0x827   : > { %758 = vadd.xlane.f32.xlu0 %v757_v26 }
 0x82e   : > { %v1568_v7 = vpop.xlane.xlu1 %1567 }
 0x82f   : > { %v1576_v62 = vsub.f32 %v3427_v9, %v1568_v7 }
 0x831   : > { %v1591_v16 = vmul.f32 1.442695, %v1576_v62 }
 0x832   : > { %v1562_v30 = vpop.xlane.xlu1 %1561 }
 0x833   : > { %2586 = vpow2.f32 %v1591_v16  ;;  %v1574_v48 = vsub.f32 %v3429_v53, %v1562_v30 }
 0x835   : > { %v1587_v43 = vmul.f32 1.442695, %v1574_v48 }
 0x836   : > { %v1628_v45 = vpop.permute.xlu1 %1627 }
 0x837   : > { %2588 = vpow2.f32 %v1587_v43  ;;  %2322 = vmatprep.subr.bf16.mxu0 %v1628_v45  ;;  %v1019_v22 = vpop.xlane.xlu0 %1018 }
 0x838   : > { %2323 = vmatpush3.bf16.msra.mxu0 %v1628_v45 }
 0x83b   : > { %2325 = vmatmul.mubr.msk.bf16.vlgmr.msra.gmra.mrb[40].mxu0 %vm298_vm0, %v1618_v0  ;;  %v1031_v2 = vpop.xlane.xlu0 %1030  ;;  %v760_v0 = vsel %vm298_vm0, %v3227_v3, 0.0 }
 0x83c   : > { %2590 = vrcp.f32 %v1031_v2 }
 0x83d   : > { %v2587_v40 = vpop.eup %2586 }
 0x83e   : > { %v1620_v10 = vpack.c.bf16 %v2587_v40, %v2585_v23  ;;  %v1614_v53 = vsel %vm298_vm0, %v2587_v40, 0.0 }
 0x83f   : > { %v1034_v38 = vpop.xlane.xlu0 %1033 }
 0x840   : > { %2592 = vrcp.f32 %v1034_v38 }
 0x841   : > { %v2589_v9 = vpop.eup %2588  ;;  %2594 = vrcp.f32 %v1019_v22 }
 0x842   : > { %v1608_v44 = vsel %vm298_vm0, %v2589_v9, 0.0  ;;  %v1619_v61 = vpack.c.bf16 %v2589_v9, %v2583_v58 }
 0x843   : > { %1609 = vadd.xlane.f32.xlu1 %v1608_v44  ;;  %v1025_v56 = vpop.xlane.xlu0 %1024 }
 0x844   : > { %2328 = vmatprep.mubr.msk.bf16.mxu0 %vm298_vm0, %v1619_v61 }
 0x845   : > { %2329 = vmatmul.mubr.msk.bf16.gmra.mrb[44].mxu0 %vm298_vm0, %v1620_v10 }
 0x846   : > { %v2591_v51 = vpop.eup %2590 }
 0x847   : > { %1615 = vadd.xlane.f32.xlu1 %v1614_v53  ;;  %v1150_v31 = vmul.f32 %v2591_v51, %v3319_v25  ;;  %v1037_v4 = vpop.xlane.xlu0 %1036 }
 0x84a   : > { %v2593_v20 = vpop.eup %2592 }
 0x84b   : > { %743 = vadd.xlane.f32.xlu1 %v742_v60  ;;  %v1151_v36 = vmul.f32 %v2593_v20, %v3323_v32  ;;  %v1309_v25 = vpop.xlane.xlu0 %1308  ;;  %v2595_v49 = vpop.eup %2594 }
 0x84c   : > { %v1146_v39 = vmul.f32 %v2595_v49, %v3311_v54 }
 0x84d   : > { %v2439_v35 = vpack.i.bf16 %v1151_v36, %v1150_v31 }
 0x84f   : > { %755 = vadd.xlane.f32.xlu1 %v754_v24  ;;  %v1321_v19 = vpop.xlane.xlu0 %1320  ;;  %v2507_v24 = vld [vmem:[#allocation4 + $0x8] sm:$0xff]  }
 0x853   : > { %749 = vadd.xlane.f32.xlu1 %v748_v34  ;;  %v1315_v37 = vpop.xlane.xlu0 %1314 }
 0x857   : > { %761 = vadd.xlane.f32.xlu1 %v760_v0  ;;  %v1327_v54 = vpop.xlane.xlu0 %1326 }
 0x867   : > { %v1022_v12 = vpop.xlane.xlu1 %1021 }
 0x868   : > { %2596 = vrcp.f32 %v1022_v12  ;;  %2440 = vrot.lane.b32.xlu1 %v2439_v35, %s2772_s19 }
 0x869   : > { %2598 = vrcp.f32 %v1025_v56  ;;  %v2508_v56 = vld [vmem:[#allocation4 + $0x10] sm:$0xff]  }
 0x86b   : > { %v1028_v32 = vpop.xlane.xlu1 %1027 }
 0x86c   : > { %2600 = vrcp.f32 %v1028_v32 }
 0x86d   : > { %2602 = vrcp.f32 %v1037_v4 }
 0x86f   : > { %v1040_v63 = vpop.xlane.xlu1 %1039 }
 0x870   : > { %2604 = vrcp.f32 %v1040_v63 }
 0x871   : > { %2606 = vrcp.f32 %v1309_v25  ;;  %v2509_v25 = vld [vmem:[#allocation4 + $0x18] sm:$0xff]  }
 0x872   : > { %v2597_v58 = vpop.eup %2596 }
 0x873   : > { %v1312_v3 = vpop.xlane.xlu1 %1311  ;;  %v1147_v23 = vmul.f32 %v2597_v58, %v3315_v29  ;;  %v2599_v1 = vpop.eup %2598 }
 0x874   : > { %2608 = vrcp.f32 %v1312_v3  ;;  %v1148_v7 = vmul.f32 %v2599_v1, %v3309_v21 }
 0x875   : > { %v2434_v15 = vpack.i.bf16 %v1147_v23, %v1146_v39  ;;  %2610 = vrcp.f32 %v1321_v19 }
 0x876   : > { %v2601_v59 = vpop.eup %2600 }
 0x877   : > { %v1324_v26 = vpop.xlane.xlu1 %1323  ;;  %2435 = vrot.lane.b32.xlu0 %v2434_v15, %s2772_s19  ;;  %v1149_v62 = vmul.f32 %v2601_v59, %v3313_v18  ;;  %v2603_v16 = vpop.eup %2602 }
 0x878   : > { %2612 = vrcp.f32 %v1324_v26  ;;  %v1152_v43 = vmul.f32 %v2603_v16, %v3317_v55 }
 0x879   : > { %v2444_v30 = vpack.i.bf16 %v1149_v62, %v1148_v7  ;;  %2614 = vrcp.f32 %v1315_v37 }
 0x87a   : > { %v2605_v48 = vpop.eup %2604 }
 0x87b   : > { %v1318_v29 = vpop.xlane.xlu1 %1317  ;;  %2445 = vrot.lane.b32.xlu1 %v2444_v30, %s2772_s19  ;;  %v1153_v45 = vmul.f32 %v2605_v48, %v3321_v57  ;;  %v2607_v22 = vpop.eup %2606 }
 0x87c   : > { %2616 = vrcp.f32 %v1318_v29  ;;  %v1432_v18 = vmul.f32 %v2607_v22, %v3396_v6 }
 0x87d   : > { %v2449_v2 = vpack.i.bf16 %v1153_v45, %v1152_v43  ;;  %2618 = vrcp.f32 %v1327_v54 }
 0x87e   : > { %v2609_v40 = vpop.eup %2608 }
 0x87f   : > { %v1330_v21 = vpop.xlane.xlu1 %1329  ;;  %2450 = vrot.lane.b32.xlu1 %v2449_v2, %s2772_s19  ;;  %v1433_v10 = vmul.f32 %v2609_v40, %v3400_v14  ;;  %v2611_v38 = vpop.eup %2610 }
 0x880   : > { %2620 = vrcp.f32 %v1330_v21  ;;  %v1436_v55 = vmul.f32 %v2611_v38, %v3404_v41 }
 0x881   : > { %v2454_v9 = vpack.i.bf16 %v1433_v10, %v1432_v18 }
 0x882   : > { %v2613_v44 = vpop.eup %2612 }
 0x883   : > { %2455 = vrot.lane.b32.xlu0 %v2454_v9, %s2770_s24  ;;  %v1437_v57 = vmul.f32 %v2613_v44, %v3408_v33  ;;  %v2615_v61 = vpop.eup %2614  ;;  %v2506_v33 = vld [vmem:[#allocation4] sm:$0xff]  }
 0x884   : > { %v1434_v20 = vmul.f32 %v2615_v61, %v3394_v5  ;;  %2332 = vmatprep.subr.bf16.mxu0 %v2506_v33  ;;  %2348 = vmatprep.subr.bf16.mxu1 %v2506_v33 }
 0x885   : > { %v2459_v53 = vpack.i.bf16 %v1437_v57, %v1436_v55  ;;  %2333 = vmatpush3.bf16.msra.mxu0 %v2506_v33  ;;  %2352 = vmatpush3.bf16.msra.mxu1 %v2506_v33 }
 0x886   : > { %v2617_v51 = vpop.eup %2616  ;;  %2334 = vmatprep.subr.bf16.mxu0 %v2507_v24  ;;  %2349 = vmatprep.subr.bf16.mxu1 %v2507_v24 }
 0x887   : > { %2460 = vrot.lane.b32.xlu1 %v2459_v53, %s2770_s24  ;;  %v1435_v6 = vmul.f32 %v2617_v51, %v3398_v13  ;;  %v2619_v14 = vpop.eup %2618 }
 0x888   : > { %v1438_v36 = vmul.f32 %v2619_v14, %v3402_v8 }
 0x889   : > { %v2464_v60 = vpack.i.bf16 %v1435_v6, %v1434_v20  ;;  %2335 = vmatpush3.bf16.msra.mxu0 %v2507_v24  ;;  %2353 = vmatpush3.bf16.msra.mxu1 %v2507_v24 }
 0x88a   : > { %v2621_v31 = vpop.eup %2620  ;;  %2336 = vmatprep.subr.bf16.mxu0 %v2508_v56  ;;  %2350 = vmatprep.subr.bf16.mxu1 %v2508_v56 }
 0x88b   : > { %2465 = vrot.lane.b32.xlu0 %v2464_v60, %s2770_s24  ;;  %v1439_v41 = vmul.f32 %v2621_v31, %v3406_v27 }
 0x88d   : > { %v2469_v35 = vpack.i.bf16 %v1439_v41, %v1438_v36  ;;  %2337 = vmatpush3.bf16.msra.mxu0 %v2508_v56  ;;  %2354 = vmatpush3.bf16.msra.mxu1 %v2508_v56 }
 0x88e   : > { %2338 = vmatprep.subr.bf16.mxu0 %v2509_v25  ;;  %2351 = vmatprep.subr.bf16.mxu1 %v2509_v25 }
 0x88f   : > { %2470 = vrot.lane.b32.xlu1 %v2469_v35, %s2770_s24 }
 0x890   : > { %v1601_v5 = vpop.xlane.xlu0 %1600 }
 0x891   : > { %2622 = vrcp.f32 %v1601_v5  ;;  %2339 = vmatpush3.bf16.msra.mxu0 %v2509_v25  ;;  %2355 = vmatpush3.bf16.msra.mxu1 %v2509_v25 }
 0x894   : > { %v1595_v34 = vpop.xlane.xlu0 %1594 }
 0x895   : > { %2624 = vrcp.f32 %v1595_v34 }
 0x898   : > { %v1604_v13 = vpop.xlane.xlu1 %1603 }
 0x899   : > { %2626 = vrcp.f32 %v1604_v13 }
 0x89b   : > { %v2623_v32 = vpop.eup %2622 }
 0x89c   : > { %v1598_v0 = vpop.xlane.xlu1 %1597 }
 0x89d   : > { %2628 = vrcp.f32 %v1598_v0 }
 0x89f   : > { %v2625_v63 = vpop.eup %2624 }
 0x8a0   : > { %v1607_v8 = vpop.xlane.xlu0 %1606 }
 0x8a1   : > { %2630 = vrcp.f32 %v1607_v8 }
 0x8a3   : > { %v2627_v58 = vpop.eup %2626 }
 0x8a4   : > { %v1613_v4 = vpop.xlane.xlu0 %1612 }
 0x8a5   : > { %2632 = vrcp.f32 %v1613_v4 }
 0x8a7   : > { %v2629_v39 = vpop.eup %2628 }
 0x8a8   : > { %v741_v9 = vpop.xlane.xlu0 %740 }
 0x8ab   : > { %v2631_v62 = vpop.eup %2630 }
 0x8ac   : > { %v753_v55 = vpop.xlane.xlu0 %752 }
 0x8af   : > { %v2633_v30 = vpop.eup %2632 }
 0x8b0   : > { %v747_v61 = vpop.xlane.xlu0 %746 }
 0x8b4   : > { %v759_v51 = vpop.xlane.xlu0 %758 }
 0x8d0   : > { %v1610_v27 = vpop.xlane.xlu1 %1609 }
 0x8d4   : > { %v1616_v12 = vpop.xlane.xlu1 %1615 }
 0x8d5   : > { %2634 = vrcp.f32 %v1616_v12 }
 0x8d6   : > { %2636 = vrcp.f32 %v1610_v27 }
 0x8d7   : > { %2638 = vrcp.f32 %v741_v9 }
 0x8d8   : > { %v744_v38 = vpop.xlane.xlu1 %743 }
 0x8d9   : > { %2640 = vrcp.f32 %v744_v38 }
 0x8da   : > { %2642 = vrcp.f32 %v747_v61 }
 0x8dc   : > { %v756_v44 = vpop.xlane.xlu1 %755 }
 0x8df   : > { %v2635_v54 = vpop.eup %2634 }
 0x8e0   : > { %v2637_v43 = vpop.eup %2636  ;;  %v750_v57 = vpop.xlane.xlu1 %749 }
 0x8e1   : > { %2644 = vrcp.f32 %v750_v57  ;;  %v2639_v31 = vpop.eup %2638 }
 0x8e2   : > { %2646 = vrcp.f32 %v756_v44  ;;  %v852_v24 = vmul.f32 %v2639_v31, %v3295_v46 }
 0x8e3   : > { %v2641_v36 = vpop.eup %2640  ;;  %2648 = vrcp.f32 %v753_v55 }
 0x8e4   : > { %v762_v53 = vpop.xlane.xlu1 %761  ;;  %v853_v5 = vmul.f32 %v2641_v36, %v3299_v47  ;;  %v2643_v8 = vpop.eup %2642  ;;  %2650 = vrcp.f32 %v759_v51 }
 0x8e5   : > { %2652 = vrcp.f32 %v762_v53 }
 0x8e8   : > { %v3541_v20 = vpop.permute.xlu1 %2440 }
 0x8e9   : > { %v2436_v6 = vpop.permute.xlu0 %2435 }
 0x8ea   : > { %v2438_v41 = vunpack.i.h.bf16 %v2436_v6  ;;  %v2437_v35 = vunpack.i.l.bf16 %v2436_v6 }
 0x8eb   : > { %v2645_v27 = vpop.eup %2644 }
 0x8ec   : > { %v1823_v56 = vsel %vm601_vm1, %v853_v5, %v2438_v41  ;;  %v1822_v4 = vsel %vm601_vm1, %v852_v24, %v2437_v35  ;;  %v2647_v25 = vpop.eup %2646 }
 0x8ed   : > { %v2446_v14 = vpop.permute.xlu1 %2445 }
 0x8ee   : > { %v2447_v46 = vunpack.i.l.bf16 %v2446_v14 }
 0x8f1   : > { %v3545_v13 = vpop.permute.xlu1 %2450 }
 0x8f2   : > { %v2453_v57 = vunpack.i.h.bf16 %v3545_v13  ;;  %v2452_v61 = vunpack.i.l.bf16 %v3545_v13 }
 0x8f5   : > { %v2456_v60 = vpop.permute.xlu0 %2455 }
 0x8f6   : > { %v2458_v34 = vunpack.i.h.bf16 %v2456_v60  ;;  %v2457_v0 = vunpack.i.l.bf16 %v2456_v60 }
 0x8fd   : > { %v2466_v33 = vpop.permute.xlu0 %2465 }
 0x90e   : > { %v2326_v19 = vpop.f32.mrb[40].mxu0 }
 0x90f   : > { %v1679_v49 = vpop.f32.mrb[41].mxu0  ;;  %v1720_v23 = vmul.f32 %v2623_v32, %v2326_v19  ;;  %v2448_v32 = vunpack.i.h.bf16 %v2446_v14 }
 0x910   : > { %v2327_v3 = vpop.f32.mrb[42].mxu0  ;;  %v1718_v15 = vmul.f32 %v2625_v63, %v1679_v49  ;;  %v1831_v63 = vsel %vm1830_vm2, %v1822_v4, %v2457_v0  ;;  %v1832_v49 = vsel %vm1830_vm2, %v1823_v56, %v2458_v34  ;;  %v2119_v56 = vld [vmem:[%s3637_s5] ss:$0 sm:$0xff] }
 0x911   : > { %v1721_v1 = vmul.f32 %v2627_v58, %v2327_v3  ;;  %v1682_v37 = vpop.f32.mrb[43].mxu0  ;;  %v2461_v58 = vpop.permute.xlu1 %2460  ;;  %v2468_v3 = vunpack.i.h.bf16 %v2466_v33 }
 0x912   : > { %v1719_v59 = vmul.f32 %v2629_v39, %v1682_v37  ;;  %v2467_v39 = vunpack.i.l.bf16 %v2466_v33 }
 0x913   : > { %v2484_v26 = vpack.i.bf16 %v1721_v1, %v1720_v23  ;;  %v855_v23 = vmul.f32 %v2645_v27, %v3297_v11  ;;  %v854_v1 = vmul.f32 %v2643_v8, %v3293_v28  ;;  %v2442_v11 = vunpack.i.l.bf16 %v3541_v20 }
 0x914   : > { %v2474_v7 = vpack.i.bf16 %v1719_v59, %v1718_v15  ;;  %v857_v59 = vmul.f32 %v2647_v25, %v3307_v52 }
 0x916   : > { %2475 = vrot.lane.b32.xlu0 %v2474_v7, %s2768_s30 }
 0x918   : > { %v2330_v16 = vpop.f32.mrb[44].mxu0 }
 0x919   : > { %v1695_v48 = vpop.f32.mrb[45].mxu0  ;;  %v1724_v45 = vmul.f32 %v2633_v30, %v2330_v16  ;;  %v1825_v16 = vsel %vm601_vm1, %v855_v23, %v2448_v32  ;;  %v1824_v30 = vsel %vm601_vm1, %v854_v1, %v2447_v46  ;;  %v2656_v23 = vld [vmem:[%s2925_s17 + $0x18] sm:$0xff] }
 0x91a   : > { %v2331_v29 = vpop.f32.mrb[46].mxu0  ;;  %2485 = vrot.lane.b32.xlu0 %v2484_v26, %s2768_s30  ;;  %v1722_v40 = vmul.f32 %v2631_v62, %v1695_v48  ;;  %v2649_v62 = vpop.eup %2648  ;;  %v1834_v28 = vsel %vm1830_vm2, %v1825_v16, %v2468_v3 }
 0x91b   : > { %v1725_v22 = vmul.f32 %v2635_v54, %v2331_v29  ;;  %v1698_v2 = vpop.f32.mrb[47].mxu0  ;;  %v2443_v29 = vunpack.i.h.bf16 %v3541_v20 }
 0x91c   : > { %v1723_v21 = vmul.f32 %v2637_v43, %v1698_v2  ;;  %v1833_v43 = vsel %vm1830_vm2, %v1824_v30, %v2467_v39  ;;  %v856_v2 = vmul.f32 %v2649_v62, %v3303_v17  ;;  %v2658_v30 = vld [vmem:[%s2925_s17 + $0x30] sm:$0xff] }
 0x91d   : > { %v2489_v18 = vpack.i.bf16 %v1725_v22, %v1724_v45  ;;  %v2471_v45 = vpop.permute.xlu1 %2470  ;;  %v1827_v9 = vsel %vm601_vm1, %v857_v59, %v2443_v29 }
 0x91e   : > { %v2479_v10 = vpack.i.bf16 %v1723_v21, %v1722_v40  ;;  %v2463_v40 = vunpack.i.h.bf16 %v2461_v58  ;;  %v2462_v21 = vunpack.i.l.bf16 %v2461_v58  ;;  %v1826_v44 = vsel %vm601_vm1, %v856_v2, %v2442_v11  ;;  %v2655_v58 = vld [vmem:[%s2925_s17] sm:$0xff] }
 0x91f   : > { %v2473_v6 = vunpack.i.h.bf16 %v2471_v45  ;;  %v2472_v14 = vunpack.i.l.bf16 %v2471_v45  ;;  %v2659_v11 = vld [vmem:[%s2925_s17 + $0x20] sm:$0xff]  ;;  %v2660_v45 = vld [vmem:[%s2925_s17 + $0x38] sm:$0xff] }
 0x920   : > { %2480 = vrot.lane.b32.xlu1 %v2479_v10, %s2768_s30  ;;  %v2651_v10 = vpop.eup %2650  ;;  %v1836_v17 = vsel %vm1830_vm2, %v1827_v9, %v2463_v40  ;;  %v1835_v20 = vsel %vm1830_vm2, %v1826_v44, %v2462_v21 }
 0x921   : > { %v2653_v38 = vpop.eup %2652  ;;  %v858_v31 = vmul.f32 %v2651_v10, %v3301_v50 }
 0x922   : > { %v859_v60 = vmul.f32 %v2653_v38, %v3305_v42 }
 0x923   : > { %v1828_v5 = vsel %vm601_vm1, %v858_v31, %v2452_v61 }
 0x924   : > { %2490 = vrot.lane.b32.xlu1 %v2489_v18, %s2768_s30  ;;  %v1829_v24 = vsel %vm601_vm1, %v859_v60, %v2453_v57  ;;  %v1837_v42 = vsel %vm1830_vm2, %v1828_v5, %v2472_v14 }
 0x925   : > { %v1838_v0 = vsel %vm1830_vm2, %v1829_v24, %v2473_v6 }
 0x988   : > { %v2476_v12 = vpop.permute.xlu0 %2475 }
 0x989   : > { %v2478_v19 = vunpack.i.h.bf16 %v2476_v12  ;;  %v2477_v47 = vunpack.i.l.bf16 %v2476_v12 }
 0x98b   : > { %v1840_v37 = vsel %vm1839_vm3, %v1831_v63, %v2477_v47  ;;  %v1841_v15 = vsel %vm1839_vm3, %v1832_v49, %v2478_v19  ;;  %v2654_v19 = vld [vmem:[%s2925_s17 + $0x10] sm:$0xff] }
 0x98c   : > { %v1848_v26 = vpack.c.bf16 %v1841_v15, %v1840_v37  ;;  %v2486_v7 = vpop.permute.xlu0 %2485  ;;  %v2657_v37 = vld [vmem:[%s2925_s17 + $0x8] sm:$0xff] }
 0x98d   : > { %v2488_v48 = vunpack.i.h.bf16 %v2486_v7  ;;  %v2487_v54 = vunpack.i.l.bf16 %v2486_v7 }
 0x98e   : > { %2340 = vmatprep.mubr.msk.bf16.mxu0 %vm298_vm0, %v1848_v26 }
 0x98f   : > { %v1842_v52 = vsel %vm1839_vm3, %v1833_v43, %v2487_v54  ;;  %v1843_v22 = vsel %vm1839_vm3, %v1834_v28, %v2488_v48 }
 0x990   : > { %v1849_v18 = vpack.c.bf16 %v1843_v22, %v1842_v52  ;;  %v2661_v22 = vld [vmem:[%s2925_s17 + $0x28] sm:$0xff] }
 0x992   : > { %v2481_v55 = vpop.permute.xlu1 %2480  ;;  %2341 = vmatmul.mubr.msk.bf16.vlgmr.msra.gmra.mrb[48].mxu0 %vm298_vm0, %v1849_v18 }
 0x993   : > { %v2483_v53 = vunpack.i.h.bf16 %v2481_v55  ;;  %v2482_v51 = vunpack.i.l.bf16 %v2481_v55 }
 0x995   : > { %v1845_v36 = vsel %vm1839_vm3, %v1836_v17, %v2483_v53  ;;  %v1844_v41 = vsel %vm1839_vm3, %v1835_v20, %v2482_v51 }
 0x996   : > { %v1850_v35 = vpack.c.bf16 %v1845_v36, %v1844_v41  ;;  %v2491_v33 = vpop.permute.xlu1 %2490 }
 0x997   : > { %v2493_v13 = vunpack.i.h.bf16 %v2491_v33  ;;  %v2492_v34 = vunpack.i.l.bf16 %v2491_v33 }
 0x998   : > { %2344 = vmatprep.mubr.msk.bf16.mxu1 %vm298_vm0, %v1850_v35 }
 0x999   : > { %v1847_v50 = vsel %vm1839_vm3, %v1838_v0, %v2493_v13  ;;  %v1846_v8 = vsel %vm1839_vm3, %v1837_v42, %v2492_v34 }
 0x99a   : > { %v1851_v27 = vpack.c.bf16 %v1847_v50, %v1846_v8 }
 0x99c   : > { %2345 = vmatmul.mubr.msk.bf16.vlgmr.msra.gmra.mrb[32].mxu1 %vm298_vm0, %v1851_v27 }
 0xa65   : > { %v2342_v4 = vpop.f32.mrb[48].mxu0 }
 0xa66   : > { %v1946_v12 = vadd.f32 %v2342_v4, %v2119_v56  ;;  %v1937_v25 = vpop.f32.mrb[49].mxu0 }
 0xa67   : > { %v1938_v32 = vadd.f32 %v2119_v56, %v1937_v25  ;;  %v2343_v46 = vpop.f32.mrb[50].mxu0 }
 0xa68   : > { %v1970_v47 = vadd.f32 %v2654_v19, %v1946_v12  ;;  %v1949_v63 = vadd.f32 %v2343_v46, %v2119_v56  ;;  %v1940_v49 = vpop.f32.mrb[51].mxu0 }
 0xa69   : > { %v1968_v3 = vadd.f32 %v2655_v58, %v1938_v32  ;;  %v1941_v39 = vadd.f32 %v2119_v56, %v1940_v49 }
 0xa6a   : > { %1978 = vst.msk [vmem:[%s3593_s14 + $0x10] sm:$0xff] %vm298_vm0, %v1970_v47  ;;  %v1971_v1 = vadd.f32 %v2656_v23, %v1949_v63 }
 0xa6b   : > { %1976 = vst.msk [vmem:[%s3593_s14] sm:$0xff] %vm298_vm0, %v1968_v3  ;;  %v1969_v15 = vadd.f32 %v2657_v37, %v1941_v39 }
 0xa6c   : > { %1979 = vst.msk [vmem:[%s3593_s14 + $0x18] sm:$0xff] %vm298_vm0, %v1971_v1 }
 0xa6d   : > { %1977 = vst.msk [vmem:[%s3593_s14 + $0x8] sm:$0xff] %vm298_vm0, %v1969_v15 }
 0xa6f   : > { %v2346_v59 = vpop.f32.mrb[32].mxu1 }
 0xa70   : > { %v1962_v26 = vadd.f32 %v2346_v59, %v2119_v56  ;;  %v1953_v7 = vpop.f32.mrb[33].mxu1 }
 0xa71   : > { %v1954_v62 = vadd.f32 %v2119_v56, %v1953_v7  ;;  %v2347_v16 = vpop.f32.mrb[34].mxu1 }
 0xa72   : > { %v1974_v48 = vadd.f32 %v2658_v30, %v1962_v26  ;;  %v1965_v54 = vadd.f32 %v2347_v16, %v2119_v56  ;;  %v1956_v29 = vpop.f32.mrb[35].mxu1 }
 0xa73   : > { %v1972_v28 = vadd.f32 %v2659_v11, %v1954_v62  ;;  %v1957_v43 = vadd.f32 %v2119_v56, %v1956_v29 }
 0xa74   : > { %1982 = vst.msk [vmem:[%s3593_s14 + $0x30] sm:$0xff] %vm298_vm0, %v1974_v48  ;;  %v1975_v52 = vadd.f32 %v2660_v45, %v1965_v54 }
 0xa75   : > { %1980 = vst.msk [vmem:[%s3593_s14 + $0x20] sm:$0xff] %vm298_vm0, %v1972_v28  ;;  %v1973_v2 = vadd.f32 %v2661_v22, %v1957_v43 }
 0xa76   : > { %1983 = vst.msk [vmem:[%s3593_s14 + $0x38] sm:$0xff] %vm298_vm0, %v1975_v52 }
 0xa77   : > { %1981 = vst.msk [vmem:[%s3593_s14 + $0x28] sm:$0xff] %vm298_vm0, %v1973_v2 }
 0xa78 PF: > { %p17_p8 = scmp.ge.s32.totalorder %s2853_s7, 4   ;;  %s3650_s21 = smov %s2750_s22 }
 0xa79   : > { %s3651_s22 = smov %s2754_s23  ;;  %s3652_s23 = smov %s2879_s28 }
 0xa7a   : > { %s3653_s24 = smov %s2853_s7  ;;  %19 = sbr.rel (!%p17_p8) target bundleno = 4 (0x4), region = 88 }
 0xa81   :  { %2005 = vsyncpa [#allocation3], 1 }
 0xa82   :  { %2007 = vsyncpa [#allocation3 + $0x1], 1 }
 0xa83   :  { %2008 = vsyncpa [#allocation5], 1 }

// kernel: transformer_forward.7
= control target key start
LH: loop header
LB: loop body
LE: loop exit
PB: predicated region body
PF: predicated region fallthrough
CT: control target
= control target key end

     0   :  { %vm46_vm0 = vcmask 523264   ;;  %s1482_s0 = inlined_call_operand.vmem [shape: f32[128,64], index: 0, kind: input, shape index: {}]   ;;  %s1483_s1 = inlined_call_operand.vmem [shape: f32[1,64], index: 1, kind: input, shape index: {}]   ;;  %s1484_s2 = inlined_call_operand.vmem [shape: f32[1,64], index: 2, kind: input, shape index: {}]   ;;  %s1485_s3 = inlined_call_operand.vmem [shape: bf16[64,128], index: 3, kind: input, shape index: {}]   ;;  %s1486_s4 = inlined_call_operand.vmem [shape: f32[1,128], index: 4, kind: input, shape index: {}]   ;;  %s1487_s5 = inlined_call_operand.vmem [shape: bf16[128,64], index: 5, kind: input, shape index: {}]   ;;  %s1488_s6 = inlined_call_operand.vmem [shape: f32[1,64], index: 6, kind: input, shape index: {}]   ;;  %s1489_s7 = inlined_call_operand.hbm [shape: f32[128,64], index: 7, kind: output, shape index: {}]  }
   0x1   :  { %v28_v0 = vld [vmem:[%s1482_s0] sm:$0xff]  ;;  %v30_v1 = vld [vmem:[%s1482_s0 + $0x10] sm:$0xff]  ;;  %v29_v2 = vld [vmem:[%s1482_s0 + $0x8] sm:$0xff] }
   0x2   :  { %v47_v3 = vsel %vm46_vm0, %v28_v0, 0.0  ;;  %v53_v4 = vsel %vm46_vm0, %v30_v1, 0.0  ;;  %v31_v5 = vld [vmem:[%s1482_s0 + $0x18] sm:$0xff]  ;;  %v1071_v6 = vld [vmem:[%s1482_s0 + $0x20] sm:$0xff]  ;;  %v1076_v7 = vld [vmem:[%s1482_s0 + $0x28] sm:$0xff]  ;;  %v50_v8 = vsel %vm46_vm0, %v29_v2, 0.0 }
   0x3   :  { %48 = vadd.xlane.f32.xlu0 %v47_v3  ;;  %54 = vadd.xlane.f32.xlu1 %v53_v4  ;;  %v56_v9 = vsel %vm46_vm0, %v31_v5, 0.0  ;;  %v1083_v10 = vld [vmem:[%s1482_s0 + $0x30] sm:$0xff]  ;;  %v1088_v11 = vld [vmem:[%s1482_s0 + $0x38] sm:$0xff]  ;;  %v59_v12 = vsel %vm46_vm0, %v1071_v6, 0.0  ;;  %v62_v13 = vsel %vm46_vm0, %v1076_v7, 0.0  ;;  %v1101_v16 = vld [vmem:[%s1482_s0 + $0x40] sm:$0xff] }
   0x4   :  { %v65_v14 = vsel %vm46_vm0, %v1083_v10, 0.0  ;;  %v68_v15 = vsel %vm46_vm0, %v1088_v11, 0.0  ;;  %v1106_v17 = vld [vmem:[%s1482_s0 + $0x48] sm:$0xff] }
   0x7   :  { %51 = vadd.xlane.f32.xlu0 %v50_v8  ;;  %57 = vadd.xlane.f32.xlu1 %v56_v9 }
   0xb   :  { %60 = vadd.xlane.f32.xlu0 %v59_v12  ;;  %63 = vadd.xlane.f32.xlu1 %v62_v13 }
   0xf   :  { %66 = vadd.xlane.f32.xlu0 %v65_v14  ;;  %69 = vadd.xlane.f32.xlu1 %v68_v15 }
  0x10   :  { %12 = vsyncpa [#allocation3], 0  ;;  %v71_v18 = vsel %vm46_vm0, %v1101_v16, 0.0  ;;  %v74_v19 = vsel %vm46_vm0, %v1106_v17, 0.0  ;;  %v1115_v20 = vld [vmem:[%s1482_s0 + $0x50] sm:$0xff]  ;;  %v1120_v21 = vld [vmem:[%s1482_s0 + $0x58] sm:$0xff] }
  0x11   :  { %v77_v22 = vsel %vm46_vm0, %v1115_v20, 0.0  ;;  %v80_v23 = vsel %vm46_vm0, %v1120_v21, 0.0  ;;  %v1129_v24 = vld [vmem:[%s1482_s0 + $0x60] sm:$0xff]  ;;  %v1134_v25 = vld [vmem:[%s1482_s0 + $0x68] sm:$0xff]  ;;  %v1143_v28 = vld [vmem:[%s1482_s0 + $0x70] sm:$0xff]  ;;  %s1011_s30 = smov [#allocation2]  }
  0x12   :  { %v83_v26 = vsel %vm46_vm0, %v1129_v24, 0.0  ;;  %v86_v27 = vsel %vm46_vm0, %v1134_v25, 0.0  ;;  %v1148_v29 = vld [vmem:[%s1482_s0 + $0x78] sm:$0xff]  ;;  %v89_v30 = vsel %vm46_vm0, %v1143_v28, 0.0  ;;  %s761_s8 = sshll.u32 %s1011_s30, 4  ;;  %s762_s8 = int_to_ptr.vmem [resolvable:$true] %s761_s8 }
  0x13   :  { %72 = vadd.xlane.f32.xlu0 %v71_v18  ;;  %75 = vadd.xlane.f32.xlu1 %v74_v19  ;;  %v92_v31 = vsel %vm46_vm0, %v1148_v29, 0.0  ;;  %s987_s13 = scalar_lea.vmem %s762_s8, 2048  ;;  %p992_p1 = scmp.lt.s32.totalorder %s762_s8, %s762_s8 }
  0x14   :  { %p988_p0 = scmp.ne.s32.totalorder %s762_s8, %s987_s13  ;;  %p993_p2 = scmp.lt.s32.totalorder %s987_s13, %s987_s13 }
  0x16   :  { %p994_p3 = por %p993_p2, %p992_p1 }
  0x17   :  { %78 = vadd.xlane.f32.xlu0 %v77_v22  ;;  %81 = vadd.xlane.f32.xlu1 %v80_v23 }
  0x18   :  { %p995_p4 = pnand %p994_p3, %p988_p0 }
  0x1b   :  { %84 = vadd.xlane.f32.xlu0 %v83_v26  ;;  %87 = vadd.xlane.f32.xlu1 %v86_v27 }
  0x1f   :  { %90 = vadd.xlane.f32.xlu0 %v89_v30  ;;  %93 = vadd.xlane.f32.xlu1 %v92_v31 }
  0x90   :  { %v49_v32 = vpop.xlane.xlu0 %48  ;;  %v55_v33 = vpop.xlane.xlu1 %54 }
  0x91   :  { %v96_v34 = vmul.f32 0.015625, %v49_v32  ;;  %v98_v35 = vmul.f32 0.015625, %v55_v33 }
  0x93   :  { %v1154_v36 = vsub.f32 %v28_v0, %v96_v34  ;;  %v1156_v37 = vsub.f32 %v30_v1, %v98_v35 }
  0x94   :  { %v52_v38 = vpop.xlane.xlu0 %51  ;;  %v58_v39 = vpop.xlane.xlu1 %57 }
  0x95   :  { %v97_v40 = vmul.f32 0.015625, %v52_v38  ;;  %v99_v41 = vmul.f32 0.015625, %v58_v39  ;;  %v128_v42 = vmul.f32 %v1154_v36, %v1154_v36  ;;  %v130_v43 = vmul.f32 %v1156_v37, %v1156_v37 }
  0x97   :  { %v1162_v44 = vsub.f32 %v29_v2, %v97_v40  ;;  %v1164_v45 = vsub.f32 %v31_v5, %v99_v41  ;;  %v144_v46 = vsel %vm46_vm0, %v128_v42, 0.0  ;;  %v150_v49 = vsel %vm46_vm0, %v130_v43, 0.0 }
  0x98   :  { %145 = vadd.xlane.f32.xlu0 %v144_v46  ;;  %v61_v47 = vpop.xlane.xlu0 %60  ;;  %v64_v48 = vpop.xlane.xlu1 %63 }
  0x99   :  { %v100_v50 = vmul.f32 0.015625, %v61_v47  ;;  %v101_v51 = vmul.f32 0.015625, %v64_v48  ;;  %v129_v52 = vmul.f32 %v1162_v44, %v1162_v44  ;;  %v131_v53 = vmul.f32 %v1164_v45, %v1164_v45 }
  0x9b   :  { %v1173_v54 = vsub.f32 %v1071_v6, %v100_v50  ;;  %v1176_v55 = vsub.f32 %v1076_v7, %v101_v51  ;;  %v147_v56 = vsel %vm46_vm0, %v129_v52, 0.0  ;;  %v153_v59 = vsel %vm46_vm0, %v131_v53, 0.0 }
  0x9c   :  { %151 = vadd.xlane.f32.xlu0 %v150_v49  ;;  %148 = vadd.xlane.f32.xlu1 %v147_v56  ;;  %v67_v57 = vpop.xlane.xlu0 %66  ;;  %v70_v58 = vpop.xlane.xlu1 %69 }
  0x9d   :  { %v102_v60 = vmul.f32 0.015625, %v67_v57  ;;  %v103_v61 = vmul.f32 0.015625, %v70_v58  ;;  %v132_v62 = vmul.f32 %v1173_v54, %v1173_v54  ;;  %v133_v63 = vmul.f32 %v1176_v55, %v1176_v55  ;;  %v899_v57 = vld [vmem:[%s1485_s3] sm:$0xff]  }
  0x9e   :  { %824 = vmatprep.subr.bf16.mxu0 %v899_v57 }
  0x9f   :  { %v1185_v0 = vsub.f32 %v1083_v10, %v102_v60  ;;  %v1188_v1 = vsub.f32 %v1088_v11, %v103_v61  ;;  %v156_v2 = vsel %vm46_vm0, %v132_v62, 0.0  ;;  %v159_v5 = vsel %vm46_vm0, %v133_v63, 0.0  ;;  %825 = vmatpush3.bf16.msra.mxu0 %v899_v57  ;;  %v901_v60 = vld [vmem:[%s1485_s3 + $0x10] sm:$0xff]   ;;  %v902_v61 = vld [vmem:[%s1485_s3 + $0x18] sm:$0xff]   ;;  %v1261_v62 = vld [vmem:[%s1487_s5] sm:$0xff]  }
  0xa0   :  { %154 = vadd.xlane.f32.xlu1 %v153_v59  ;;  %157 = vadd.xlane.f32.xlu0 %v156_v2  ;;  %v73_v3 = vpop.xlane.xlu0 %72  ;;  %v76_v4 = vpop.xlane.xlu1 %75  ;;  %v900_v59 = vld [vmem:[%s1485_s3 + $0x8] sm:$0xff]  }
  0xa1   :  { %v104_v6 = vmul.f32 0.015625, %v73_v3  ;;  %v105_v7 = vmul.f32 0.015625, %v76_v4  ;;  %v134_v8 = vmul.f32 %v1185_v0, %v1185_v0  ;;  %v135_v9 = vmul.f32 %v1188_v1, %v1188_v1  ;;  %826 = vmatprep.subr.bf16.mxu0 %v900_v59  ;;  %v1267_v63 = vld [vmem:[%s1487_s5 + $0x8] sm:$0xff]   ;;  %880 = vmatprep.subr.bf16.mxu1 %v1261_v62 }
  0xa2   :  { %888 = vmatpush3.bf16.msra.mxu1 %v1261_v62 }
  0xa3   :  { %v1197_v10 = vsub.f32 %v1101_v16, %v104_v6  ;;  %v1200_v11 = vsub.f32 %v1106_v17, %v105_v7  ;;  %v162_v12 = vsel %vm46_vm0, %v134_v8, 0.0  ;;  %v165_v15 = vsel %vm46_vm0, %v135_v9, 0.0  ;;  %827 = vmatpush3.bf16.msra.mxu0 %v900_v59  ;;  %881 = vmatprep.subr.bf16.mxu1 %v1267_v63 }
  0xa4   :  { %160 = vadd.xlane.f32.xlu1 %v159_v5  ;;  %163 = vadd.xlane.f32.xlu0 %v162_v12  ;;  %v79_v13 = vpop.xlane.xlu0 %78  ;;  %v82_v14 = vpop.xlane.xlu1 %81 }
  0xa5   :  { %v106_v18 = vmul.f32 0.015625, %v79_v13  ;;  %v107_v19 = vmul.f32 0.015625, %v82_v14  ;;  %v136_v22 = vmul.f32 %v1197_v10, %v1197_v10  ;;  %v137_v16 = vmul.f32 %v1200_v11, %v1200_v11  ;;  %828 = vmatprep.subr.bf16.mxu0 %v901_v60 }
  0xa6   :  { %889 = vmatpush3.bf16.msra.mxu1 %v1267_v63 }
  0xa7   :  { %v1209_v23 = vsub.f32 %v1115_v20, %v106_v18  ;;  %v1212_v17 = vsub.f32 %v1120_v21, %v107_v19  ;;  %v168_v26 = vsel %vm46_vm0, %v136_v22, 0.0  ;;  %v171_v31 = vsel %vm46_vm0, %v137_v16, 0.0  ;;  %829 = vmatpush3.bf16.msra.mxu0 %v901_v60 }
  0xa8   :  { %166 = vadd.xlane.f32.xlu1 %v165_v15  ;;  %169 = vadd.xlane.f32.xlu0 %v168_v26  ;;  %v85_v27 = vpop.xlane.xlu0 %84  ;;  %v88_v30 = vpop.xlane.xlu1 %87 }
  0xa9   :  { %v108_v32 = vmul.f32 0.015625, %v85_v27  ;;  %v109_v33 = vmul.f32 0.015625, %v88_v30  ;;  %v138_v34 = vmul.f32 %v1209_v23, %v1209_v23  ;;  %v139_v35 = vmul.f32 %v1212_v17, %v1212_v17  ;;  %830 = vmatprep.subr.bf16.mxu0 %v902_v61 }
  0xab   :  { %v1221_v38 = vsub.f32 %v1129_v24, %v108_v32  ;;  %v1224_v39 = vsub.f32 %v1134_v25, %v109_v33  ;;  %v174_v40 = vsel %vm46_vm0, %v138_v34, 0.0  ;;  %v177_v43 = vsel %vm46_vm0, %v139_v35, 0.0  ;;  %831 = vmatpush3.bf16.msra.mxu0 %v902_v61 }
  0xac   :  { %172 = vadd.xlane.f32.xlu1 %v171_v31  ;;  %175 = vadd.xlane.f32.xlu0 %v174_v40  ;;  %v91_v41 = vpop.xlane.xlu0 %90  ;;  %v94_v42 = vpop.xlane.xlu1 %93 }
  0xad   :  { %v110_v46 = vmul.f32 0.015625, %v91_v41  ;;  %v111_v47 = vmul.f32 0.015625, %v94_v42  ;;  %v140_v48 = vmul.f32 %v1221_v38, %v1221_v38  ;;  %v141_v24 = vmul.f32 %v1224_v39, %v1224_v39  ;;  %848 = vmatprep.subr.bf16.mxu0 %v1261_v62 }
  0xaf   :  { %v1233_v49 = vsub.f32 %v1143_v28, %v110_v46  ;;  %v1236_v25 = vsub.f32 %v1148_v29, %v111_v47  ;;  %v180_v50 = vsel %vm46_vm0, %v140_v48, 0.0  ;;  %v183_v51 = vsel %vm46_vm0, %v141_v24, 0.0 }
  0xb0   :  { %178 = vadd.xlane.f32.xlu1 %v177_v43  ;;  %181 = vadd.xlane.f32.xlu0 %v180_v50  ;;  %v1277_v43 = vld [vmem:[%s1483_s1] ss:$0 sm:$0xff] }
  0xb1   :  { %v142_v52 = vmul.f32 %v1233_v49, %v1233_v49  ;;  %v143_v53 = vmul.f32 %v1236_v25, %v1236_v25 }
  0xb3   :  { %v186_v56 = vsel %vm46_vm0, %v142_v52, 0.0  ;;  %v189_v58 = vsel %vm46_vm0, %v143_v53, 0.0 }
  0xb4   :  { %184 = vadd.xlane.f32.xlu1 %v183_v51  ;;  %187 = vadd.xlane.f32.xlu0 %v186_v56 }
  0xb8   :  { %190 = vadd.xlane.f32.xlu1 %v189_v58  ;;  %v1285_v58 = vld [vmem:[%s1484_s2] ss:$0 sm:$0xff] }
 0x125   :  { %v146_v2 = vpop.xlane.xlu0 %145 }
 0x126   :  { %v192_v3 = vmul.f32 0.015625, %v146_v2 }
 0x128   :  { %v208_v4 = vadd.f32 1e-05, %v192_v3 }
 0x129   :  { %v149_v5 = vpop.xlane.xlu1 %148  ;;  %v152_v6 = vpop.xlane.xlu0 %151 }
 0x12a   :  { %911 = vrsqrt.f32 %v208_v4  ;;  %v193_v7 = vmul.f32 0.015625, %v149_v5  ;;  %v194_v8 = vmul.f32 0.015625, %v152_v6 }
 0x12c   :  { %v209_v9 = vadd.f32 1e-05, %v193_v7  ;;  %v210_v12 = vadd.f32 1e-05, %v194_v8 }
 0x12d   :  { %v155_v13 = vpop.xlane.xlu1 %154  ;;  %v158_v14 = vpop.xlane.xlu0 %157 }
 0x12e   :  { %913 = vrsqrt.f32 %v209_v9  ;;  %v195_v15 = vmul.f32 0.015625, %v155_v13  ;;  %v196_v18 = vmul.f32 0.015625, %v158_v14 }
 0x12f   :  { %915 = vrsqrt.f32 %v210_v12 }
 0x130   :  { %v211_v19 = vadd.f32 1e-05, %v195_v15  ;;  %v212_v22 = vadd.f32 1e-05, %v196_v18 }
 0x131   :  { %v161_v16 = vpop.xlane.xlu1 %160  ;;  %v164_v26 = vpop.xlane.xlu0 %163 }
 0x132   :  { %917 = vrsqrt.f32 %v211_v19  ;;  %v197_v27 = vmul.f32 0.015625, %v161_v16  ;;  %v198_v30 = vmul.f32 0.015625, %v164_v26 }
 0x133   :  { %919 = vrsqrt.f32 %v212_v22 }
 0x134   :  { %v912_v31 = vpop.eup %911  ;;  %v213_v32 = vadd.f32 1e-05, %v197_v27  ;;  %v214_v33 = vadd.f32 1e-05, %v198_v30 }
 0x135   :  { %v167_v34 = vpop.xlane.xlu1 %166  ;;  %v170_v35 = vpop.xlane.xlu0 %169  ;;  %v240_v40 = vmul.f32 %v912_v31, %v1154_v36 }
 0x136   :  { %921 = vrsqrt.f32 %v213_v32  ;;  %v199_v41 = vmul.f32 0.015625, %v167_v34  ;;  %v200_v42 = vmul.f32 0.015625, %v170_v35 }
 0x137   :  { %923 = vrsqrt.f32 %v214_v33  ;;  %v262_v53 = vmul.f32 %v1277_v43, %v240_v40 }
 0x138   :  { %v914_v46 = vpop.eup %913  ;;  %v215_v47 = vadd.f32 1e-05, %v199_v41  ;;  %v216_v48 = vadd.f32 1e-05, %v200_v42 }
 0x139   :  { %v916_v24 = vpop.eup %915  ;;  %v173_v50 = vpop.xlane.xlu1 %172  ;;  %v241_v52 = vmul.f32 %v914_v46, %v1162_v44 }
 0x13a   :  { %v176_v51 = vpop.xlane.xlu0 %175  ;;  %v242_v36 = vmul.f32 %v916_v24, %v1156_v37  ;;  %925 = vrsqrt.f32 %v215_v47  ;;  %v201_v56 = vmul.f32 0.015625, %v173_v50  ;;  %v284_v37 = vadd.f32 %v1285_v58, %v262_v53 }
 0x13b   :  { %v202_v57 = vmul.f32 0.015625, %v176_v51  ;;  %927 = vrsqrt.f32 %v216_v48  ;;  %v263_v59 = vmul.f32 %v1277_v43, %v241_v52 }
 0x13c   :  { %v918_v60 = vpop.eup %917  ;;  %v217_v61 = vadd.f32 1e-05, %v201_v56  ;;  %v264_v7 = vmul.f32 %v1277_v43, %v242_v36 }
 0x13d   :  { %v218_v2 = vadd.f32 1e-05, %v202_v57  ;;  %v920_v3 = vpop.eup %919  ;;  %v243_v44 = vmul.f32 %v918_v60, %v1164_v45  ;;  %v179_v4 = vpop.xlane.xlu1 %178  ;;  %v285_v6 = vadd.f32 %v1285_v58, %v263_v59 }
 0x13e   :  { %v182_v5 = vpop.xlane.xlu0 %181  ;;  %v244_v8 = vmul.f32 %v920_v3, %v1173_v54  ;;  %929 = vrsqrt.f32 %v217_v61  ;;  %v203_v9 = vmul.f32 0.015625, %v179_v4  ;;  %v286_v27 = vadd.f32 %v1285_v58, %v264_v7 }
 0x13f   :  { %v204_v12 = vmul.f32 0.015625, %v182_v5  ;;  %931 = vrsqrt.f32 %v218_v2  ;;  %v300_v13 = vpack.c.bf16 %v285_v6, %v284_v37  ;;  %v265_v14 = vmul.f32 %v1277_v43, %v243_v44 }
 0x140   :  { %v922_v15 = vpop.eup %921  ;;  %v219_v18 = vadd.f32 1e-05, %v203_v9  ;;  %v266_v30 = vmul.f32 %v1277_v43, %v244_v8 }
 0x141   :  { %v220_v45 = vadd.f32 1e-05, %v204_v12  ;;  %v924_v19 = vpop.eup %923  ;;  %v245_v22 = vmul.f32 %v922_v15, %v1176_v55  ;;  %v185_v16 = vpop.xlane.xlu1 %184  ;;  %832 = vmatprep.mubr.msk.bf16.mxu0 %vm46_vm0, %v300_v13  ;;  %v287_v54 = vadd.f32 %v1285_v58, %v265_v14 }
 0x142   :  { %v188_v26 = vpop.xlane.xlu0 %187  ;;  %v246_v31 = vmul.f32 %v924_v19, %v1185_v0  ;;  %933 = vrsqrt.f32 %v219_v18  ;;  %v205_v32 = vmul.f32 0.015625, %v185_v16  ;;  %v288_v48 = vadd.f32 %v1285_v58, %v266_v30  ;;  %v908_v30 = vld [vmem:[%s1487_s5 + $0x28] sm:$0xff]  }
 0x143   :  { %v206_v33 = vmul.f32 0.015625, %v188_v26  ;;  %935 = vrsqrt.f32 %v220_v45  ;;  %v301_v34 = vpack.c.bf16 %v287_v54, %v286_v27  ;;  %v267_v35 = vmul.f32 %v1277_v43, %v245_v22 }
 0x144   :  { %v926_v55 = vpop.eup %925  ;;  %v221_v40 = vadd.f32 1e-05, %v205_v32  ;;  %v268_v24 = vmul.f32 %v1277_v43, %v246_v31  ;;  %v909_v31 = vld [vmem:[%s1487_s5 + $0x30] sm:$0xff]   ;;  %v910_v32 = vld [vmem:[%s1487_s5 + $0x38] sm:$0xff]  }
 0x145   :  { %v222_v41 = vadd.f32 1e-05, %v206_v33  ;;  %v928_v42 = vpop.eup %927  ;;  %v247_v46 = vmul.f32 %v926_v55, %v1188_v1  ;;  %v191_v47 = vpop.xlane.xlu1 %190  ;;  %833 = vmatmul.mubr.msk.bf16.vlgmr.msra.gmra.mrb[0].mxu0 %vm46_vm0, %v301_v34  ;;  %v289_v0 = vadd.f32 %v1285_v58, %v267_v35  ;;  %v1363_v33 = vld [vmem:[%s1486_s4] ss:$0 sm:$0xff] }
 0x146   :  { %v248_v50 = vmul.f32 %v928_v42, %v1197_v10  ;;  %937 = vrsqrt.f32 %v221_v40  ;;  %v207_v51 = vmul.f32 0.015625, %v191_v47  ;;  %849 = vmatpush3.bf16.msra.mxu0 %v1261_v62  ;;  %v290_v59 = vadd.f32 %v1285_v58, %v268_v24 }
 0x147   :  { %939 = vrsqrt.f32 %v222_v41  ;;  %v302_v52 = vpack.c.bf16 %v289_v0, %v288_v48  ;;  %v269_v53 = vmul.f32 %v1277_v43, %v247_v46  ;;  %850 = vmatprep.subr.bf16.mxu0 %v1267_v63 }
 0x148   :  { %v930_v1 = vpop.eup %929  ;;  %v223_v36 = vadd.f32 1e-05, %v207_v51  ;;  %v270_v60 = vmul.f32 %v1277_v43, %v248_v50 }
 0x149   :  { %v932_v56 = vpop.eup %931  ;;  %v249_v57 = vmul.f32 %v930_v1, %v1200_v11  ;;  %836 = vmatprep.mubr.msk.bf16.mxu0 %vm46_vm0, %v302_v52  ;;  %v291_v10 = vadd.f32 %v1285_v58, %v269_v53 }
 0x14a   :  { %v250_v62 = vmul.f32 %v932_v56, %v1209_v23  ;;  %941 = vrsqrt.f32 %v223_v36  ;;  %851 = vmatpush3.bf16.msra.mxu0 %v1267_v63  ;;  %v292_v4 = vadd.f32 %v1285_v58, %v270_v60 }
 0x14b   :  { %v303_v61 = vpack.c.bf16 %v291_v10, %v290_v59  ;;  %v271_v2 = vmul.f32 %v1277_v43, %v249_v57 }
 0x14c   :  { %v934_v3 = vpop.eup %933  ;;  %v272_v37 = vmul.f32 %v1277_v43, %v250_v62 }
 0x14d   :  { %v936_v44 = vpop.eup %935  ;;  %v251_v11 = vmul.f32 %v934_v3, %v1212_v17  ;;  %837 = vmatmul.mubr.msk.bf16.gmra.mrb[4].mxu0 %vm46_vm0, %v303_v61  ;;  %v293_v5 = vadd.f32 %v1285_v58, %v271_v2 }
 0x14e   :  { %v252_v23 = vmul.f32 %v936_v44, %v1221_v38  ;;  %v294_v17 = vadd.f32 %v1285_v58, %v272_v37 }
 0x14f   :  { %v304_v6 = vpack.c.bf16 %v293_v5, %v292_v4  ;;  %v273_v63 = vmul.f32 %v1277_v43, %v251_v11 }
 0x150   :  { %v938_v7 = vpop.eup %937  ;;  %v274_v13 = vmul.f32 %v1277_v43, %v252_v23 }
 0x151   :  { %v940_v8 = vpop.eup %939  ;;  %v253_v9 = vmul.f32 %v938_v7, %v1224_v39  ;;  %840 = vmatprep.mubr.msk.bf16.mxu0 %vm46_vm0, %v304_v6  ;;  %v295_v12 = vadd.f32 %v1285_v58, %v273_v63 }
 0x152   :  { %v254_v14 = vmul.f32 %v940_v8, %v1233_v49  ;;  %v296_v39 = vadd.f32 %v1285_v58, %v274_v13 }
 0x153   :  { %v305_v15 = vpack.c.bf16 %v295_v12, %v294_v17  ;;  %v275_v38 = vmul.f32 %v1277_v43, %v253_v9 }
 0x154   :  { %v942_v18 = vpop.eup %941  ;;  %v276_v22 = vmul.f32 %v1277_v43, %v254_v14 }
 0x155   :  { %v255_v45 = vmul.f32 %v942_v18, %v1236_v25  ;;  %841 = vmatmul.mubr.msk.bf16.gmra.mrb[8].mxu0 %vm46_vm0, %v305_v15  ;;  %v297_v19 = vadd.f32 %v1285_v58, %v275_v38  ;;  %v905_v25 = vld [vmem:[%s1487_s5 + $0x10] sm:$0xff]  }
 0x156   :  { %v298_v49 = vadd.f32 %v1285_v58, %v276_v22  ;;  %852 = vmatprep.subr.bf16.mxu0 %v905_v25  ;;  %882 = vmatprep.subr.bf16.mxu1 %v905_v25 }
 0x157   :  { %v306_v16 = vpack.c.bf16 %v297_v19, %v296_v39  ;;  %v277_v26 = vmul.f32 %v1277_v43, %v255_v45  ;;  %853 = vmatpush3.bf16.msra.mxu0 %v905_v25  ;;  %890 = vmatpush3.bf16.msra.mxu1 %v905_v25  ;;  %v906_v43 = vld [vmem:[%s1487_s5 + $0x18] sm:$0xff]  }
 0x158   :  { %854 = vmatprep.subr.bf16.mxu0 %v906_v43  ;;  %883 = vmatprep.subr.bf16.mxu1 %v906_v43 }
 0x159   :  { %844 = vmatprep.mubr.msk.bf16.mxu0 %vm46_vm0, %v306_v16  ;;  %v299_v27 = vadd.f32 %v1285_v58, %v277_v26  ;;  %v907_v58 = vld [vmem:[%s1487_s5 + $0x20] sm:$0xff]  }
 0x15b   :  { %v307_v54 = vpack.c.bf16 %v299_v27, %v298_v49  ;;  %855 = vmatpush3.bf16.msra.mxu0 %v906_v43  ;;  %891 = vmatpush3.bf16.msra.mxu1 %v906_v43 }
 0x15c   :  { %856 = vmatprep.subr.bf16.mxu0 %v907_v58  ;;  %884 = vmatprep.subr.bf16.mxu1 %v907_v58 }
 0x15d   :  { %845 = vmatmul.mubr.msk.bf16.gmra.mrb[12].mxu0 %vm46_vm0, %v307_v54 }
 0x15f   :  { %857 = vmatpush3.bf16.msra.mxu0 %v907_v58  ;;  %892 = vmatpush3.bf16.msra.mxu1 %v907_v58 }
 0x160   :  { %858 = vmatprep.subr.bf16.mxu0 %v908_v30  ;;  %885 = vmatprep.subr.bf16.mxu1 %v908_v30 }
 0x163   :  { %859 = vmatpush3.bf16.msra.mxu0 %v908_v30  ;;  %893 = vmatpush3.bf16.msra.mxu1 %v908_v30 }
 0x164   :  { %860 = vmatprep.subr.bf16.mxu0 %v909_v31  ;;  %886 = vmatprep.subr.bf16.mxu1 %v909_v31 }
 0x167   :  { %861 = vmatpush3.bf16.msra.mxu0 %v909_v31  ;;  %894 = vmatpush3.bf16.msra.mxu1 %v909_v31 }
 0x168   :  { %862 = vmatprep.subr.bf16.mxu0 %v910_v32  ;;  %887 = vmatprep.subr.bf16.mxu1 %v910_v32 }
 0x16b   :  { %863 = vmatpush3.bf16.msra.mxu0 %v910_v32  ;;  %895 = vmatpush3.bf16.msra.mxu1 %v910_v32 }
 0x218   :  { %v834_v34 = vpop.f32.mrb[0].mxu0 }
 0x219   :  { %v414_v35 = vadd.f32 %v834_v34, %v1363_v33  ;;  %v405_v55 = vpop.f32.mrb[1].mxu0 }
 0x21a   :  { %v406_v40 = vadd.f32 %v1363_v33, %v405_v55  ;;  %v835_v41 = vpop.f32.mrb[2].mxu0 }
 0x21b   :  { %v486_v42 = vmul.f32 0.70710677, %v414_v35  ;;  %v417_v46 = vadd.f32 %v835_v41, %v1363_v33  ;;  %v408_v47 = vpop.f32.mrb[3].mxu0  ;;  %v470_v63 = vmul.f32 0.5, %v414_v35 }
 0x21c   :  { %v484_v48 = vmul.f32 0.70710677, %v406_v40  ;;  %v409_v0 = vadd.f32 %v1363_v33, %v408_v47  ;;  %v468_v12 = vmul.f32 0.5, %v406_v40 }
 0x21d   :  { %943 = verf.f32 %v486_v42  ;;  %v487_v24 = vmul.f32 0.70710677, %v417_v46  ;;  %v471_v7 = vmul.f32 0.5, %v417_v46 }
 0x21e   :  { %945 = verf.f32 %v484_v48  ;;  %v485_v50 = vmul.f32 0.70710677, %v409_v0  ;;  %v469_v13 = vmul.f32 0.5, %v409_v0 }
 0x21f   :  { %947 = verf.f32 %v487_v24 }
 0x220   :  { %949 = verf.f32 %v485_v50  ;;  %v838_v51 = vpop.f32.mrb[4].mxu0 }
 0x221   :  { %v430_v52 = vadd.f32 %v838_v51, %v1363_v33  ;;  %v421_v53 = vpop.f32.mrb[5].mxu0 }
 0x222   :  { %v422_v1 = vadd.f32 %v1363_v33, %v421_v53  ;;  %v839_v36 = vpop.f32.mrb[6].mxu0 }
 0x223   :  { %v490_v56 = vmul.f32 0.70710677, %v430_v52  ;;  %v433_v57 = vadd.f32 %v839_v36, %v1363_v33  ;;  %v424_v59 = vpop.f32.mrb[7].mxu0  ;;  %v474_v32 = vmul.f32 0.5, %v430_v52 }
 0x224   :  { %v488_v10 = vmul.f32 0.70710677, %v422_v1  ;;  %v1373_v60 = vadd.f32 %v1363_v33, %v424_v59  ;;  %v472_v0 = vmul.f32 0.5, %v422_v1 }
 0x225   :  { %951 = verf.f32 %v490_v56  ;;  %v491_v62 = vmul.f32 0.70710677, %v433_v57  ;;  %v475_v41 = vmul.f32 0.5, %v433_v57 }
 0x226   :  { %953 = verf.f32 %v488_v10  ;;  %v489_v61 = vmul.f32 0.70710677, %v1373_v60  ;;  %v473_v36 = vmul.f32 0.5, %v1373_v60 }
 0x227   :  { %v944_v2 = vpop.eup %943  ;;  %955 = verf.f32 %v491_v62 }
 0x228   :  { %v946_v3 = vpop.eup %945  ;;  %v518_v44 = vadd.f32 1.0, %v944_v2  ;;  %957 = verf.f32 %v489_v61  ;;  %v842_v11 = vpop.f32.mrb[8].mxu0 }
 0x229   :  { %v948_v4 = vpop.eup %947  ;;  %v516_v5 = vadd.f32 1.0, %v946_v3  ;;  %v1377_v37 = vadd.f32 %v842_v11, %v1363_v33  ;;  %v437_v23 = vpop.f32.mrb[9].mxu0 }
 0x22a   :  { %v950_v6 = vpop.eup %949  ;;  %v519_v8 = vadd.f32 1.0, %v948_v4  ;;  %v1380_v9 = vadd.f32 %v1363_v33, %v437_v23  ;;  %v843_v17 = vpop.f32.mrb[10].mxu0  ;;  %v534_v18 = vmul.f32 %v518_v44, %v470_v63 }
 0x22b   :  { %v517_v14 = vadd.f32 1.0, %v950_v6  ;;  %v494_v15 = vmul.f32 0.70710677, %v1377_v37  ;;  %v440_v38 = vpop.f32.mrb[11].mxu0  ;;  %v449_v19 = vadd.f32 %v843_v17, %v1363_v33  ;;  %v532_v22 = vmul.f32 %v516_v5, %v468_v12 }
 0x22c   :  { %v535_v45 = vmul.f32 %v519_v8, %v471_v7  ;;  %v492_v39 = vmul.f32 0.70710677, %v1380_v9  ;;  %v441_v26 = vadd.f32 %v1363_v33, %v440_v38  ;;  %v476_v7 = vmul.f32 0.5, %v1380_v9 }
 0x22d   :  { %v533_v16 = vmul.f32 %v517_v14, %v469_v13  ;;  %959 = verf.f32 %v494_v15  ;;  %v495_v27 = vmul.f32 0.70710677, %v449_v19  ;;  %v479_v6 = vmul.f32 0.5, %v449_v19 }
 0x22e   :  { %v549_v49 = vpack.c.bf16 %v535_v45, %v534_v18  ;;  %961 = verf.f32 %v492_v39  ;;  %v493_v25 = vmul.f32 0.70710677, %v441_v26  ;;  %v477_v8 = vmul.f32 0.5, %v441_v26 }
 0x22f   :  { %v952_v54 = vpop.eup %951  ;;  %v548_v43 = vpack.c.bf16 %v533_v16, %v532_v22  ;;  %963 = verf.f32 %v495_v27 }
 0x230   :  { %v954_v58 = vpop.eup %953  ;;  %v846_v30 = vpop.f32.mrb[12].mxu0  ;;  %v522_v34 = vadd.f32 1.0, %v952_v54  ;;  %965 = verf.f32 %v493_v25 }
 0x231   :  { %v956_v31 = vpop.eup %955  ;;  %v462_v35 = vadd.f32 %v846_v30, %v1363_v33  ;;  %v453_v55 = vpop.f32.mrb[13].mxu0  ;;  %864 = vmatprep.mubr.bf16.mxu0 %v548_v43  ;;  %v520_v48 = vadd.f32 1.0, %v954_v58 }
 0x232   :  { %v958_v40 = vpop.eup %957  ;;  %v523_v42 = vadd.f32 1.0, %v956_v31  ;;  %v454_v46 = vadd.f32 %v1363_v33, %v453_v55  ;;  %v847_v47 = vpop.f32.mrb[14].mxu0  ;;  %865 = vmatmul.mubr.bf16.vlgmr.msra.gmra.mrb[16].mxu0 %v549_v49  ;;  %v538_v10 = vmul.f32 %v522_v34, %v474_v32  ;;  %v1396_v55 = vld [vmem:[%s1488_s6] ss:$0 sm:$0xff] }
 0x233   :  { %v498_v24 = vmul.f32 0.70710677, %v462_v35  ;;  %v465_v50 = vadd.f32 %v847_v47, %v1363_v33  ;;  %v456_v51 = vpop.f32.mrb[15].mxu0  ;;  %v521_v52 = vadd.f32 1.0, %v958_v40  ;;  %v536_v61 = vmul.f32 %v520_v48, %v472_v0  ;;  %v975_v47 = vld [vmem:[%s1482_s0 + $0x10] sm:$0xff] }
 0x234   :  { %v539_v53 = vmul.f32 %v523_v42, %v475_v41  ;;  %v496_v56 = vmul.f32 0.70710677, %v454_v46  ;;  %v457_v59 = vadd.f32 %v1363_v33, %v456_v51  ;;  %v478_v33 = vmul.f32 0.5, %v1377_v37 }
 0x235   :  { %967 = verf.f32 %v498_v24  ;;  %v499_v57 = vmul.f32 0.70710677, %v465_v50  ;;  %v537_v2 = vmul.f32 %v521_v52, %v473_v36  ;;  %v482_v37 = vmul.f32 0.5, %v462_v35 }
 0x236   :  { %969 = verf.f32 %v496_v56  ;;  %v497_v62 = vmul.f32 0.70710677, %v457_v59  ;;  %v551_v1 = vpack.c.bf16 %v539_v53, %v538_v10  ;;  %v483_v19 = vmul.f32 0.5, %v465_v50  ;;  %v976_v50 = vld [vmem:[%s1482_s0] sm:$0xff]  ;;  %v977_v53 = vld [vmem:[%s1482_s0 + $0x18] sm:$0xff]  ;;  %v978_v56 = vld [vmem:[%s1482_s0 + $0x8] sm:$0xff] }
 0x237   :  { %v960_v3 = vpop.eup %959  ;;  %971 = verf.f32 %v499_v57  ;;  %v550_v11 = vpack.c.bf16 %v537_v2, %v536_v61  ;;  %v480_v25 = vmul.f32 0.5, %v454_v46  ;;  %v481_v9 = vmul.f32 0.5, %v457_v59 }
 0x238   :  { %v962_v44 = vpop.eup %961  ;;  %973 = verf.f32 %v497_v62  ;;  %v526_v4 = vadd.f32 1.0, %v960_v3  ;;  %v979_v3 = vld [vmem:[%s1482_s0 + $0x30] sm:$0xff] }
 0x239   :  { %v964_v5 = vpop.eup %963  ;;  %v524_v23 = vadd.f32 1.0, %v962_v44  ;;  %868 = vmatprep.mubr.bf16.mxu1 %v550_v11 }
 0x23a   :  { %v966_v60 = vpop.eup %965  ;;  %v527_v63 = vadd.f32 1.0, %v964_v5  ;;  %869 = vmatmul.mubr.bf16.vlgmr.msra.gmra.mrb[0].mxu1 %v551_v1  ;;  %v542_v12 = vmul.f32 %v526_v4, %v478_v33  ;;  %v980_v4 = vld [vmem:[%s1482_s0 + $0x20] sm:$0xff] }
 0x23b   :  { %v525_v17 = vadd.f32 1.0, %v966_v60  ;;  %v540_v14 = vmul.f32 %v524_v23, %v476_v7  ;;  %v981_v60 = vld [vmem:[%s1482_s0 + $0x38] sm:$0xff] }
 0x23c   :  { %v543_v13 = vmul.f32 %v527_v63, %v479_v6  ;;  %v982_v6 = vld [vmem:[%s1482_s0 + $0x28] sm:$0xff] }
 0x23d   :  { %v541_v15 = vmul.f32 %v525_v17, %v477_v8 }
 0x23e   :  { %v553_v18 = vpack.c.bf16 %v543_v13, %v542_v12 }
 0x23f   :  { %v968_v38 = vpop.eup %967  ;;  %v552_v22 = vpack.c.bf16 %v541_v15, %v540_v14 }
 0x240   :  { %v970_v45 = vpop.eup %969  ;;  %v530_v39 = vadd.f32 1.0, %v968_v38 }
 0x241   :  { %v972_v16 = vpop.eup %971  ;;  %v528_v49 = vadd.f32 1.0, %v970_v45  ;;  %872 = vmatprep.mubr.bf16.mxu1 %v552_v22 }
 0x242   :  { %v974_v27 = vpop.eup %973  ;;  %v531_v54 = vadd.f32 1.0, %v972_v16  ;;  %873 = vmatmul.mubr.bf16.gmra.mrb[4].mxu1 %v553_v18  ;;  %v546_v43 = vmul.f32 %v530_v39, %v482_v37  ;;  %v983_v18 = vld [vmem:[%s1482_s0 + $0x40] sm:$0xff] }
 0x243   :  { %v529_v26 = vadd.f32 1.0, %v974_v27  ;;  %v544_v30 = vmul.f32 %v528_v49, %v480_v25 }
 0x244   :  { %v547_v58 = vmul.f32 %v531_v54, %v483_v19 }
 0x245   :  { %v545_v31 = vmul.f32 %v529_v26, %v481_v9  ;;  %v985_v26 = vld [vmem:[%s1482_s0 + $0x60] sm:$0xff] }
 0x246   :  { %v555_v32 = vpack.c.bf16 %v547_v58, %v546_v43 }
 0x247   :  { %v554_v34 = vpack.c.bf16 %v545_v31, %v544_v30 }
 0x249   :  { %876 = vmatprep.mubr.bf16.mxu1 %v554_v34 }
 0x24a   :  { %877 = vmatmul.mubr.bf16.gmra.mrb[8].mxu1 %v555_v32 }
 0x305   :  { %v866_v35 = vpop.f32.mrb[16].mxu0 }
 0x306   :  { %v670_v40 = vadd.f32 %v866_v35, %v1396_v55  ;;  %v661_v41 = vpop.f32.mrb[17].mxu0 }
 0x307   :  { %v662_v42 = vadd.f32 %v1396_v55, %v661_v41  ;;  %v867_v46 = vpop.f32.mrb[18].mxu0 }
 0x308   :  { %v726_v48 = vadd.f32 %v975_v47, %v670_v40  ;;  %v673_v0 = vadd.f32 %v867_v46, %v1396_v55  ;;  %v664_v24 = vpop.f32.mrb[19].mxu0 }
 0x309   :  { %v724_v51 = vadd.f32 %v976_v50, %v662_v42  ;;  %v665_v52 = vadd.f32 %v1396_v55, %v664_v24 }
 0x30a   :  { %742 = vst.msk [vmem:[#allocation2 + $0x10] sm:$0xff] %vm46_vm0, %v726_v48  ;;  %v727_v36 = vadd.f32 %v977_v53, %v673_v0 }
 0x30b   :  { %740 = vst.msk [vmem:[#allocation2] sm:$0xff] %vm46_vm0, %v724_v51  ;;  %v725_v59 = vadd.f32 %v978_v56, %v665_v52 }
 0x30c   :  { %743 = vst.msk [vmem:[#allocation2 + $0x18] sm:$0xff] %vm46_vm0, %v727_v36 }
 0x30d   :  { %741 = vst.msk [vmem:[#allocation2 + $0x8] sm:$0xff] %vm46_vm0, %v725_v59  ;;  %v870_v10 = vpop.f32.mrb[0].mxu1 }
 0x30e   :  { %v686_v57 = vadd.f32 %v870_v10, %v1396_v55  ;;  %v677_v62 = vpop.f32.mrb[1].mxu1 }
 0x30f   :  { %v678_v61 = vadd.f32 %v1396_v55, %v677_v62  ;;  %v871_v2 = vpop.f32.mrb[2].mxu1 }
 0x310   :  { %v730_v1 = vadd.f32 %v979_v3, %v686_v57  ;;  %v689_v44 = vadd.f32 %v871_v2, %v1396_v55  ;;  %v680_v11 = vpop.f32.mrb[3].mxu1 }
 0x311   :  { %v728_v5 = vadd.f32 %v980_v4, %v678_v61  ;;  %v681_v23 = vadd.f32 %v1396_v55, %v680_v11 }
 0x312   :  { %746 = vst.msk [vmem:[#allocation2 + $0x30] sm:$0xff] %vm46_vm0, %v730_v1  ;;  %v731_v33 = vadd.f32 %v981_v60, %v689_v44 }
 0x313   :  { %744 = vst.msk [vmem:[#allocation2 + $0x20] sm:$0xff] %vm46_vm0, %v728_v5  ;;  %v729_v63 = vadd.f32 %v982_v6, %v681_v23 }
 0x314   :  { %747 = vst.msk [vmem:[#allocation2 + $0x38] sm:$0xff] %vm46_vm0, %v731_v33 }
 0x315   :  { %745 = vst.msk [vmem:[#allocation2 + $0x28] sm:$0xff] %vm46_vm0, %v729_v63  ;;  %v874_v7 = vpop.f32.mrb[4].mxu1 }
 0x316   :  { %v702_v8 = vadd.f32 %v874_v7, %v1396_v55  ;;  %v693_v17 = vpop.f32.mrb[5].mxu1 }
 0x317   :  { %v694_v12 = vadd.f32 %v1396_v55, %v693_v17  ;;  %v875_v13 = vpop.f32.mrb[6].mxu1 }
 0x318   :  { %v734_v14 = vadd.f32 %v702_v8, %v1115_v20  ;;  %v705_v15 = vadd.f32 %v875_v13, %v1396_v55  ;;  %v696_v38 = vpop.f32.mrb[7].mxu1  ;;  %v984_v20 = vld [vmem:[%s1482_s0 + $0x48] sm:$0xff] }
 0x319   :  { %v732_v45 = vadd.f32 %v983_v18, %v694_v12  ;;  %v697_v39 = vadd.f32 %v1396_v55, %v696_v38 }
 0x31a   :  { %750 = vst.msk [vmem:[#allocation2 + $0x50] sm:$0xff] %vm46_vm0, %v734_v14  ;;  %v735_v22 = vadd.f32 %v705_v15, %v1120_v21 }
 0x31b   :  { %748 = vst.msk [vmem:[#allocation2 + $0x40] sm:$0xff] %vm46_vm0, %v732_v45  ;;  %v733_v16 = vadd.f32 %v984_v20, %v697_v39 }
 0x31c   :  { %751 = vst.msk [vmem:[#allocation2 + $0x58] sm:$0xff] %vm46_vm0, %v735_v22 }
 0x31d   :  { %749 = vst.msk [vmem:[#allocation2 + $0x48] sm:$0xff] %vm46_vm0, %v733_v16  ;;  %v878_v49 = vpop.f32.mrb[8].mxu1 }
 0x31e   :  { %v718_v27 = vadd.f32 %v878_v49, %v1396_v55  ;;  %v709_v37 = vpop.f32.mrb[9].mxu1 }
 0x31f   :  { %v710_v19 = vadd.f32 %v1396_v55, %v709_v37  ;;  %v879_v54 = vpop.f32.mrb[10].mxu1 }
 0x320   :  { %v738_v21 = vadd.f32 %v718_v27, %v1143_v28  ;;  %v721_v25 = vadd.f32 %v879_v54, %v1396_v55  ;;  %v712_v9 = vpop.f32.mrb[11].mxu1  ;;  %v986_v28 = vld [vmem:[%s1482_s0 + $0x68] sm:$0xff] }
 0x321   :  { %v736_v43 = vadd.f32 %v985_v26, %v710_v19  ;;  %v713_v58 = vadd.f32 %v1396_v55, %v712_v9 }
 0x322   :  { %754 = vst.msk [vmem:[#allocation2 + $0x70] sm:$0xff] %vm46_vm0, %v738_v21  ;;  %v739_v30 = vadd.f32 %v721_v25, %v1148_v29 }
 0x323   :  { %752 = vst.msk [vmem:[#allocation2 + $0x60] sm:$0xff] %vm46_vm0, %v736_v43  ;;  %v737_v31 = vadd.f32 %v986_v28, %v713_v58 }
 0x324   :  { %755 = vst.msk [vmem:[#allocation2 + $0x78] sm:$0xff] %vm46_vm0, %v739_v30 }
 0x325   :  { %753 = vst.msk [vmem:[#allocation2 + $0x68] sm:$0xff] %vm46_vm0, %v737_v31 }
 0x326   :  { %998 = shalt.err (!%p995_p4)
}
 0x327   :  { %s999_s14 = scalar_lea.hbm %s1489_s7, 2048 }
 0x328   :  { %p1000_p5 = scmp.ne.s32.totalorder %s1489_s7, %s999_s14  ;;  %p1003_p6 = scmp.lt.u32.totalorder %s999_s14, %s1489_s7 }
 0x32a   :  { %p1005_p7 = pnand %p1003_p6, %p1000_p5 }
 0x32c   :  { %1008 = shalt.err (!%p1005_p7)
}
 0x32d   :  { %s1012_s6 = smov 128   ;;  %s1013_s18 = smov 8  }
 0x32e   :  { %767 = dma.vmem_to_hbm [thread:$0]  %s762_s8, 2048, %s1489_s7, [#allocation3], %s1012_s6, %s1012_s6, %s1013_s18  }
 0x32f   :  { %1009 = dma.done.wait [#allocation3], 2048  }
 0x330   :  { %1010 = vsyncadd [#allocation3], 4294965248 }
 0x331   :  { %771 = vsyncpa [#allocation3], 1 }

</bundles_post_ra>
